<compile_context>
chip_gen: v6e
topology: v6e:2x2x1
jax: 0.10.0
libtpu: 0.0.40
codegen_flags: <defaults>
</compile_context>

<pallas_src>
import math

import numpy as np
import jax
import jax.numpy as jnp
from jax.experimental import pallas as pl
from jax.experimental.pallas import tpu as pltpu


def rvae_kernel(
    sent_ref, eps_ref,
    c2p_pa_w_ref, c2p_ch_w_ref, c2p_b_ref,
    p2h_w_ref, p2h_b_ref,
    eh2h_w_ref, eh2h_b_ref,
    h2md_w_ref, h2md_b_ref,
    e2h_w_ref, e2h_b_ref,
    dh2h_w_ref, dh2h_b_ref,
    h2p_w_ref, h2p_b_ref,
    p2c_w_ref, p2c_b_ref,
    se_ref, mu_ref, va_ref, sc_ref,
):
    node, word_dim = sent_ref.shape   # compile-time constants (node >= 2)
    enc = mu_ref.shape[1]

    def linear(x, w_ref, b_ref):
        return jnp.dot(x, w_ref[...], preferred_element_type=jnp.float32) + b_ref[...]

    # ---------------- encode: fold children into one parent vector -------------
    # Hoisted child contributions: one batched matmul off the critical path,
    # instead of one extra M=1 matmul per serial fold step.
    child_pre = linear(sent_ref[1:node, :], c2p_ch_w_ref, c2p_b_ref)   # (node-1, word)

    parent = sent_ref[0:1, :]                                           # (1, word)
    for i in range(node - 1):                                           # static unroll
        pre = (jnp.dot(parent, c2p_pa_w_ref[...], preferred_element_type=jnp.float32)
               + child_pre[i:i + 1, :])
        parent = jnp.tanh(pre)

    h = jnp.tanh(linear(parent, p2h_w_ref, p2h_b_ref))                  # (1, hid)
    hid_code = jnp.tanh(linear(h, eh2h_w_ref, eh2h_b_ref))              # (1, hid)

    # Fused mu|va head: single (1, hid) x (hid, 2*enc) matmul, lane-sliced.
    mv = jnp.tanh(linear(hid_code, h2md_w_ref, h2md_b_ref))             # (1, 2*enc)
    mu = mv[:, :enc]
    va = mv[:, enc:]
    mu_ref[...] = mu
    va_ref[...] = va

    # ---------------- reparameterize -------------------------------------------
    std = jnp.exp(0.5 * va)
    zc = eps_ref[...] * std + mu                                        # (1, enc)

    # ---------------- log-softmax over the encoding dimension ------------------
    m = jnp.max(zc, axis=-1, keepdims=True)
    lse = m + jnp.log(jnp.sum(jnp.exp(zc - m), axis=-1, keepdims=True))
    sc_ref[...] = zc - lse

    # ---------------- decode ----------------------------------------------------
    d = jnp.tanh(linear(zc, e2h_w_ref, e2h_b_ref))
    d = jnp.tanh(linear(d, dh2h_w_ref, dh2h_b_ref))
    dparent = jnp.tanh(linear(d, h2p_w_ref, h2p_b_ref))                 # (1, word)

    rows = [None] * node
    for i in range(node - 1):                                           # static unroll
        # Fused lo|hi projection: one (1, word) x (word, 2*word) matmul per step.
        children = jnp.tanh(linear(dparent, p2c_w_ref, p2c_b_ref))      # (1, 2*word)
        lo = children[:, :word_dim]
        hi = children[:, word_dim:]
        if i < node - 2:
            rows[node - i - 1] = lo
            dparent = hi
        else:
            rows[1] = lo
            rows[0] = hi

    # Assemble all rows in vregs and do ONE dense store (no zero-init needed:
    # every row 0..node-1 is produced by the loop when node >= 2).
    row_ids = jax.lax.broadcasted_iota(jnp.int32, (node, word_dim), 0)
    se = jnp.zeros((node, word_dim), jnp.float32)
    for r in range(node):
        se = jnp.where(row_ids == r,
                       jnp.broadcast_to(rows[r], (node, word_dim)),
                       se)
    se_ref[...] = se


# ------------------------------ parameter setup --------------------------------
def _init_linear(key, in_f, out_f):
    # PyTorch nn.Linear default init: U(-1/sqrt(fan_in), 1/sqrt(fan_in))
    kw, kb = jax.random.split(key)
    bound = 1.0 / math.sqrt(in_f)
    w = jax.random.uniform(kw, (out_f, in_f), jnp.float32, -bound, bound)
    b = jax.random.uniform(kb, (out_f,), jnp.float32, -bound, bound)
    return w, b


def init_rvae_params(key, word_dim, hid_size, enc_size):
    dims = {
        "WeC2P": (2 * word_dim, word_dim),
        "WeP2H": (word_dim, hid_size),
        "WeH2H": (hid_size, hid_size),
        "WeH2M": (hid_size, enc_size),
        "WeH2D": (hid_size, enc_size),
        "WdE2H": (enc_size, hid_size),
        "WdH2H": (hid_size, hid_size),
        "WdH2P": (hid_size, word_dim),
        "WdP2C": (word_dim, 2 * word_dim),
    }
    names = list(dims.keys())
    keys = jax.random.split(key, len(names))
    params = {}
    for k, name in zip(keys, names):
        in_f, out_f = dims[name]
        params[name] = _init_linear(k, in_f, out_f)   # (w: (out,in), b: (out,))
    return params


def _kernel_weight_args(params, word_dim):
    # WeC2P acts on cat([parent, child]); split (and transpose) so the kernel
    # can hoist the child half out of the serial fold.
    w, b = params["WeC2P"]                      # (word, 2*word), (word,)
    c2p_pa_w = w[:, :word_dim].T                # (word, word)
    c2p_ch_w = w[:, word_dim:].T                # (word, word)
    c2p_b = b[None, :]

    def t(name):
        w_, b_ = params[name]
        return w_.T, b_[None, :]

    p2h_w, p2h_b = t("WeP2H")
    eh2h_w, eh2h_b = t("WeH2H")

    # Fused mu|va head: one (hid, 2*enc) weight / (1, 2*enc) bias.
    h2m_w, h2m_b = t("WeH2M")
    h2d_w, h2d_b = t("WeH2D")
    h2md_w = jnp.concatenate([h2m_w, h2d_w], axis=1)
    h2md_b = jnp.concatenate([h2m_b, h2d_b], axis=1)

    e2h_w, e2h_b = t("WdE2H")
    dh2h_w, dh2h_b = t("WdH2H")
    h2p_w, h2p_b = t("WdH2P")

    # Fused decoder lo|hi projection: single (word, 2*word) weight.
    p2c_w, p2c_b = t("WdP2C")

    return (c2p_pa_w, c2p_ch_w, c2p_b,
            p2h_w, p2h_b, eh2h_w, eh2h_b,
            h2md_w, h2md_b,
            e2h_w, e2h_b, dh2h_w, dh2h_b,
            h2p_w, h2p_b,
            p2c_w, p2c_b)


# ------------------------------ wrapper -----------------------------------------
def rvae_forward(sent, eps, params):
    node, word_dim = sent.shape
    assert node >= 2, "RVAE kernel assumes node >= 2 (matches the PyTorch tree fold)"
    enc_size = params["WeH2M"][0].shape[0]

    args = (sent, eps) + _kernel_weight_args(params, word_dim)
    vmem_spec = pl.BlockSpec(memory_space=pltpu.MemorySpace.VMEM)

    out_shape = (
        jax.ShapeDtypeStruct((node, word_dim), jnp.float32),  # se
        jax.ShapeDtypeStruct((1, enc_size), jnp.float32),     # mu
        jax.ShapeDtypeStruct((1, enc_size), jnp.float32),     # va
        jax.ShapeDtypeStruct((1, enc_size), jnp.float32),     # sc (log-softmax)
    )

    se, mu, va, sc = pl.pallas_call(
        rvae_kernel,
        out_shape=out_shape,
        in_specs=[vmem_spec] * len(args),
        out_specs=tuple([vmem_spec] * 4),
    )(*args)
    # Match PyTorch return shapes: se (node, word_dim); mu/va/sc 1-D (enc_size,)
    return se, mu[0], va[0], sc[0]


# ------------------------------ pure-JAX reference -------------------------------
def rvae_reference(sent, eps, params):
    def lin(name, x):
        w, b = params[name]
        return x @ w.T + b

    node, word_dim = sent.shape
    parent = sent[0]
    for i in range(1, node):
        parent = jnp.tanh(lin("WeC2P", jnp.concatenate([parent, sent[i]], 0)))
    hid_code = jnp.tanh(lin("WeH2H", jnp.tanh(lin("WeP2H", parent))))
    mu = jnp.tanh(lin("WeH2M", hid_code))
    va = jnp.tanh(lin("WeH2D", hid_code))
    std = jnp.exp(0.5 * va)
    zc = eps[0] * std + mu
    sc = zc - jax.scipy.special.logsumexp(zc)
    dparent = jnp.tanh(lin("WdH2P", jnp.tanh(lin("WdH2H", jnp.tanh(lin("WdE2H", zc))))))
    se = jnp.zeros((node, word_dim), jnp.float32)
    for i in range(node - 1):
        children = jnp.tanh(lin("WdP2C", dparent))
        if i < node - 2:
            se = se.at[node - i - 1].set(children[:word_dim])
            dparent = children[word_dim:]
        else:
            se = se.at[1].set(children[:word_dim])
            se = se.at[0].set(children[word_dim:])
    return se, mu, va, sc


if __name__ == "__main__":
    jax.config.update("jax_default_matmul_precision", "highest")

    node, word_dim, hid_size, enc_size = 8, 32, 32, 32
    key = jax.random.PRNGKey(0)
    k_sent, k_eps, k_params = jax.random.split(key, 3)

    sent = jax.random.normal(k_sent, (node, word_dim), jnp.float32)
    # Deterministic reparameterization noise (PyTorch draws std.new(...).normal_())
    eps = jax.random.normal(k_eps, (1, enc_size), jnp.float32)
    params = init_rvae_params(k_params, word_dim, hid_size, enc_size)

    se, mu, va, sc = jax.block_until_ready(rvae_forward(sent, eps, params))

    se_r, mu_r, va_r, sc_r = rvae_reference(sent, eps, params)
    np.testing.assert_allclose(np.asarray(se), np.asarray(se_r), atol=1e-3, rtol=1e-3)
    np.testing.assert_allclose(np.asarray(mu), np.asarray(mu_r), atol=1e-3, rtol=1e-3)
    np.testing.assert_allclose(np.asarray(va), np.asarray(va_r), atol=1e-3, rtol=1e-3)
    np.testing.assert_allclose(np.asarray(sc), np.asarray(sc_r), atol=1e-3, rtol=1e-3)

    print("KERNEL_OK")
</pallas_src>

<mosaic_0001>
module attributes {stable_mosaic.version = 11 : i64} {
  func.func @rvae_kernel(%arg0: memref<8x32xf32, #tpu.memory_space<vmem>>, %arg1: memref<1x32xf32, #tpu.memory_space<vmem>>, %arg2: memref<32x32xf32, #tpu.memory_space<vmem>>, %arg3: memref<32x32xf32, #tpu.memory_space<vmem>>, %arg4: memref<1x32xf32, #tpu.memory_space<vmem>>, %arg5: memref<32x32xf32, #tpu.memory_space<vmem>>, %arg6: memref<1x32xf32, #tpu.memory_space<vmem>>, %arg7: memref<32x32xf32, #tpu.memory_space<vmem>>, %arg8: memref<1x32xf32, #tpu.memory_space<vmem>>, %arg9: memref<32x64xf32, #tpu.memory_space<vmem>>, %arg10: memref<1x64xf32, #tpu.memory_space<vmem>>, %arg11: memref<32x32xf32, #tpu.memory_space<vmem>>, %arg12: memref<1x32xf32, #tpu.memory_space<vmem>>, %arg13: memref<32x32xf32, #tpu.memory_space<vmem>>, %arg14: memref<1x32xf32, #tpu.memory_space<vmem>>, %arg15: memref<32x32xf32, #tpu.memory_space<vmem>>, %arg16: memref<1x32xf32, #tpu.memory_space<vmem>>, %arg17: memref<32x64xf32, #tpu.memory_space<vmem>>, %arg18: memref<1x64xf32, #tpu.memory_space<vmem>>, %arg19: memref<8x32xf32, #tpu.memory_space<vmem>>, %arg20: memref<1x32xf32, #tpu.memory_space<vmem>>, %arg21: memref<1x32xf32, #tpu.memory_space<vmem>>, %arg22: memref<1x32xf32, #tpu.memory_space<vmem>>) attributes {dimension_semantics = [], scalar_prefetch = 0 : i64, scratch_operands = 0 : i64, tpu.core_type = #tpu.core_type<tc>} {
    %c1 = arith.constant 1 : index
    %c0 = arith.constant 0 : index
    %0 = vector.load %arg0[%c1, %c0] : memref<8x32xf32, #tpu.memory_space<vmem>>, vector<7x32xf32>
    %c0_0 = arith.constant 0 : index
    %c0_1 = arith.constant 0 : index
    %1 = vector.load %arg3[%c0_0, %c0_1] : memref<32x32xf32, #tpu.memory_space<vmem>>, vector<32x32xf32>
    %cst = arith.constant dense<0.000000e+00> : vector<7x32xf32>
    %2 = tpu.matmul %0, %1, %cst {dimension_numbers = #tpu.dot_dimension_numbers<[1], [0], [0], [1], [0, 0, 1, 1], [], []>, precision = #tpu.contract_precision<fp32>} : vector<7x32xf32>, vector<32x32xf32>, vector<7x32xf32> -> vector<7x32xf32>
    %c0_2 = arith.constant 0 : index
    %c0_3 = arith.constant 0 : index
    %3 = vector.load %arg4[%c0_2, %c0_3] : memref<1x32xf32, #tpu.memory_space<vmem>>, vector<1x32xf32>
    %4 = vector.broadcast %3 : vector<1x32xf32> to vector<7x32xf32>
    %5 = arith.addf %2, %4 : vector<7x32xf32>
    %c0_4 = arith.constant 0 : index
    %c0_5 = arith.constant 0 : index
    %6 = vector.load %arg0[%c0_4, %c0_5] : memref<8x32xf32, #tpu.memory_space<vmem>>, vector<1x32xf32>
    %c0_6 = arith.constant 0 : index
    %c0_7 = arith.constant 0 : index
    %7 = vector.load %arg2[%c0_6, %c0_7] : memref<32x32xf32, #tpu.memory_space<vmem>>, vector<32x32xf32>
    %cst_8 = arith.constant dense<0.000000e+00> : vector<1x32xf32>
    %8 = tpu.matmul %6, %7, %cst_8 {dimension_numbers = #tpu.dot_dimension_numbers<[1], [0], [0], [1], [0, 0, 1, 1], [], []>, precision = #tpu.contract_precision<fp32>} : vector<1x32xf32>, vector<32x32xf32>, vector<1x32xf32> -> vector<1x32xf32>
    %9 = vector.extract_strided_slice %5 {offsets = [0, 0], sizes = [1, 32], strides = [1, 1]} : vector<7x32xf32> to vector<1x32xf32>
    %10 = arith.addf %8, %9 : vector<1x32xf32>
    %11 = math.tanh %10 : vector<1x32xf32>
    %c0_9 = arith.constant 0 : index
    %c0_10 = arith.constant 0 : index
    %12 = vector.load %arg2[%c0_9, %c0_10] : memref<32x32xf32, #tpu.memory_space<vmem>>, vector<32x32xf32>
    %cst_11 = arith.constant dense<0.000000e+00> : vector<1x32xf32>
    %13 = tpu.matmul %11, %12, %cst_11 {dimension_numbers = #tpu.dot_dimension_numbers<[1], [0], [0], [1], [0, 0, 1, 1], [], []>, precision = #tpu.contract_precision<fp32>} : vector<1x32xf32>, vector<32x32xf32>, vector<1x32xf32> -> vector<1x32xf32>
    %14 = vector.extract_strided_slice %5 {offsets = [1, 0], sizes = [1, 32], strides = [1, 1]} : vector<7x32xf32> to vector<1x32xf32>
    %15 = arith.addf %13, %14 : vector<1x32xf32>
    %16 = math.tanh %15 : vector<1x32xf32>
    %c0_12 = arith.constant 0 : index
    %c0_13 = arith.constant 0 : index
    %17 = vector.load %arg2[%c0_12, %c0_13] : memref<32x32xf32, #tpu.memory_space<vmem>>, vector<32x32xf32>
    %cst_14 = arith.constant dense<0.000000e+00> : vector<1x32xf32>
    %18 = tpu.matmul %16, %17, %cst_14 {dimension_numbers = #tpu.dot_dimension_numbers<[1], [0], [0], [1], [0, 0, 1, 1], [], []>, precision = #tpu.contract_precision<fp32>} : vector<1x32xf32>, vector<32x32xf32>, vector<1x32xf32> -> vector<1x32xf32>
    %19 = vector.extract_strided_slice %5 {offsets = [2, 0], sizes = [1, 32], strides = [1, 1]} : vector<7x32xf32> to vector<1x32xf32>
    %20 = arith.addf %18, %19 : vector<1x32xf32>
    %21 = math.tanh %20 : vector<1x32xf32>
    %c0_15 = arith.constant 0 : index
    %c0_16 = arith.constant 0 : index
    %22 = vector.load %arg2[%c0_15, %c0_16] : memref<32x32xf32, #tpu.memory_space<vmem>>, vector<32x32xf32>
    %cst_17 = arith.constant dense<0.000000e+00> : vector<1x32xf32>
    %23 = tpu.matmul %21, %22, %cst_17 {dimension_numbers = #tpu.dot_dimension_numbers<[1], [0], [0], [1], [0, 0, 1, 1], [], []>, precision = #tpu.contract_precision<fp32>} : vector<1x32xf32>, vector<32x32xf32>, vector<1x32xf32> -> vector<1x32xf32>
    %24 = vector.extract_strided_slice %5 {offsets = [3, 0], sizes = [1, 32], strides = [1, 1]} : vector<7x32xf32> to vector<1x32xf32>
    %25 = arith.addf %23, %24 : vector<1x32xf32>
    %26 = math.tanh %25 : vector<1x32xf32>
    %c0_18 = arith.constant 0 : index
    %c0_19 = arith.constant 0 : index
    %27 = vector.load %arg2[%c0_18, %c0_19] : memref<32x32xf32, #tpu.memory_space<vmem>>, vector<32x32xf32>
    %cst_20 = arith.constant dense<0.000000e+00> : vector<1x32xf32>
    %28 = tpu.matmul %26, %27, %cst_20 {dimension_numbers = #tpu.dot_dimension_numbers<[1], [0], [0], [1], [0, 0, 1, 1], [], []>, precision = #tpu.contract_precision<fp32>} : vector<1x32xf32>, vector<32x32xf32>, vector<1x32xf32> -> vector<1x32xf32>
    %29 = vector.extract_strided_slice %5 {offsets = [4, 0], sizes = [1, 32], strides = [1, 1]} : vector<7x32xf32> to vector<1x32xf32>
    %30 = arith.addf %28, %29 : vector<1x32xf32>
    %31 = math.tanh %30 : vector<1x32xf32>
    %c0_21 = arith.constant 0 : index
    %c0_22 = arith.constant 0 : index
    %32 = vector.load %arg2[%c0_21, %c0_22] : memref<32x32xf32, #tpu.memory_space<vmem>>, vector<32x32xf32>
    %cst_23 = arith.constant dense<0.000000e+00> : vector<1x32xf32>
    %33 = tpu.matmul %31, %32, %cst_23 {dimension_numbers = #tpu.dot_dimension_numbers<[1], [0], [0], [1], [0, 0, 1, 1], [], []>, precision = #tpu.contract_precision<fp32>} : vector<1x32xf32>, vector<32x32xf32>, vector<1x32xf32> -> vector<1x32xf32>
    %34 = vector.extract_strided_slice %5 {offsets = [5, 0], sizes = [1, 32], strides = [1, 1]} : vector<7x32xf32> to vector<1x32xf32>
    %35 = arith.addf %33, %34 : vector<1x32xf32>
    %36 = math.tanh %35 : vector<1x32xf32>
    %c0_24 = arith.constant 0 : index
    %c0_25 = arith.constant 0 : index
    %37 = vector.load %arg2[%c0_24, %c0_25] : memref<32x32xf32, #tpu.memory_space<vmem>>, vector<32x32xf32>
    %cst_26 = arith.constant dense<0.000000e+00> : vector<1x32xf32>
    %38 = tpu.matmul %36, %37, %cst_26 {dimension_numbers = #tpu.dot_dimension_numbers<[1], [0], [0], [1], [0, 0, 1, 1], [], []>, precision = #tpu.contract_precision<fp32>} : vector<1x32xf32>, vector<32x32xf32>, vector<1x32xf32> -> vector<1x32xf32>
    %39 = vector.extract_strided_slice %5 {offsets = [6, 0], sizes = [1, 32], strides = [1, 1]} : vector<7x32xf32> to vector<1x32xf32>
    %40 = arith.addf %38, %39 : vector<1x32xf32>
    %41 = math.tanh %40 : vector<1x32xf32>
    %c0_27 = arith.constant 0 : index
    %c0_28 = arith.constant 0 : index
    %42 = vector.load %arg5[%c0_27, %c0_28] : memref<32x32xf32, #tpu.memory_space<vmem>>, vector<32x32xf32>
    %cst_29 = arith.constant dense<0.000000e+00> : vector<1x32xf32>
    %43 = tpu.matmul %41, %42, %cst_29 {dimension_numbers = #tpu.dot_dimension_numbers<[1], [0], [0], [1], [0, 0, 1, 1], [], []>, precision = #tpu.contract_precision<fp32>} : vector<1x32xf32>, vector<32x32xf32>, vector<1x32xf32> -> vector<1x32xf32>
    %c0_30 = arith.constant 0 : index
    %c0_31 = arith.constant 0 : index
    %44 = vector.load %arg6[%c0_30, %c0_31] : memref<1x32xf32, #tpu.memory_space<vmem>>, vector<1x32xf32>
    %45 = arith.addf %43, %44 : vector<1x32xf32>
    %46 = math.tanh %45 : vector<1x32xf32>
    %c0_32 = arith.constant 0 : index
    %c0_33 = arith.constant 0 : index
    %47 = vector.load %arg7[%c0_32, %c0_33] : memref<32x32xf32, #tpu.memory_space<vmem>>, vector<32x32xf32>
    %cst_34 = arith.constant dense<0.000000e+00> : vector<1x32xf32>
    %48 = tpu.matmul %46, %47, %cst_34 {dimension_numbers = #tpu.dot_dimension_numbers<[1], [0], [0], [1], [0, 0, 1, 1], [], []>, precision = #tpu.contract_precision<fp32>} : vector<1x32xf32>, vector<32x32xf32>, vector<1x32xf32> -> vector<1x32xf32>
    %c0_35 = arith.constant 0 : index
    %c0_36 = arith.constant 0 : index
    %49 = vector.load %arg8[%c0_35, %c0_36] : memref<1x32xf32, #tpu.memory_space<vmem>>, vector<1x32xf32>
    %50 = arith.addf %48, %49 : vector<1x32xf32>
    %51 = math.tanh %50 : vector<1x32xf32>
    %c0_37 = arith.constant 0 : index
    %c0_38 = arith.constant 0 : index
    %52 = vector.load %arg9[%c0_37, %c0_38] : memref<32x64xf32, #tpu.memory_space<vmem>>, vector<32x64xf32>
    %cst_39 = arith.constant dense<0.000000e+00> : vector<1x64xf32>
    %53 = tpu.matmul %51, %52, %cst_39 {dimension_numbers = #tpu.dot_dimension_numbers<[1], [0], [0], [1], [0, 0, 1, 1], [], []>, precision = #tpu.contract_precision<fp32>} : vector<1x32xf32>, vector<32x64xf32>, vector<1x64xf32> -> vector<1x64xf32>
    %c0_40 = arith.constant 0 : index
    %c0_41 = arith.constant 0 : index
    %54 = vector.load %arg10[%c0_40, %c0_41] : memref<1x64xf32, #tpu.memory_space<vmem>>, vector<1x64xf32>
    %55 = arith.addf %53, %54 : vector<1x64xf32>
    %56 = math.tanh %55 : vector<1x64xf32>
    %57 = vector.extract_strided_slice %56 {offsets = [0, 0], sizes = [1, 32], strides = [1, 1]} : vector<1x64xf32> to vector<1x32xf32>
    %58 = vector.extract_strided_slice %56 {offsets = [0, 32], sizes = [1, 32], strides = [1, 1]} : vector<1x64xf32> to vector<1x32xf32>
    %c0_42 = arith.constant 0 : index
    %c0_43 = arith.constant 0 : index
    %59 = vector.load %arg20[%c0_42, %c0_43] : memref<1x32xf32, #tpu.memory_space<vmem>>, vector<1x32xf32>
    tpu.vector_store %arg20[%c0_42, %c0_43], %57 {strides = array<i32>} : memref<1x32xf32, #tpu.memory_space<vmem>>, vector<1x32xf32>,
    %c0_44 = arith.constant 0 : index
    %c0_45 = arith.constant 0 : index
    %60 = vector.load %arg21[%c0_44, %c0_45] : memref<1x32xf32, #tpu.memory_space<vmem>>, vector<1x32xf32>
    tpu.vector_store %arg21[%c0_44, %c0_45], %58 {strides = array<i32>} : memref<1x32xf32, #tpu.memory_space<vmem>>, vector<1x32xf32>,
    %cst_46 = arith.constant 5.000000e-01 : f32
    %61 = vector.broadcast %cst_46 : f32 to vector<1x32xf32>
    %62 = arith.mulf %61, %58 : vector<1x32xf32>
    %63 = math.exp %62 : vector<1x32xf32>
    %c0_47 = arith.constant 0 : index
    %c0_48 = arith.constant 0 : index
    %64 = vector.load %arg1[%c0_47, %c0_48] : memref<1x32xf32, #tpu.memory_space<vmem>>, vector<1x32xf32>
    %65 = arith.mulf %64, %63 : vector<1x32xf32>
    %66 = arith.addf %65, %57 : vector<1x32xf32>
    %cst_49 = arith.constant dense<0xFF800000> : vector<1xf32>
    %67 = vector.multi_reduction <maximumf>, %66, %cst_49 [1] : vector<1x32xf32> to vector<1xf32>
    %68 = vector.shape_cast %67 : vector<1xf32> to vector<1x1xf32>
    %69 = vector.broadcast %68 : vector<1x1xf32> to vector<1x32xf32>
    %70 = arith.subf %66, %69 : vector<1x32xf32>
    %71 = math.exp %70 : vector<1x32xf32>
    %cst_50 = arith.constant dense<0.000000e+00> : vector<1xf32>
    %72 = vector.multi_reduction <add>, %71, %cst_50 [1] : vector<1x32xf32> to vector<1xf32>
    %73 = vector.shape_cast %72 : vector<1xf32> to vector<1x1xf32>
    %74 = math.log %73 : vector<1x1xf32>
    %75 = arith.addf %68, %74 : vector<1x1xf32>
    %76 = vector.broadcast %75 : vector<1x1xf32> to vector<1x32xf32>
    %77 = arith.subf %66, %76 : vector<1x32xf32>
    %c0_51 = arith.constant 0 : index
    %c0_52 = arith.constant 0 : index
    %78 = vector.load %arg22[%c0_51, %c0_52] : memref<1x32xf32, #tpu.memory_space<vmem>>, vector<1x32xf32>
    tpu.vector_store %arg22[%c0_51, %c0_52], %77 {strides = array<i32>} : memref<1x32xf32, #tpu.memory_space<vmem>>, vector<1x32xf32>,
    %c0_53 = arith.constant 0 : index
    %c0_54 = arith.constant 0 : index
    %79 = vector.load %arg11[%c0_53, %c0_54] : memref<32x32xf32, #tpu.memory_space<vmem>>, vector<32x32xf32>
    %cst_55 = arith.constant dense<0.000000e+00> : vector<1x32xf32>
    %80 = tpu.matmul %66, %79, %cst_55 {dimension_numbers = #tpu.dot_dimension_numbers<[1], [0], [0], [1], [0, 0, 1, 1], [], []>, precision = #tpu.contract_precision<fp32>} : vector<1x32xf32>, vector<32x32xf32>, vector<1x32xf32> -> vector<1x32xf32>
    %c0_56 = arith.constant 0 : index
    %c0_57 = arith.constant 0 : index
    %81 = vector.load %arg12[%c0_56, %c0_57] : memref<1x32xf32, #tpu.memory_space<vmem>>, vector<1x32xf32>
    %82 = arith.addf %80, %81 : vector<1x32xf32>
    %83 = math.tanh %82 : vector<1x32xf32>
    %c0_58 = arith.constant 0 : index
    %c0_59 = arith.constant 0 : index
    %84 = vector.load %arg13[%c0_58, %c0_59] : memref<32x32xf32, #tpu.memory_space<vmem>>, vector<32x32xf32>
    %cst_60 = arith.constant dense<0.000000e+00> : vector<1x32xf32>
    %85 = tpu.matmul %83, %84, %cst_60 {dimension_numbers = #tpu.dot_dimension_numbers<[1], [0], [0], [1], [0, 0, 1, 1], [], []>, precision = #tpu.contract_precision<fp32>} : vector<1x32xf32>, vector<32x32xf32>, vector<1x32xf32> -> vector<1x32xf32>
    %c0_61 = arith.constant 0 : index
    %c0_62 = arith.constant 0 : index
    %86 = vector.load %arg14[%c0_61, %c0_62] : memref<1x32xf32, #tpu.memory_space<vmem>>, vector<1x32xf32>
    %87 = arith.addf %85, %86 : vector<1x32xf32>
    %88 = math.tanh %87 : vector<1x32xf32>
    %c0_63 = arith.constant 0 : index
    %c0_64 = arith.constant 0 : index
    %89 = vector.load %arg15[%c0_63, %c0_64] : memref<32x32xf32, #tpu.memory_space<vmem>>, vector<32x32xf32>
    %cst_65 = arith.constant dense<0.000000e+00> : vector<1x32xf32>
    %90 = tpu.matmul %88, %89, %cst_65 {dimension_numbers = #tpu.dot_dimension_numbers<[1], [0], [0], [1], [0, 0, 1, 1], [], []>, precision = #tpu.contract_precision<fp32>} : vector<1x32xf32>, vector<32x32xf32>, vector<1x32xf32> -> vector<1x32xf32>
    %c0_66 = arith.constant 0 : index
    %c0_67 = arith.constant 0 : index
    %91 = vector.load %arg16[%c0_66, %c0_67] : memref<1x32xf32, #tpu.memory_space<vmem>>, vector<1x32xf32>
    %92 = arith.addf %90, %91 : vector<1x32xf32>
    %93 = math.tanh %92 : vector<1x32xf32>
    %c0_68 = arith.constant 0 : index
    %c0_69 = arith.constant 0 : index
    %94 = vector.load %arg17[%c0_68, %c0_69] : memref<32x64xf32, #tpu.memory_space<vmem>>, vector<32x64xf32>
    %cst_70 = arith.constant dense<0.000000e+00> : vector<1x64xf32>
    %95 = tpu.matmul %93, %94, %cst_70 {dimension_numbers = #tpu.dot_dimension_numbers<[1], [0], [0], [1], [0, 0, 1, 1], [], []>, precision = #tpu.contract_precision<fp32>} : vector<1x32xf32>, vector<32x64xf32>, vector<1x64xf32> -> vector<1x64xf32>
    %c0_71 = arith.constant 0 : index
    %c0_72 = arith.constant 0 : index
    %96 = vector.load %arg18[%c0_71, %c0_72] : memref<1x64xf32, #tpu.memory_space<vmem>>, vector<1x64xf32>
    %97 = arith.addf %95, %96 : vector<1x64xf32>
    %98 = math.tanh %97 : vector<1x64xf32>
    %99 = vector.extract_strided_slice %98 {offsets = [0, 0], sizes = [1, 32], strides = [1, 1]} : vector<1x64xf32> to vector<1x32xf32>
    %100 = vector.extract_strided_slice %98 {offsets = [0, 32], sizes = [1, 32], strides = [1, 1]} : vector<1x64xf32> to vector<1x32xf32>
    %c0_73 = arith.constant 0 : index
    %c0_74 = arith.constant 0 : index
    %101 = vector.load %arg17[%c0_73, %c0_74] : memref<32x64xf32, #tpu.memory_space<vmem>>, vector<32x64xf32>
    %cst_75 = arith.constant dense<0.000000e+00> : vector<1x64xf32>
    %102 = tpu.matmul %100, %101, %cst_75 {dimension_numbers = #tpu.dot_dimension_numbers<[1], [0], [0], [1], [0, 0, 1, 1], [], []>, precision = #tpu.contract_precision<fp32>} : vector<1x32xf32>, vector<32x64xf32>, vector<1x64xf32> -> vector<1x64xf32>
    %c0_76 = arith.constant 0 : index
    %c0_77 = arith.constant 0 : index
    %103 = vector.load %arg18[%c0_76, %c0_77] : memref<1x64xf32, #tpu.memory_space<vmem>>, vector<1x64xf32>
    %104 = arith.addf %102, %103 : vector<1x64xf32>
    %105 = math.tanh %104 : vector<1x64xf32>
    %106 = vector.extract_strided_slice %105 {offsets = [0, 0], sizes = [1, 32], strides = [1, 1]} : vector<1x64xf32> to vector<1x32xf32>
    %107 = vector.extract_strided_slice %105 {offsets = [0, 32], sizes = [1, 32], strides = [1, 1]} : vector<1x64xf32> to vector<1x32xf32>
    %c0_78 = arith.constant 0 : index
    %c0_79 = arith.constant 0 : index
    %108 = vector.load %arg17[%c0_78, %c0_79] : memref<32x64xf32, #tpu.memory_space<vmem>>, vector<32x64xf32>
    %cst_80 = arith.constant dense<0.000000e+00> : vector<1x64xf32>
    %109 = tpu.matmul %107, %108, %cst_80 {dimension_numbers = #tpu.dot_dimension_numbers<[1], [0], [0], [1], [0, 0, 1, 1], [], []>, precision = #tpu.contract_precision<fp32>} : vector<1x32xf32>, vector<32x64xf32>, vector<1x64xf32> -> vector<1x64xf32>
    %c0_81 = arith.constant 0 : index
    %c0_82 = arith.constant 0 : index
    %110 = vector.load %arg18[%c0_81, %c0_82] : memref<1x64xf32, #tpu.memory_space<vmem>>, vector<1x64xf32>
    %111 = arith.addf %109, %110 : vector<1x64xf32>
    %112 = math.tanh %111 : vector<1x64xf32>
    %113 = vector.extract_strided_slice %112 {offsets = [0, 0], sizes = [1, 32], strides = [1, 1]} : vector<1x64xf32> to vector<1x32xf32>
    %114 = vector.extract_strided_slice %112 {offsets = [0, 32], sizes = [1, 32], strides = [1, 1]} : vector<1x64xf32> to vector<1x32xf32>
    %c0_83 = arith.constant 0 : index
    %c0_84 = arith.constant 0 : index
    %115 = vector.load %arg17[%c0_83, %c0_84] : memref<32x64xf32, #tpu.memory_space<vmem>>, vector<32x64xf32>
    %cst_85 = arith.constant dense<0.000000e+00> : vector<1x64xf32>
    %116 = tpu.matmul %114, %115, %cst_85 {dimension_numbers = #tpu.dot_dimension_numbers<[1], [0], [0], [1], [0, 0, 1, 1], [], []>, precision = #tpu.contract_precision<fp32>} : vector<1x32xf32>, vector<32x64xf32>, vector<1x64xf32> -> vector<1x64xf32>
    %c0_86 = arith.constant 0 : index
    %c0_87 = arith.constant 0 : index
    %117 = vector.load %arg18[%c0_86, %c0_87] : memref<1x64xf32, #tpu.memory_space<vmem>>, vector<1x64xf32>
    %118 = arith.addf %116, %117 : vector<1x64xf32>
    %119 = math.tanh %118 : vector<1x64xf32>
    %120 = vector.extract_strided_slice %119 {offsets = [0, 0], sizes = [1, 32], strides = [1, 1]} : vector<1x64xf32> to vector<1x32xf32>
    %121 = vector.extract_strided_slice %119 {offsets = [0, 32], sizes = [1, 32], strides = [1, 1]} : vector<1x64xf32> to vector<1x32xf32>
    %c0_88 = arith.constant 0 : index
    %c0_89 = arith.constant 0 : index
    %122 = vector.load %arg17[%c0_88, %c0_89] : memref<32x64xf32, #tpu.memory_space<vmem>>, vector<32x64xf32>
    %cst_90 = arith.constant dense<0.000000e+00> : vector<1x64xf32>
    %123 = tpu.matmul %121, %122, %cst_90 {dimension_numbers = #tpu.dot_dimension_numbers<[1], [0], [0], [1], [0, 0, 1, 1], [], []>, precision = #tpu.contract_precision<fp32>} : vector<1x32xf32>, vector<32x64xf32>, vector<1x64xf32> -> vector<1x64xf32>
    %c0_91 = arith.constant 0 : index
    %c0_92 = arith.constant 0 : index
    %124 = vector.load %arg18[%c0_91, %c0_92] : memref<1x64xf32, #tpu.memory_space<vmem>>, vector<1x64xf32>
    %125 = arith.addf %123, %124 : vector<1x64xf32>
    %126 = math.tanh %125 : vector<1x64xf32>
    %127 = vector.extract_strided_slice %126 {offsets = [0, 0], sizes = [1, 32], strides = [1, 1]} : vector<1x64xf32> to vector<1x32xf32>
    %128 = vector.extract_strided_slice %126 {offsets = [0, 32], sizes = [1, 32], strides = [1, 1]} : vector<1x64xf32> to vector<1x32xf32>
    %c0_93 = arith.constant 0 : index
    %c0_94 = arith.constant 0 : index
    %129 = vector.load %arg17[%c0_93, %c0_94] : memref<32x64xf32, #tpu.memory_space<vmem>>, vector<32x64xf32>
    %cst_95 = arith.constant dense<0.000000e+00> : vector<1x64xf32>
    %130 = tpu.matmul %128, %129, %cst_95 {dimension_numbers = #tpu.dot_dimension_numbers<[1], [0], [0], [1], [0, 0, 1, 1], [], []>, precision = #tpu.contract_precision<fp32>} : vector<1x32xf32>, vector<32x64xf32>, vector<1x64xf32> -> vector<1x64xf32>
    %c0_96 = arith.constant 0 : index
    %c0_97 = arith.constant 0 : index
    %131 = vector.load %arg18[%c0_96, %c0_97] : memref<1x64xf32, #tpu.memory_space<vmem>>, vector<1x64xf32>
    %132 = arith.addf %130, %131 : vector<1x64xf32>
    %133 = math.tanh %132 : vector<1x64xf32>
    %134 = vector.extract_strided_slice %133 {offsets = [0, 0], sizes = [1, 32], strides = [1, 1]} : vector<1x64xf32> to vector<1x32xf32>
    %135 = vector.extract_strided_slice %133 {offsets = [0, 32], sizes = [1, 32], strides = [1, 1]} : vector<1x64xf32> to vector<1x32xf32>
    %c0_98 = arith.constant 0 : index
    %c0_99 = arith.constant 0 : index
    %136 = vector.load %arg17[%c0_98, %c0_99] : memref<32x64xf32, #tpu.memory_space<vmem>>, vector<32x64xf32>
    %cst_100 = arith.constant dense<0.000000e+00> : vector<1x64xf32>
    %137 = tpu.matmul %135, %136, %cst_100 {dimension_numbers = #tpu.dot_dimension_numbers<[1], [0], [0], [1], [0, 0, 1, 1], [], []>, precision = #tpu.contract_precision<fp32>} : vector<1x32xf32>, vector<32x64xf32>, vector<1x64xf32> -> vector<1x64xf32>
    %c0_101 = arith.constant 0 : index
    %c0_102 = arith.constant 0 : index
    %138 = vector.load %arg18[%c0_101, %c0_102] : memref<1x64xf32, #tpu.memory_space<vmem>>, vector<1x64xf32>
    %139 = arith.addf %137, %138 : vector<1x64xf32>
    %140 = math.tanh %139 : vector<1x64xf32>
    %141 = vector.extract_strided_slice %140 {offsets = [0, 0], sizes = [1, 32], strides = [1, 1]} : vector<1x64xf32> to vector<1x32xf32>
    %142 = vector.extract_strided_slice %140 {offsets = [0, 32], sizes = [1, 32], strides = [1, 1]} : vector<1x64xf32> to vector<1x32xf32>
    %143 = tpu.iota {dimensions = array<i32: 0>} : vector<8x32xi32>
    %cst_103 = arith.constant 0.000000e+00 : f32
    %144 = vector.broadcast %cst_103 : f32 to vector<8x32xf32>
    %c0_i32 = arith.constant 0 : i32
    %145 = vector.broadcast %c0_i32 : i32 to vector<8x32xi32>
    %146 = arith.cmpi eq, %143, %145 : vector<8x32xi32>
    %147 = vector.shape_cast %142 : vector<1x32xf32> to vector<1x32xf32>
    %148 = vector.broadcast %147 : vector<1x32xf32> to vector<8x32xf32>
    %149 = arith.select %146, %148, %144 : vector<8x32xi1>, vector<8x32xf32>
    %c1_i32 = arith.constant 1 : i32
    %150 = vector.broadcast %c1_i32 : i32 to vector<8x32xi32>
    %151 = arith.cmpi eq, %143, %150 : vector<8x32xi32>
    %152 = vector.shape_cast %141 : vector<1x32xf32> to vector<1x32xf32>
    %153 = vector.broadcast %152 : vector<1x32xf32> to vector<8x32xf32>
    %154 = arith.select %151, %153, %149 : vector<8x32xi1>, vector<8x32xf32>
    %c2_i32 = arith.constant 2 : i32
    %155 = vector.broadcast %c2_i32 : i32 to vector<8x32xi32>
    %156 = arith.cmpi eq, %143, %155 : vector<8x32xi32>
    %157 = vector.shape_cast %134 : vector<1x32xf32> to vector<1x32xf32>
    %158 = vector.broadcast %157 : vector<1x32xf32> to vector<8x32xf32>
    %159 = arith.select %156, %158, %154 : vector<8x32xi1>, vector<8x32xf32>
    %c3_i32 = arith.constant 3 : i32
    %160 = vector.broadcast %c3_i32 : i32 to vector<8x32xi32>
    %161 = arith.cmpi eq, %143, %160 : vector<8x32xi32>
    %162 = vector.shape_cast %127 : vector<1x32xf32> to vector<1x32xf32>
    %163 = vector.broadcast %162 : vector<1x32xf32> to vector<8x32xf32>
    %164 = arith.select %161, %163, %159 : vector<8x32xi1>, vector<8x32xf32>
    %c4_i32 = arith.constant 4 : i32
    %165 = vector.broadcast %c4_i32 : i32 to vector<8x32xi32>
    %166 = arith.cmpi eq, %143, %165 : vector<8x32xi32>
    %167 = vector.shape_cast %120 : vector<1x32xf32> to vector<1x32xf32>
    %168 = vector.broadcast %167 : vector<1x32xf32> to vector<8x32xf32>
    %169 = arith.select %166, %168, %164 : vector<8x32xi1>, vector<8x32xf32>
    %c5_i32 = arith.constant 5 : i32
    %170 = vector.broadcast %c5_i32 : i32 to vector<8x32xi32>
    %171 = arith.cmpi eq, %143, %170 : vector<8x32xi32>
    %172 = vector.shape_cast %113 : vector<1x32xf32> to vector<1x32xf32>
    %173 = vector.broadcast %172 : vector<1x32xf32> to vector<8x32xf32>
    %174 = arith.select %171, %173, %169 : vector<8x32xi1>, vector<8x32xf32>
    %c6_i32 = arith.constant 6 : i32
    %175 = vector.broadcast %c6_i32 : i32 to vector<8x32xi32>
    %176 = arith.cmpi eq, %143, %175 : vector<8x32xi32>
    %177 = vector.shape_cast %106 : vector<1x32xf32> to vector<1x32xf32>
    %178 = vector.broadcast %177 : vector<1x32xf32> to vector<8x32xf32>
    %179 = arith.select %176, %178, %174 : vector<8x32xi1>, vector<8x32xf32>
    %c7_i32 = arith.constant 7 : i32
    %180 = vector.broadcast %c7_i32 : i32 to vector<8x32xi32>
    %181 = arith.cmpi eq, %143, %180 : vector<8x32xi32>
    %182 = vector.shape_cast %99 : vector<1x32xf32> to vector<1x32xf32>
    %183 = vector.broadcast %182 : vector<1x32xf32> to vector<8x32xf32>
    %184 = arith.select %181, %183, %179 : vector<8x32xi1>, vector<8x32xf32>
    %c0_104 = arith.constant 0 : index
    %c0_105 = arith.constant 0 : index
    %185 = vector.load %arg19[%c0_104, %c0_105] : memref<8x32xf32, #tpu.memory_space<vmem>>, vector<8x32xf32>
    tpu.vector_store %arg19[%c0_104, %c0_105], %184 {strides = array<i32>} : memref<8x32xf32, #tpu.memory_space<vmem>>, vector<8x32xf32>,
    return
  }
}

</mosaic_0001>

<bundles_post_ra>
// kernel: tpu_custom_call.1
= control target key start
LH: loop header
LB: loop body
LE: loop exit
PB: predicated region body
PF: predicated region fallthrough
CT: control target
= control target key end

     0   :  { %s15043_s0 = inlined_call_operand.hbm [shape: f32[8,32], index: 0, kind: input, shape index: {}]   ;;  %s15044_s1 = inlined_call_operand.vmem [shape: f32[1,32], index: 1, kind: input, shape index: {}]   ;;  %s15045_s2 = inlined_call_operand.hbm [shape: f32[32,32], index: 2, kind: input, shape index: {}]   ;;  %s15046_s3 = inlined_call_operand.hbm [shape: f32[32,32], index: 3, kind: input, shape index: {}]   ;;  %s15047_s4 = inlined_call_operand.vmem [shape: f32[1,32], index: 4, kind: input, shape index: {}]   ;;  %s15048_s5 = inlined_call_operand.hbm [shape: f32[32,32], index: 5, kind: input, shape index: {}]   ;;  %s15049_s6 = inlined_call_operand.vmem [shape: f32[1,32], index: 6, kind: input, shape index: {}]   ;;  %s15050_s7 = inlined_call_operand.hbm [shape: f32[32,32], index: 7, kind: input, shape index: {}]   ;;  %s15051_s8 = inlined_call_operand.vmem [shape: f32[1,32], index: 8, kind: input, shape index: {}]   ;;  %s15052_s9 = inlined_call_operand.hbm [shape: f32[32,64], index: 9, kind: input, shape index: {}]   ;;  %s15053_s10 = inlined_call_operand.vmem [shape: f32[1,64], index: 10, kind: input, shape index: {}]   ;;  %s15054_s11 = inlined_call_operand.hbm [shape: f32[32,32], index: 11, kind: input, shape index: {}]   ;;  %s15055_s12 = inlined_call_operand.vmem [shape: f32[1,32], index: 12, kind: input, shape index: {}]   ;;  %s15056_s13 = inlined_call_operand.hbm [shape: f32[32,32], index: 13, kind: input, shape index: {}]   ;;  %s15057_s14 = inlined_call_operand.vmem [shape: f32[1,32], index: 14, kind: input, shape index: {}]   ;;  %s15058_s15 = inlined_call_operand.hbm [shape: f32[32,32], index: 15, kind: input, shape index: {}]   ;;  %s15059_s16 = inlined_call_operand.vmem [shape: f32[1,32], index: 16, kind: input, shape index: {}]   ;;  %s15060_s17 = inlined_call_operand.hbm [shape: f32[32,64], index: 17, kind: input, shape index: {}]   ;;  %s15061_s18 = inlined_call_operand.vmem [shape: f32[1,64], index: 18, kind: input, shape index: {}]   ;;  %s15062_s19 = inlined_call_operand.hbm [shape: f32[8,32], index: 19, kind: output, shape index: {0}]   ;;  %s15063_s20 = inlined_call_operand.hbm [shape: f32[1,32], index: 20, kind: output, shape index: {1}]   ;;  %s15064_s21 = inlined_call_operand.hbm [shape: f32[1,32], index: 21, kind: output, shape index: {2}]   ;;  %s15065_s22 = inlined_call_operand.hbm [shape: f32[1,32], index: 22, kind: output, shape index: {3}]  }
   0x1   :  { %15066 = sst [smem:[#allocation34_spill]] %s15043_s0 }
   0x2   :  { %15067 = sst [smem:[#allocation35_spill]] %s15044_s1 }
   0x3   :  { %15068 = sst [smem:[#allocation36_spill]] %s15045_s2 }
   0x4   :  { %15069 = sst [smem:[#allocation37_spill]] %s15046_s3 }
   0x5   :  { %15070 = sst [smem:[#allocation38_spill]] %s15047_s4 }
   0x6   :  { %15071 = sst [smem:[#allocation39_spill]] %s15048_s5 }
   0x7   :  { %15072 = sst [smem:[#allocation40_spill]] %s15049_s6 }
   0x8   :  { %28 = vsyncpa [#allocation3], 0 }
   0x9   :  { %29 = vsyncpa [#allocation6], 0 }
   0xa   :  { %30 = vsyncpa [#allocation9], 0 }
   0xb   :  { %31 = vsyncpa [#allocation12], 0 }
   0xc   :  { %32 = vsyncpa [#allocation15], 0 }
   0xd   :  { %33 = vsyncpa [#allocation18], 0 }
   0xe   :  { %34 = vsyncpa [#allocation4], 0 }
   0xf   :  { %35 = vsyncpa [#allocation21], 0 }
  0x10   :  { %36 = vsyncpa [#allocation24], 0  ;;  %s13088_s3 = smov [#allocation5]  }
  0x11   :  { %s54_s28 = sshll.u32 %s13088_s3, 4  ;;  %s55_s28 = int_to_ptr.vmem [resolvable:$true] %s54_s28 }
  0x12   :  { %s12798_s29 = scalar_lea.vmem %s55_s28, 512  ;;  %p12803_p1 = scmp.lt.s32.totalorder %s55_s28, %s55_s28 }
  0x13   :  { %p12799_p0 = scmp.ne.s32.totalorder %s55_s28, %s12798_s29  ;;  %p12804_p2 = scmp.lt.s32.totalorder %s12798_s29, %s12798_s29 }
  0x15   :  { %p12805_p3 = por %p12804_p2, %p12803_p1 }
  0x17   :  { %p12806_p4 = pnand %p12805_p3, %p12799_p0 }
  0x19   :  { %12809 = shalt.err (!%p12806_p4)
}
  0x1a   :  { %s13089_s30 = smov 128   ;;  %s13090_s4 = smov 8  }
  0x1b   :  { %s15073_s1 = sld [smem:[#allocation36_spill]]  ;;  %s13091_s5 = smov [#allocation8]  }
  0x1c   :  { %s80_s24 = sshll.u32 %s13091_s5, 4  ;;  %s13092_s6 = smov [#allocation11]   ;;  %s81_s24 = int_to_ptr.vmem [resolvable:$true] %s80_s24 }
  0x1d   :  { %s108_s25 = sshll.u32 %s13092_s6, 4  ;;  %s12818_s26 = scalar_lea.vmem %s81_s24, 512  ;;  %s109_s25 = int_to_ptr.vmem [resolvable:$true] %s108_s25 }
  0x1e   :  { %p12819_p5 = scmp.ne.s32.totalorder %s81_s24, %s12818_s26  ;;  %p12823_p6 = scmp.lt.s32.totalorder %s81_s24, %s81_s24 }
  0x1f   :  { %p12824_p7 = scmp.lt.s32.totalorder %s12818_s26, %s12818_s26 }
  0x21   :  { %60 = dma.hbm_to_vmem [thread:$0]  %s15073_s1, 512, %s55_s28, [#allocation6], %s13089_s30, %s13089_s30, %s13090_s4  }
  0x22   :  { %p12825_p8 = por %p12824_p7, %p12823_p6 }
  0x24   :  { %p12826_p9 = pnand %p12825_p8, %p12819_p5 }
  0x26   :  { %12829 = shalt.err (!%p12826_p9)
}
  0x27   :  { %s15074_s3 = sld [smem:[#allocation39_spill]]  ;;  %s12838_s28 = scalar_lea.vmem %s109_s25, 512 }
  0x28   :  { %p12839_p10 = scmp.ne.s32.totalorder %s109_s25, %s12838_s28  ;;  %p12843_p11 = scmp.lt.s32.totalorder %s109_s25, %s109_s25 }
  0x29   :  { %p12844_p12 = scmp.lt.s32.totalorder %s12838_s28, %s12838_s28 }
  0x2b   :  { %p12845_p13 = por %p12844_p12, %p12843_p11 }
  0x2d   :  { %86 = dma.hbm_to_vmem [thread:$0]  %s15074_s3, 512, %s81_s24, [#allocation9], %s13089_s30, %s13089_s30, %s13090_s4  }
  0x2e   :  { %p12846_p0 = pnand %p12845_p13, %p12839_p10 }
  0x30   :  { %12849 = shalt.err (!%p12846_p0)
}
  0x31   :  { %114 = dma.hbm_to_vmem [thread:$0]  %s15052_s9, 512, %s109_s25, [#allocation12], %s13089_s30, %s13089_s30, %s13090_s4  }
  0x32   :  { %s13093_s23 = smov [#allocation14]   ;;  %s13094_s5 = smov [#allocation2]  }
  0x33   :  { %s136_s1 = sshll.u32 %s13093_s23, 4  ;;  %s43_s24 = sshll.u32 %s13094_s5, 4  ;;  %s137_s1 = int_to_ptr.vmem [resolvable:$true] %s136_s1  ;;  %s44_s24 = int_to_ptr.vmem [resolvable:$true] %s43_s24 }
  0x34   :  { %s12858_s6 = scalar_lea.vmem %s137_s1, 512  ;;  %p12863_p2 = scmp.lt.s32.totalorder %s137_s1, %s137_s1 }
  0x35   :  { %p12859_p1 = scmp.ne.s32.totalorder %s137_s1, %s12858_s6  ;;  %p12864_p3 = scmp.lt.s32.totalorder %s12858_s6, %s12858_s6 }
  0x37   :  { %p12865_p4 = por %p12864_p3, %p12863_p2 }
  0x39   :  { %p12866_p5 = pnand %p12865_p4, %p12859_p1 }
  0x3b   :  { %12869 = shalt.err (!%p12866_p5)
}
  0x3c   :  { %142 = dma.hbm_to_vmem [thread:$0]  %s15056_s13, 512, %s137_s1, [#allocation15], %s13089_s30, %s13089_s30, %s13090_s4  }
  0x3d   :  { %s12878_s9 = scalar_lea.vmem %s44_s24, 128  ;;  %p12883_p7 = scmp.lt.s32.totalorder %s44_s24, %s44_s24 }
  0x3e   :  { %p12879_p6 = scmp.ne.s32.totalorder %s44_s24, %s12878_s9  ;;  %p12884_p8 = scmp.lt.s32.totalorder %s12878_s9, %s12878_s9 }
  0x40   :  { %p12885_p9 = por %p12884_p8, %p12883_p7 }
  0x42   :  { %p12886_p10 = pnand %p12885_p9, %p12879_p6 }
  0x44   :  { %12889 = shalt.err (!%p12886_p10)
}
  0x45   :  { %s15075_s3 = sld [smem:[#allocation34_spill]]  ;;  %s13095_s28 = smov [#allocation7]  }
  0x46   :  { %s66_s29 = sshll.u32 %s13095_s28, 4  ;;  %s13096_s0 = smov [#allocation10]   ;;  %s67_s29 = int_to_ptr.vmem [resolvable:$true] %s66_s29 }
  0x47   :  { %s94_s23 = sshll.u32 %s13096_s0, 4  ;;  %s12898_s5 = scalar_lea.vmem %s67_s29, 512  ;;  %s95_s23 = int_to_ptr.vmem [resolvable:$true] %s94_s23 }
  0x48   :  { %p12899_p11 = scmp.ne.s32.totalorder %s67_s29, %s12898_s5  ;;  %p12903_p12 = scmp.lt.s32.totalorder %s67_s29, %s67_s29 }
  0x49   :  { %p12904_p13 = scmp.lt.s32.totalorder %s12898_s5, %s12898_s5 }
  0x4b   :  { %46 = dma.hbm_to_vmem [thread:$0]  %s15075_s3, 128, %s44_s24, [#allocation3]  }
  0x4c   :  { %p12905_p0 = por %p12904_p13, %p12903_p12 }
  0x4e   :  { %p12906_p1 = pnand %p12905_p0, %p12899_p11 }
  0x50   :  { %12909 = shalt.err (!%p12906_p1)
}
  0x51   :  { %s15076_s6 = sld [smem:[#allocation37_spill]]  ;;  %s12918_s24 = scalar_lea.vmem %s95_s23, 512 }
  0x52   :  { %p12919_p2 = scmp.ne.s32.totalorder %s95_s23, %s12918_s24  ;;  %p12923_p3 = scmp.lt.s32.totalorder %s95_s23, %s95_s23 }
  0x53   :  { %p12924_p4 = scmp.lt.s32.totalorder %s12918_s24, %s12918_s24 }
  0x55   :  { %p12925_p5 = por %p12924_p4, %p12923_p3 }
  0x57   :  { %72 = dma.hbm_to_vmem [thread:$0]  %s15076_s6, 512, %s67_s29, [#allocation6], %s13089_s30, %s13089_s30, %s13090_s4  }
  0x58   :  { %p12926_p6 = pnand %p12925_p5, %p12919_p2 }
  0x5a   :  { %12929 = shalt.err (!%p12926_p6)
}
  0x5b   :  { %100 = dma.hbm_to_vmem [thread:$0]  %s15050_s7, 512, %s95_s23, [#allocation9], %s13089_s30, %s13089_s30, %s13090_s4  }
  0x5c   :  { %s13097_s9 = smov [#allocation13]   ;;  %s13098_s27 = smov [#allocation16]  }
  0x5d   :  { %s122_s25 = sshll.u32 %s13097_s9, 4  ;;  %s150_s3 = sshll.u32 %s13098_s27, 4  ;;  %s123_s25 = int_to_ptr.vmem [resolvable:$true] %s122_s25  ;;  %s151_s3 = int_to_ptr.vmem [resolvable:$true] %s150_s3 }
  0x5e   :  { %s12938_s28 = scalar_lea.vmem %s123_s25, 512  ;;  %p12943_p8 = scmp.lt.s32.totalorder %s123_s25, %s123_s25 }
  0x5f   :  { %p12939_p7 = scmp.ne.s32.totalorder %s123_s25, %s12938_s28  ;;  %p12944_p9 = scmp.lt.s32.totalorder %s12938_s28, %s12938_s28 }
  0x61   :  { %p12945_p10 = por %p12944_p9, %p12943_p8 }
  0x63   :  { %p12946_p11 = pnand %p12945_p10, %p12939_p7 }
  0x65   :  { %12949 = shalt.err (!%p12946_p11)
}
  0x66   :  { %128 = dma.hbm_to_vmem [thread:$0]  %s15054_s11, 512, %s123_s25, [#allocation12], %s13089_s30, %s13089_s30, %s13090_s4  }
  0x67   :  { %s12958_s7 = scalar_lea.vmem %s151_s3, 512  ;;  %p12963_p13 = scmp.lt.s32.totalorder %s151_s3, %s151_s3 }
  0x68   :  { %p12959_p12 = scmp.ne.s32.totalorder %s151_s3, %s12958_s7  ;;  %p12964_p0 = scmp.lt.s32.totalorder %s12958_s7, %s12958_s7 }
  0x6a   :  { %p12965_p1 = por %p12964_p0, %p12963_p13 }
  0x6c   :  { %p12966_p2 = pnand %p12965_p1, %p12959_p12 }
  0x6e   :  { %12969 = shalt.err (!%p12966_p2)
}
  0x6f   :  { %156 = dma.hbm_to_vmem [thread:$0]  %s15058_s15, 512, %s151_s3, [#allocation15], %s13089_s30, %s13089_s30, %s13090_s4  }
  0x70   :  { %s13099_s13 = smov [#allocation17]  }
  0x71   :  { %s164_s1 = sshll.u32 %s13099_s13, 4  ;;  %s165_s1 = int_to_ptr.vmem [resolvable:$true] %s164_s1 }
  0x72   :  { %s12978_s6 = scalar_lea.vmem %s165_s1, 512  ;;  %p12983_p4 = scmp.lt.s32.totalorder %s165_s1, %s165_s1 }
  0x73   :  { %p12979_p3 = scmp.ne.s32.totalorder %s165_s1, %s12978_s6  ;;  %p12984_p5 = scmp.lt.s32.totalorder %s12978_s6, %s12978_s6 }
  0x75   :  { %p12985_p6 = por %p12984_p5, %p12983_p4 }
  0x77   :  { %p12986_p7 = pnand %p12985_p6, %p12979_p3 }
  0x79   :  { %12989 = shalt.err (!%p12986_p7)
}
  0x7a   :  { %170 = dma.hbm_to_vmem [thread:$0]  %s15060_s17, 512, %s165_s1, [#allocation18], %s13089_s30, %s13089_s30, %s13090_s4  }
  0x7b   :  { %13070 = dma.done.wait [#allocation3], 128  }
  0x7c   :  { %13071 = vsyncadd [#allocation3], 4294967168 }
  0x7d   :  { %13072 = dma.done.wait [#allocation6], 1024  }
  0x7e   :  { %13073 = vsyncadd [#allocation6], 4294966272 }
  0x7f   :  { %13074 = dma.done.wait [#allocation9], 1024  }
  0x80   :  { %13075 = vsyncadd [#allocation9], 4294966272 }
  0x81   :  { %13076 = dma.done.wait [#allocation12], 1024  }
  0x82   :  { %13077 = vsyncadd [#allocation12], 4294966272 }
  0x83   :  { %13078 = dma.done.wait [#allocation15], 1024  }
  0x84   :  { %13079 = vsyncadd [#allocation15], 4294966272 }
  0x85   :  { %13080 = dma.done.wait [#allocation18], 512  }
  0x86   :  { %13081 = vsyncadd [#allocation18], 4294966784  ;;  %v13100_v0 = vmov 0.0   ;;  %vm13101_vm0 = vmmov 0   ;;  %vm215_vm1 = vcmask 261120   ;;  %v207_v1 = vld [vmem:[#allocation7 + $0x18] sm:$0xff] }
  0x87   :  { %11337 = vmatprep.subr.mxu0 %v13100_v0  ;;  %11348 = vmatprep.subr.mxu1 %v13100_v0  ;;  %v206_v2 = vld [vmem:[#allocation7 + $0x10] sm:$0xff]  ;;  %v205_v3 = vld [vmem:[#allocation7 + $0x8] sm:$0xff]  ;;  %v13286_v4 = vand.u32 4294901760, %v207_v1  ;;  %v204_v7 = vld [vmem:[#allocation7] sm:$0xff]  ;;  %s15077_s30 = sld [smem:[#allocation38_spill]]  ;;  %vm5627_vm2 = vcmask 253952  }
  0x88   :  { %11345 = vmatprep.mubr.msk.f32.mxu0 %vm13101_vm0, %v13100_v0  ;;  %11356 = vmatprep.mubr.msk.f32.mxu1 %vm13101_vm0, %v13100_v0  ;;  %v13288_v5 = vand.u32 4294901760, %v206_v2  ;;  %v13290_v6 = vand.u32 4294901760, %v205_v3  ;;  %v203_v8 = vld [vmem:[#allocation2 + $0x1] sm:$0x7f]  ;;  %v13292_v9 = vand.u32 4294901760, %v204_v7  ;;  %v707_v35 = vld [vmem:[#allocation5 + $0x10] sm:$0xff] }
  0x89   :  { %v217_v10 = vsel %vm215_vm1, %v203_v8, 0  ;;  %11338 = vmatpush3.msra.mxu0 %v13286_v4  ;;  %v324_v11 = vsub.f32 %v207_v1, %v13286_v4  ;;  %v704_v32 = vld [vmem:[#allocation2] sm:$0x1]  ;;  %v706_v38 = vld [vmem:[#allocation5 + $0x8] sm:$0xff]  ;;  %v13348_v39 = vand.u32 4294901760, %v707_v35  ;;  %v705_v40 = vld [vmem:[#allocation5] sm:$0xff] }
  0x8a   :  { %v13297_v12 = vand.u32 4294901760, %v217_v10  ;;  %v331_v13 = vsub.f32 %v206_v2, %v13288_v5  ;;  %v13301_v14 = vsub.f32 %v205_v3, %v13290_v6  ;;  %11339 = vmatprep.subr.mxu0 %v13100_v0  ;;  %v13305_v15 = vsub.f32 %v204_v7, %v13292_v9  ;;  %v708_v33 = vld [vmem:[#allocation5 + $0x18] sm:$0xff]  ;;  %s15078_s2 = sld [smem:[#allocation40_spill]]  ;;  %s13104_s11 = smov [#allocation20]  }
  0x8b   :  { %11340 = vmatpush3.msra.mxu0 %v13288_v5  ;;  %v325_v16 = vand.u32 4294901760, %v324_v11  ;;  %v710_v34 = vsel %vm215_vm1, %v704_v32, 0  ;;  %v13341_v36 = vand.u32 4294901760, %v708_v33  ;;  %v13353_v41 = vand.u32 4294901760, %v706_v38  ;;  %s15079_s29 = sld [smem:[#allocation35_spill]]  ;;  %s10661_s24 = sshll.u32 %s13104_s11, 4  ;;  %s10662_s24 = int_to_ptr.vmem [resolvable:$true] %s10661_s24 }
  0x8c   :  { %v13309_v17 = vsub.f32 %v217_v10, %v13297_v12  ;;  %v332_v18 = vand.u32 4294901760, %v331_v13  ;;  %v339_v19 = vand.u32 4294901760, %v13301_v14  ;;  %11341 = vmatprep.subr.mxu0 %v13100_v0  ;;  %v346_v20 = vand.u32 4294901760, %v13305_v15  ;;  %s12990_s15 = scalar_lea.vmem %s10662_s24, 16  ;;  %s12994_s17 = scalar_lea.vmem %s10662_s24, 32 }
  0x8d   :  { %11342 = vmatpush3.msra.mxu0 %v13290_v6  ;;  %v326_v21 = vsub.f32 %v324_v11, %v325_v16  ;;  %v13343_v37 = vand.u32 4294901760, %v710_v34  ;;  %v13356_v42 = vsub.f32 %v708_v33, %v13341_v36  ;;  %v13366_v44 = vand.u32 4294901760, %v705_v40  ;;  %p12991_p8 = scmp.ne.s32.totalorder %s10662_s24, %s12990_s15  ;;  %p12995_p9 = scmp.lt.s32.totalorder %s10662_s24, %s10662_s24 }
  0x8e   :  { %v290_v22 = vand.u32 4294901760, %v13309_v17  ;;  %v333_v23 = vsub.f32 %v331_v13, %v332_v18  ;;  %v340_v24 = vsub.f32 %v13301_v14, %v339_v19  ;;  %11343 = vmatprep.subr.mxu0 %v13100_v0  ;;  %v347_v28 = vsub.f32 %v13305_v15, %v346_v20  ;;  %p12996_p10 = scmp.lt.s32.totalorder %s12994_s17, %s12990_s15 }
  0x8f   :  { %11344 = vmatpush3.msra.mxu0 %v13292_v9  ;;  %v327_v25 = vand.u32 4294901760, %v326_v21  ;;  %v13359_v43 = vsub.f32 %v710_v34, %v13343_v37  ;;  %v13369_v45 = vsub.f32 %v707_v35, %v13348_v39  ;;  %v13376_v46 = vand.u32 4294901760, %v13356_v42 }
  0x90   :  { %v291_v26 = vsub.f32 %v13309_v17, %v290_v22  ;;  %v334_v27 = vand.u32 4294901760, %v333_v23  ;;  %11359 = vmatprep.subr.mxu0 %v13100_v0  ;;  %v341_v30 = vand.u32 4294901760, %v340_v24  ;;  %v348_v31 = vand.u32 4294901760, %v347_v28  ;;  %p12997_p11 = por %p12996_p10, %p12995_p9 }
  0x91   :  { %11349 = vmatpush3.msra.mxu1 %v327_v25  ;;  %v783_v47 = vand.u32 4294901760, %v13359_v43  ;;  %v13380_v48 = vsub.f32 %v706_v38, %v13353_v41  ;;  %v13389_v49 = vand.u32 4294901760, %v13369_v45  ;;  %v13392_v50 = vsub.f32 %v705_v40, %v13366_v44 }
  0x92   :  { %v292_v29 = vand.u32 4294901760, %v291_v26  ;;  %11350 = vmatprep.subr.mxu1 %v13100_v0  ;;  %v819_v51 = vsub.f32 %v13356_v42, %v13376_v46  ;;  %p12998_p12 = pnand %p12997_p11, %p12991_p8 }
  0x93   :  { %11351 = vmatpush3.msra.mxu1 %v334_v27  ;;  %v784_v52 = vsub.f32 %v13359_v43, %v783_v47  ;;  %v13404_v53 = vand.u32 4294901760, %v13380_v48  ;;  %v826_v54 = vsub.f32 %v13369_v45, %v13389_v49  ;;  %v13413_v55 = vand.u32 4294901760, %v13392_v50 }
  0x94   :  { %11346 = vmatmul.mubr.f32.vlgmr.msra.gmra.mxu0 %v292_v29  ;;  %11352 = vmatprep.subr.mxu1 %v13100_v0  ;;  %v13420_v56 = vand.u32 4294901760, %v819_v51 }
  0x95   :  { %11360 = vmatpush3.msra.mxu0 %v324_v11  ;;  %11353 = vmatpush3.msra.mxu1 %v341_v30  ;;  %v785_v57 = vand.u32 4294901760, %v784_v52  ;;  %v833_v58 = vsub.f32 %v13380_v48, %v13404_v53  ;;  %v13428_v59 = vand.u32 4294901760, %v826_v54  ;;  %v840_v60 = vsub.f32 %v13392_v50, %v13413_v55 }
  0x96   :  { %11361 = vmatprep.subr.mxu0 %v13100_v0  ;;  %11354 = vmatprep.subr.mxu1 %v13100_v0 }
  0x97   :  { %11362 = vmatpush3.msra.mxu0 %v331_v13  ;;  %11355 = vmatpush3.msra.mxu1 %v348_v31  ;;  %v13436_v61 = vand.u32 4294901760, %v833_v58  ;;  %v13442_v62 = vand.u32 4294901760, %v840_v60 }
  0x98   :  { %11363 = vmatprep.subr.mxu0 %v13100_v0  ;;  %11357 = vmatmul.mubr.f32.vlgmr.msra.gmra.mxu1 %v13297_v12 }
  0x99   :  { %11364 = vmatpush3.msra.mxu0 %v13301_v14  ;;  %11370 = vmatprep.subr.mxu1 %v13100_v0 }
  0x9a   :  { %11365 = vmatprep.subr.mxu0 %v13100_v0  ;;  %11371 = vmatpush3.msra.mxu1 %v13286_v4 }
  0x9b   :  { %11366 = vmatpush3.msra.mxu0 %v13305_v15  ;;  %11367 = vmatprep.mubr.msk.f32.mxu0 %vm13101_vm0, %v13100_v0 }
  0x9c   :  { %11372 = vmatprep.subr.mxu1 %v13100_v0  ;;  %11381 = vmatprep.subr.mxu0 %v13100_v0 }
  0x9d   :  { %11368 = vmatmul.mubr.f32.vlgmr.msra.gmra.mxu0 %v13309_v17  ;;  %11373 = vmatpush3.msra.mxu1 %v13288_v5 }
  0x9e   :  { %11382 = vmatpush3.msra.mxu0 %v325_v16  ;;  %11374 = vmatprep.subr.mxu1 %v13100_v0 }
  0x9f   :  { %11383 = vmatprep.subr.mxu0 %v13100_v0  ;;  %11375 = vmatpush3.msra.mxu1 %v13290_v6 }
  0xa0   :  { %11384 = vmatpush3.msra.mxu0 %v332_v18  ;;  %11376 = vmatprep.subr.mxu1 %v13100_v0 }
  0xa1   :  { %11385 = vmatprep.subr.mxu0 %v13100_v0  ;;  %11377 = vmatpush3.msra.mxu1 %v13292_v9 }
  0xa2   :  { %11378 = vmatprep.mubr.msk.f32.mxu1 %vm13101_vm0, %v13100_v0  ;;  %11386 = vmatpush3.msra.mxu0 %v339_v19 }
  0xa3   :  { %11379 = vmatmul.mubr.f32.vlgmr.msra.gmra.mxu1 %v290_v22  ;;  %11387 = vmatprep.subr.mxu0 %v13100_v0 }
  0xa4   :  { %11392 = vmatprep.subr.mxu1 %v13100_v0  ;;  %11388 = vmatpush3.msra.mxu0 %v346_v20 }
  0xa5   :  { %11389 = vmatprep.mubr.msk.f32.mxu0 %vm13101_vm0, %v13100_v0  ;;  %11393 = vmatpush3.msra.mxu1 %v13286_v4 }
  0xa6   :  { %11390 = vmatmul.mubr.f32.vlgmr.msra.gmra.mxu0 %v13297_v12  ;;  %11394 = vmatprep.subr.mxu1 %v13100_v0 }
  0xa7   :  { %11403 = vmatprep.subr.mxu0 %v13100_v0  ;;  %11395 = vmatpush3.msra.mxu1 %v13288_v5 }
  0xa8   :  { %11404 = vmatpush3.msra.mxu0 %v13341_v36  ;;  %11396 = vmatprep.subr.mxu1 %v13100_v0 }
  0xa9   :  { %11405 = vmatprep.subr.mxu0 %v13100_v0  ;;  %11397 = vmatpush3.msra.mxu1 %v13290_v6 }
  0xaa   :  { %11406 = vmatpush3.msra.mxu0 %v13348_v39  ;;  %11398 = vmatprep.subr.mxu1 %v13100_v0 }
  0xab   :  { %11407 = vmatprep.subr.mxu0 %v13100_v0  ;;  %11399 = vmatpush3.msra.mxu1 %v13292_v9  ;;  %v10706_v9 = vld [vmem:[%s15077_s30] ss:$0 sm:$0xff] }
  0xac   :  { %11400 = vmatprep.mubr.msk.f32.mxu1 %vm13101_vm0, %v13100_v0  ;;  %11408 = vmatpush3.msra.mxu0 %v13353_v41 }
  0xad   :  { %11401 = vmatmul.mubr.f32.vlgmr.msra.gmra.mxu1 %v13297_v12  ;;  %11409 = vmatprep.subr.mxu0 %v13100_v0 }
  0xae   :  { %11414 = vmatprep.subr.mxu1 %v13100_v0  ;;  %11410 = vmatpush3.msra.mxu0 %v13366_v44 }
  0xaf   :  { %11411 = vmatprep.mubr.msk.f32.mxu0 %vm13101_vm0, %v13100_v0  ;;  %11415 = vmatpush3.msra.mxu1 %v13420_v56 }
  0xb0   :  { %11412 = vmatmul.mubr.f32.vlgmr.msra.gmra.mxu0 %v785_v57  ;;  %11416 = vmatprep.subr.mxu1 %v13100_v0 }
  0xb1   :  { %11425 = vmatprep.subr.mxu0 %v13100_v0  ;;  %11417 = vmatpush3.msra.mxu1 %v13428_v59 }
  0xb2   :  { %11426 = vmatpush3.msra.mxu0 %v13356_v42  ;;  %11418 = vmatprep.subr.mxu1 %v13100_v0 }
  0xb3   :  { %11427 = vmatprep.subr.mxu0 %v13100_v0  ;;  %11419 = vmatpush3.msra.mxu1 %v13436_v61 }
  0xb4   :  { %11428 = vmatpush3.msra.mxu0 %v13369_v45  ;;  %11420 = vmatprep.subr.mxu1 %v13100_v0 }
  0xb5   :  { %11429 = vmatprep.subr.mxu0 %v13100_v0  ;;  %11421 = vmatpush3.msra.mxu1 %v13442_v62 }
  0xb6   :  { %11422 = vmatprep.mubr.msk.f32.mxu1 %vm13101_vm0, %v13100_v0  ;;  %11430 = vmatpush3.msra.mxu0 %v13380_v48 }
  0xb7   :  { %11423 = vmatmul.mubr.f32.vlgmr.msra.gmra.mxu1 %v13343_v37  ;;  %11431 = vmatprep.subr.mxu0 %v13100_v0 }
  0xb8   :  { %11436 = vmatprep.subr.mxu1 %v13100_v0  ;;  %11432 = vmatpush3.msra.mxu0 %v13392_v50 }
  0xb9   :  { %11433 = vmatprep.mubr.msk.f32.mxu0 %vm13101_vm0, %v13100_v0  ;;  %11437 = vmatpush3.msra.mxu1 %v13341_v36 }
  0xba   :  { %11434 = vmatmul.mubr.f32.vlgmr.msra.gmra.mxu0 %v13359_v43  ;;  %11438 = vmatprep.subr.mxu1 %v13100_v0 }
  0xbb   :  { %11447 = vmatprep.subr.mxu0 %v13100_v0  ;;  %11439 = vmatpush3.msra.mxu1 %v13348_v39 }
  0xbc   :  { %11448 = vmatpush3.msra.mxu0 %v13376_v46  ;;  %11440 = vmatprep.subr.mxu1 %v13100_v0 }
  0xbd   :  { %11449 = vmatprep.subr.mxu0 %v13100_v0  ;;  %11441 = vmatpush3.msra.mxu1 %v13353_v41 }
  0xbe   :  { %11450 = vmatpush3.msra.mxu0 %v13389_v49  ;;  %11442 = vmatprep.subr.mxu1 %v13100_v0 }
  0xbf   :  { %11451 = vmatprep.subr.mxu0 %v13100_v0  ;;  %11443 = vmatpush3.msra.mxu1 %v13366_v44 }
  0xc0   :  { %11444 = vmatprep.mubr.msk.f32.mxu1 %vm13101_vm0, %v13100_v0  ;;  %11452 = vmatpush3.msra.mxu0 %v13404_v53 }
  0xc1   :  { %11445 = vmatmul.mubr.f32.vlgmr.msra.gmra.mxu1 %v783_v47  ;;  %11453 = vmatprep.subr.mxu0 %v13100_v0 }
  0xc2   :  { %11458 = vmatprep.subr.mxu1 %v13100_v0  ;;  %11454 = vmatpush3.msra.mxu0 %v13413_v55 }
  0xc3   :  { %11455 = vmatprep.mubr.msk.f32.mxu0 %vm13101_vm0, %v13100_v0  ;;  %11459 = vmatpush3.msra.mxu1 %v13341_v36 }
  0xc4   :  { %11456 = vmatmul.mubr.f32.vlgmr.msra.gmra.mxu0 %v13343_v37  ;;  %11460 = vmatprep.subr.mxu1 %v13100_v0 }
  0xc5   :  { %11466 = vmatprep.mubr.msk.f32.mxu1 %vm13101_vm0, %v13100_v0  ;;  %11461 = vmatpush3.msra.mxu1 %v13348_v39 }
  0xc6   :  { %11469 = vmatprep.subr.mxu0 %v13100_v0  ;;  %11462 = vmatprep.subr.mxu1 %v13100_v0 }
  0xc7   :  { %11470 = vmatpush3.msra.mxu0 %v13341_v36  ;;  %11463 = vmatpush3.msra.mxu1 %v13353_v41 }
  0xc8   :  { %11471 = vmatprep.subr.mxu0 %v13100_v0  ;;  %11464 = vmatprep.subr.mxu1 %v13100_v0 }
  0xc9   :  { %11472 = vmatpush3.msra.mxu0 %v13348_v39  ;;  %11465 = vmatpush3.msra.mxu1 %v13366_v44 }
  0xca   :  { %11473 = vmatprep.subr.mxu0 %v13100_v0  ;;  %11467 = vmatmul.mubr.f32.vlgmr.msra.gmra.mxu1 %v13343_v37 }
  0xcb   :  { %11480 = vmatprep.subr.mxu1 %v13100_v0  ;;  %11488 = vmatprep.mubr.msk.f32.mxu1 %vm13101_vm0, %v13100_v0 }
  0xcc   :  { %11481 = vmatpush3.msra.mxu1 %v13420_v56  ;;  %11474 = vmatpush3.msra.mxu0 %v13353_v41 }
  0xcd   :  { %11482 = vmatprep.subr.mxu1 %v13100_v0  ;;  %11475 = vmatprep.subr.mxu0 %v13100_v0 }
  0xce   :  { %11483 = vmatpush3.msra.mxu1 %v13428_v59  ;;  %11476 = vmatpush3.msra.mxu0 %v13366_v44 }
  0xcf   :  { %11484 = vmatprep.subr.mxu1 %v13100_v0  ;;  %11477 = vmatprep.mubr.msk.f32.mxu0 %vm13101_vm0, %v13100_v0 }
  0xd0   :  { %11485 = vmatpush3.msra.mxu1 %v13436_v61  ;;  %11491 = vmatprep.subr.mxu0 %v13100_v0 }
  0xd1   :  { %11486 = vmatprep.subr.mxu1 %v13100_v0 }
  0xd2   :  { %11487 = vmatpush3.msra.mxu1 %v13442_v62 }
  0xd3   :  { %11502 = vmatprep.subr.mxu1 %v13100_v0 }
 0x154   :  { %v294_v63 = vpop.f32.mrf.mxu0 }
 0x155   :  { %v295_v11 = vadd.f32 %v10706_v9, %v294_v63 }
 0x156   :  { %v11347_v1 = vpop.f32.mrf.mxu0 }
 0x158   :  { %v385_v2 = vpop.f32.mrf.mxu1 }
 0x159   :  { %v386_v13 = vadd.f32 %v385_v2, %v295_v11 }
 0x15a   :  { %v11358_v3 = vpop.f32.mrf.mxu1 }
 0x15d   :  { %v465_v4 = vpop.f32.mrf.mxu0 }
 0x15e   :  { %v466_v16 = vadd.f32 %v465_v4, %v386_v13 }
 0x15f   :  { %v11369_v5 = vpop.f32.mrf.mxu0 }
 0x163   :  { %v542_v6 = vpop.f32.mrf.mxu1 }
 0x164   :  { %v543_v18 = vadd.f32 %v542_v6, %v466_v16 }
 0x165   :  { %v11380_v7 = vpop.f32.mrf.mxu1 }
 0x166   :  { %v625_v8 = vpop.f32.mrf.mxu0 }
 0x167   :  { %v626_v20 = vadd.f32 %v625_v8, %v543_v18 }
 0x168   :  { %v11391_v10 = vpop.f32.mrf.mxu0 }
 0x16d   :  { %v700_v12 = vpop.f32.mrf.mxu1 }
 0x16e   :  { %v13519_v22 = vadd.f32 %v700_v12, %v626_v20 }
 0x16f   :  { %v11402_v14 = vpop.f32.mrf.mxu1 }
 0x170   :  { %v787_v15 = vpop.f32.mrf.mxu0  ;;  %v1199_v3 = vrot.slane %v13519_v22, 1 }
 0x171   :  { %v788_v25 = vadd.f32 %v787_v15, %v13519_v22 }
 0x172   :  { %v11413_v17 = vpop.f32.mrf.mxu0 }
 0x177   :  { %v878_v19 = vpop.f32.mrf.mxu1 }
 0x178   :  { %v879_v26 = vadd.f32 %v878_v19, %v788_v25 }
 0x179   :  { %v11424_v21 = vpop.f32.mrf.mxu1 }
 0x17a   :  { %v958_v23 = vpop.f32.mrf.mxu0 }
 0x17b   :  { %v959_v29 = vadd.f32 %v958_v23, %v879_v26 }
 0x17c   :  { %v11435_v24 = vpop.f32.mrf.mxu0 }
 0x181   :  { %v1035_v27 = vpop.f32.mrf.mxu1 }
 0x182   :  { %v1036_v31 = vadd.f32 %v1035_v27, %v959_v29 }
 0x183   :  { %v11446_v28 = vpop.f32.mrf.mxu1 }
 0x184   :  { %v1118_v30 = vpop.f32.mrf.mxu0 }
 0x185   :  { %v1119_v33 = vadd.f32 %v1118_v30, %v1036_v31  ;;  %v1690_v30 = vrot.slane %v13519_v22, 2 }
 0x186   :  { %v11457_v32 = vpop.f32.mrf.mxu0 }
 0x18a   :  { %v1193_v34 = vpop.f32.mrf.mxu1 }
 0x18b   :  { %v1194_v35 = vadd.f32 %v1193_v34, %v1119_v33 }
 0x18c   :  { %v11468_v37 = vpop.f32.mrf.mxu1 }
 0x18d   :  { %12743 = vtanh.f32 %v1194_v35 }
 0x19a   :  { %v12744_v38 = vpop.eup %12743 }
 0x19b   :  { %v1202_v40 = vsel %vm215_vm1, %v12744_v38, 0 }
 0x19c   :  { %v1273_v43 = vand.u32 4294901760, %v1202_v40 }
 0x19e   :  { %v1274_v47 = vsub.f32 %v1202_v40, %v1273_v43  ;;  %11489 = vmatmul.mubr.f32.vlgmr.msra.gmra.mxu1 %v1273_v43 }
 0x19f   :  { %11503 = vmatpush3.msra.mxu1 %v13341_v36  ;;  %11510 = vmatprep.mubr.msk.f32.mxu1 %vm13101_vm0, %v13100_v0 }
 0x1a0   :  { %11504 = vmatprep.subr.mxu1 %v13100_v0  ;;  %v1275_v51 = vand.u32 4294901760, %v1274_v47 }
 0x1a1   :  { %11505 = vmatpush3.msra.mxu1 %v13348_v39 }
 0x1a2   :  { %11506 = vmatprep.subr.mxu1 %v13100_v0  ;;  %v1276_v52 = vsub.f32 %v1274_v47, %v1275_v51 }
 0x1a3   :  { %11507 = vmatpush3.msra.mxu1 %v13353_v41 }
 0x1a4   :  { %11508 = vmatprep.subr.mxu1 %v13100_v0  ;;  %v1277_v54 = vand.u32 4294901760, %v1276_v52 }
 0x1a5   :  { %11509 = vmatpush3.msra.mxu1 %v13366_v44 }
 0x1a6   :  { %11511 = vmatmul.mubr.f32.vlgmr.msra.gmra.mxu1 %v1275_v51  ;;  %11524 = vmatprep.subr.mxu1 %v13100_v0 }
 0x1a7   :  { %11478 = vmatmul.mubr.f32.vlgmr.msra.gmra.mxu0 %v1277_v54  ;;  %11525 = vmatpush3.msra.mxu1 %v13341_v36 }
 0x1a8   :  { %11492 = vmatpush3.msra.mxu0 %v13356_v42  ;;  %11526 = vmatprep.subr.mxu1 %v13100_v0 }
 0x1a9   :  { %11493 = vmatprep.subr.mxu0 %v13100_v0  ;;  %11527 = vmatpush3.msra.mxu1 %v13348_v39 }
 0x1aa   :  { %11494 = vmatpush3.msra.mxu0 %v13369_v45  ;;  %11528 = vmatprep.subr.mxu1 %v13100_v0 }
 0x1ab   :  { %11495 = vmatprep.subr.mxu0 %v13100_v0  ;;  %11529 = vmatpush3.msra.mxu1 %v13353_v41 }
 0x1ac   :  { %11496 = vmatpush3.msra.mxu0 %v13380_v48  ;;  %11530 = vmatprep.subr.mxu1 %v13100_v0 }
 0x1ad   :  { %11497 = vmatprep.subr.mxu0 %v13100_v0  ;;  %11499 = vmatprep.mubr.msk.f32.mxu0 %vm13101_vm0, %v13100_v0 }
 0x1ae   :  { %11498 = vmatpush3.msra.mxu0 %v13392_v50  ;;  %11531 = vmatpush3.msra.mxu1 %v13366_v44 }
 0x1af   :  { %11532 = vmatprep.mubr.msk.f32.mxu1 %vm13101_vm0, %v13100_v0  ;;  %11500 = vmatmul.mubr.f32.vlgmr.msra.gmra.mxu0 %v1274_v47 }
 0x1b0   :  { %11513 = vmatprep.subr.mxu0 %v13100_v0  ;;  %11533 = vmatmul.mubr.f32.vlgmr.msra.gmra.mxu1 %v1273_v43 }
 0x1b1   :  { %11514 = vmatpush3.msra.mxu0 %v13376_v46  ;;  %11521 = vmatprep.mubr.msk.f32.mxu0 %vm13101_vm0, %v13100_v0 }
 0x1b2   :  { %11515 = vmatprep.subr.mxu0 %v13100_v0  ;;  %11546 = vmatprep.subr.mxu1 %v13100_v0 }
 0x1b3   :  { %11516 = vmatpush3.msra.mxu0 %v13389_v49  ;;  %11547 = vmatpush3.msra.mxu1 %v13420_v56 }
 0x1b4   :  { %11517 = vmatprep.subr.mxu0 %v13100_v0  ;;  %11548 = vmatprep.subr.mxu1 %v13100_v0 }
 0x1b5   :  { %11518 = vmatpush3.msra.mxu0 %v13404_v53  ;;  %11549 = vmatpush3.msra.mxu1 %v13428_v59 }
 0x1b6   :  { %11519 = vmatprep.subr.mxu0 %v13100_v0  ;;  %11550 = vmatprep.subr.mxu1 %v13100_v0 }
 0x1b7   :  { %11520 = vmatpush3.msra.mxu0 %v13413_v55  ;;  %11551 = vmatpush3.msra.mxu1 %v13436_v61 }
 0x1b8   :  { %11522 = vmatmul.mubr.f32.vlgmr.msra.gmra.mxu0 %v1273_v43  ;;  %11552 = vmatprep.subr.mxu1 %v13100_v0 }
 0x1b9   :  { %11553 = vmatpush3.msra.mxu1 %v13442_v62  ;;  %11535 = vmatprep.subr.mxu0 %v13100_v0 }
 0x1ba   :  { %11554 = vmatprep.mubr.msk.f32.mxu1 %vm13101_vm0, %v13100_v0  ;;  %11568 = vmatprep.subr.mxu1 %v13100_v0 }
 0x1bb   :  { %11536 = vmatpush3.msra.mxu0 %v13341_v36  ;;  %11543 = vmatprep.mubr.msk.f32.mxu0 %vm13101_vm0, %v13100_v0 }
 0x1bc   :  { %11537 = vmatprep.subr.mxu0 %v13100_v0 }
 0x1bd   :  { %11538 = vmatpush3.msra.mxu0 %v13348_v39 }
 0x1be   :  { %11539 = vmatprep.subr.mxu0 %v13100_v0 }
 0x1bf   :  { %11540 = vmatpush3.msra.mxu0 %v13353_v41 }
 0x1c0   :  { %11541 = vmatprep.subr.mxu0 %v13100_v0 }
 0x1c1   :  { %11542 = vmatpush3.msra.mxu0 %v13366_v44 }
 0x1c2   :  { %11557 = vmatprep.subr.mxu0 %v13100_v0 }
 0x25e   :  { %v1370_v57 = vpop.f32.mrf.mxu1 }
 0x260   :  { %v11490_v58 = vpop.f32.mrf.mxu1 }
 0x266   :  { %v1527_v60 = vpop.f32.mrf.mxu1 }
 0x267   :  { %v1279_v63 = vpop.f32.mrf.mxu0 }
 0x268   :  { %v11512_v1 = vpop.f32.mrf.mxu1  ;;  %v1280_v4 = vadd.f32 %v1279_v63, %v1199_v3 }
 0x269   :  { %v11479_v2 = vpop.f32.mrf.mxu0 }
 0x26a   :  { %v1371_v7 = vadd.f32 %v1370_v57, %v1280_v4 }
 0x26f   :  { %v1450_v5 = vpop.f32.mrf.mxu0 }
 0x270   :  { %v1685_v6 = vpop.f32.mrf.mxu1  ;;  %v1451_v10 = vadd.f32 %v1450_v5, %v1371_v7 }
 0x271   :  { %v11501_v8 = vpop.f32.mrf.mxu0 }
 0x272   :  { %v11534_v9 = vpop.f32.mrf.mxu1  ;;  %v1528_v11 = vadd.f32 %v1527_v60, %v1451_v10 }
 0x273   :  { %v2181_v9 = vrot.slane %v13519_v22, 3 }
 0x278   :  { %v1610_v12 = vpop.f32.mrf.mxu0 }
 0x279   :  { %v1611_v13 = vadd.f32 %v1610_v12, %v1528_v11 }
 0x27a   :  { %v11523_v14 = vpop.f32.mrf.mxu0 }
 0x27b   :  { %v1686_v15 = vadd.f32 %v1685_v6, %v1611_v13 }
 0x27d   :  { %12745 = vtanh.f32 %v1686_v15 }
 0x28a   :  { %v12746_v16 = vpop.eup %12745 }
 0x28b   :  { %v1693_v17 = vsel %vm215_vm1, %v12746_v16, 0 }
 0x28c   :  { %v1764_v18 = vand.u32 4294901760, %v1693_v17 }
 0x28e   :  { %v1765_v19 = vsub.f32 %v1693_v17, %v1764_v18  ;;  %11555 = vmatmul.mubr.f32.vlgmr.msra.gmra.mxu1 %v1764_v18 }
 0x28f   :  { %11569 = vmatpush3.msra.mxu1 %v13341_v36  ;;  %11576 = vmatprep.mubr.msk.f32.mxu1 %vm13101_vm0, %v13100_v0 }
 0x290   :  { %11570 = vmatprep.subr.mxu1 %v13100_v0  ;;  %v1766_v20 = vand.u32 4294901760, %v1765_v19 }
 0x291   :  { %11571 = vmatpush3.msra.mxu1 %v13348_v39 }
 0x292   :  { %11572 = vmatprep.subr.mxu1 %v13100_v0  ;;  %v1767_v21 = vsub.f32 %v1765_v19, %v1766_v20 }
 0x293   :  { %11573 = vmatpush3.msra.mxu1 %v13353_v41 }
 0x294   :  { %11574 = vmatprep.subr.mxu1 %v13100_v0  ;;  %v1768_v23 = vand.u32 4294901760, %v1767_v21 }
 0x295   :  { %11575 = vmatpush3.msra.mxu1 %v13366_v44 }
 0x296   :  { %11577 = vmatmul.mubr.f32.vlgmr.msra.gmra.mxu1 %v1766_v20  ;;  %11590 = vmatprep.subr.mxu1 %v13100_v0 }
 0x297   :  { %11544 = vmatmul.mubr.f32.vlgmr.msra.gmra.mxu0 %v1768_v23  ;;  %11591 = vmatpush3.msra.mxu1 %v13341_v36 }
 0x298   :  { %11558 = vmatpush3.msra.mxu0 %v13356_v42  ;;  %11592 = vmatprep.subr.mxu1 %v13100_v0 }
 0x299   :  { %11559 = vmatprep.subr.mxu0 %v13100_v0  ;;  %11593 = vmatpush3.msra.mxu1 %v13348_v39 }
 0x29a   :  { %11560 = vmatpush3.msra.mxu0 %v13369_v45  ;;  %11594 = vmatprep.subr.mxu1 %v13100_v0 }
 0x29b   :  { %11561 = vmatprep.subr.mxu0 %v13100_v0  ;;  %11595 = vmatpush3.msra.mxu1 %v13353_v41 }
 0x29c   :  { %11562 = vmatpush3.msra.mxu0 %v13380_v48  ;;  %11596 = vmatprep.subr.mxu1 %v13100_v0 }
 0x29d   :  { %11563 = vmatprep.subr.mxu0 %v13100_v0  ;;  %11565 = vmatprep.mubr.msk.f32.mxu0 %vm13101_vm0, %v13100_v0 }
 0x29e   :  { %11564 = vmatpush3.msra.mxu0 %v13392_v50  ;;  %11597 = vmatpush3.msra.mxu1 %v13366_v44 }
 0x29f   :  { %11598 = vmatprep.mubr.msk.f32.mxu1 %vm13101_vm0, %v13100_v0  ;;  %11566 = vmatmul.mubr.f32.vlgmr.msra.gmra.mxu0 %v1765_v19 }
 0x2a0   :  { %11579 = vmatprep.subr.mxu0 %v13100_v0  ;;  %11599 = vmatmul.mubr.f32.vlgmr.msra.gmra.mxu1 %v1764_v18 }
 0x2a1   :  { %11580 = vmatpush3.msra.mxu0 %v13376_v46  ;;  %11587 = vmatprep.mubr.msk.f32.mxu0 %vm13101_vm0, %v13100_v0 }
 0x2a2   :  { %11581 = vmatprep.subr.mxu0 %v13100_v0  ;;  %11612 = vmatprep.subr.mxu1 %v13100_v0 }
 0x2a3   :  { %11582 = vmatpush3.msra.mxu0 %v13389_v49  ;;  %11613 = vmatpush3.msra.mxu1 %v13420_v56 }
 0x2a4   :  { %11583 = vmatprep.subr.mxu0 %v13100_v0  ;;  %11614 = vmatprep.subr.mxu1 %v13100_v0 }
 0x2a5   :  { %11584 = vmatpush3.msra.mxu0 %v13404_v53  ;;  %11615 = vmatpush3.msra.mxu1 %v13428_v59 }
 0x2a6   :  { %11585 = vmatprep.subr.mxu0 %v13100_v0  ;;  %11616 = vmatprep.subr.mxu1 %v13100_v0 }
 0x2a7   :  { %11586 = vmatpush3.msra.mxu0 %v13413_v55  ;;  %11617 = vmatpush3.msra.mxu1 %v13436_v61 }
 0x2a8   :  { %11588 = vmatmul.mubr.f32.vlgmr.msra.gmra.mxu0 %v1764_v18  ;;  %11618 = vmatprep.subr.mxu1 %v13100_v0 }
 0x2a9   :  { %11619 = vmatpush3.msra.mxu1 %v13442_v62  ;;  %11601 = vmatprep.subr.mxu0 %v13100_v0 }
 0x2aa   :  { %11620 = vmatprep.mubr.msk.f32.mxu1 %vm13101_vm0, %v13100_v0  ;;  %11634 = vmatprep.subr.mxu1 %v13100_v0 }
 0x2ab   :  { %11602 = vmatpush3.msra.mxu0 %v13341_v36  ;;  %11609 = vmatprep.mubr.msk.f32.mxu0 %vm13101_vm0, %v13100_v0 }
 0x2ac   :  { %11603 = vmatprep.subr.mxu0 %v13100_v0 }
 0x2ad   :  { %11604 = vmatpush3.msra.mxu0 %v13348_v39 }
 0x2ae   :  { %11605 = vmatprep.subr.mxu0 %v13100_v0 }
 0x2af   :  { %11606 = vmatpush3.msra.mxu0 %v13353_v41 }
 0x2b0   :  { %11607 = vmatprep.subr.mxu0 %v13100_v0 }
 0x2b1   :  { %11608 = vmatpush3.msra.mxu0 %v13366_v44 }
 0x2b2   :  { %11623 = vmatprep.subr.mxu0 %v13100_v0 }
 0x34e   :  { %v1861_v24 = vpop.f32.mrf.mxu1 }
 0x350   :  { %v11556_v25 = vpop.f32.mrf.mxu1 }
 0x356   :  { %v2018_v26 = vpop.f32.mrf.mxu1 }
 0x357   :  { %v1770_v27 = vpop.f32.mrf.mxu0 }
 0x358   :  { %v11578_v28 = vpop.f32.mrf.mxu1  ;;  %v1771_v31 = vadd.f32 %v1770_v27, %v1690_v30 }
 0x359   :  { %v11545_v29 = vpop.f32.mrf.mxu0 }
 0x35a   :  { %v1862_v34 = vadd.f32 %v1861_v24, %v1771_v31 }
 0x35f   :  { %v1941_v32 = vpop.f32.mrf.mxu0 }
 0x360   :  { %v2176_v33 = vpop.f32.mrf.mxu1  ;;  %v1942_v38 = vadd.f32 %v1941_v32, %v1862_v34 }
 0x361   :  { %v11567_v35 = vpop.f32.mrf.mxu0 }
 0x362   :  { %v11600_v37 = vpop.f32.mrf.mxu1  ;;  %v2019_v40 = vadd.f32 %v2018_v26, %v1942_v38 }
 0x363   :  { %v2672_v37 = vrot.slane %v13519_v22, 4 }
 0x368   :  { %v2101_v43 = vpop.f32.mrf.mxu0 }
 0x369   :  { %v2102_v47 = vadd.f32 %v2101_v43, %v2019_v40 }
 0x36a   :  { %v11589_v51 = vpop.f32.mrf.mxu0 }
 0x36b   :  { %v2177_v52 = vadd.f32 %v2176_v33, %v2102_v47 }
 0x36d   :  { %12747 = vtanh.f32 %v2177_v52 }
 0x37a   :  { %v12748_v54 = vpop.eup %12747 }
 0x37b   :  { %v2184_v57 = vsel %vm215_vm1, %v12748_v54, 0 }
 0x37c   :  { %v2255_v58 = vand.u32 4294901760, %v2184_v57 }
 0x37e   :  { %v2256_v60 = vsub.f32 %v2184_v57, %v2255_v58  ;;  %11621 = vmatmul.mubr.f32.vlgmr.msra.gmra.mxu1 %v2255_v58 }
 0x37f   :  { %11635 = vmatpush3.msra.mxu1 %v13341_v36  ;;  %11642 = vmatprep.mubr.msk.f32.mxu1 %vm13101_vm0, %v13100_v0 }
 0x380   :  { %11636 = vmatprep.subr.mxu1 %v13100_v0  ;;  %v2257_v63 = vand.u32 4294901760, %v2256_v60 }
 0x381   :  { %11637 = vmatpush3.msra.mxu1 %v13348_v39 }
 0x382   :  { %11638 = vmatprep.subr.mxu1 %v13100_v0  ;;  %v2258_v1 = vsub.f32 %v2256_v60, %v2257_v63 }
 0x383   :  { %11639 = vmatpush3.msra.mxu1 %v13353_v41 }
 0x384   :  { %11640 = vmatprep.subr.mxu1 %v13100_v0  ;;  %v2259_v2 = vand.u32 4294901760, %v2258_v1 }
 0x385   :  { %11641 = vmatpush3.msra.mxu1 %v13366_v44 }
 0x386   :  { %11643 = vmatmul.mubr.f32.vlgmr.msra.gmra.mxu1 %v2257_v63  ;;  %11656 = vmatprep.subr.mxu1 %v13100_v0 }
 0x387   :  { %11610 = vmatmul.mubr.f32.vlgmr.msra.gmra.mxu0 %v2259_v2  ;;  %11657 = vmatpush3.msra.mxu1 %v13341_v36 }
 0x388   :  { %11624 = vmatpush3.msra.mxu0 %v13356_v42  ;;  %11658 = vmatprep.subr.mxu1 %v13100_v0 }
 0x389   :  { %11625 = vmatprep.subr.mxu0 %v13100_v0  ;;  %11659 = vmatpush3.msra.mxu1 %v13348_v39 }
 0x38a   :  { %11626 = vmatpush3.msra.mxu0 %v13369_v45  ;;  %11660 = vmatprep.subr.mxu1 %v13100_v0 }
 0x38b   :  { %11627 = vmatprep.subr.mxu0 %v13100_v0  ;;  %11661 = vmatpush3.msra.mxu1 %v13353_v41 }
 0x38c   :  { %11628 = vmatpush3.msra.mxu0 %v13380_v48  ;;  %11662 = vmatprep.subr.mxu1 %v13100_v0 }
 0x38d   :  { %11629 = vmatprep.subr.mxu0 %v13100_v0  ;;  %11631 = vmatprep.mubr.msk.f32.mxu0 %vm13101_vm0, %v13100_v0 }
 0x38e   :  { %11630 = vmatpush3.msra.mxu0 %v13392_v50  ;;  %11663 = vmatpush3.msra.mxu1 %v13366_v44 }
 0x38f   :  { %11664 = vmatprep.mubr.msk.f32.mxu1 %vm13101_vm0, %v13100_v0  ;;  %11632 = vmatmul.mubr.f32.vlgmr.msra.gmra.mxu0 %v2256_v60 }
 0x390   :  { %11645 = vmatprep.subr.mxu0 %v13100_v0  ;;  %11665 = vmatmul.mubr.f32.vlgmr.msra.gmra.mxu1 %v2255_v58 }
 0x391   :  { %11646 = vmatpush3.msra.mxu0 %v13376_v46  ;;  %11653 = vmatprep.mubr.msk.f32.mxu0 %vm13101_vm0, %v13100_v0 }
 0x392   :  { %11647 = vmatprep.subr.mxu0 %v13100_v0  ;;  %11678 = vmatprep.subr.mxu1 %v13100_v0 }
 0x393   :  { %11648 = vmatpush3.msra.mxu0 %v13389_v49  ;;  %11679 = vmatpush3.msra.mxu1 %v13420_v56 }
 0x394   :  { %11649 = vmatprep.subr.mxu0 %v13100_v0  ;;  %11680 = vmatprep.subr.mxu1 %v13100_v0 }
 0x395   :  { %11650 = vmatpush3.msra.mxu0 %v13404_v53  ;;  %11681 = vmatpush3.msra.mxu1 %v13428_v59 }
 0x396   :  { %11651 = vmatprep.subr.mxu0 %v13100_v0  ;;  %11682 = vmatprep.subr.mxu1 %v13100_v0 }
 0x397   :  { %11652 = vmatpush3.msra.mxu0 %v13413_v55  ;;  %11683 = vmatpush3.msra.mxu1 %v13436_v61 }
 0x398   :  { %11654 = vmatmul.mubr.f32.vlgmr.msra.gmra.mxu0 %v2255_v58  ;;  %11684 = vmatprep.subr.mxu1 %v13100_v0 }
 0x399   :  { %11685 = vmatpush3.msra.mxu1 %v13442_v62  ;;  %11667 = vmatprep.subr.mxu0 %v13100_v0 }
 0x39a   :  { %11686 = vmatprep.mubr.msk.f32.mxu1 %vm13101_vm0, %v13100_v0  ;;  %11700 = vmatprep.subr.mxu1 %v13100_v0 }
 0x39b   :  { %11668 = vmatpush3.msra.mxu0 %v13341_v36  ;;  %11675 = vmatprep.mubr.msk.f32.mxu0 %vm13101_vm0, %v13100_v0 }
 0x39c   :  { %11669 = vmatprep.subr.mxu0 %v13100_v0 }
 0x39d   :  { %11670 = vmatpush3.msra.mxu0 %v13348_v39 }
 0x39e   :  { %11671 = vmatprep.subr.mxu0 %v13100_v0 }
 0x39f   :  { %11672 = vmatpush3.msra.mxu0 %v13353_v41 }
 0x3a0   :  { %11673 = vmatprep.subr.mxu0 %v13100_v0 }
 0x3a1   :  { %11674 = vmatpush3.msra.mxu0 %v13366_v44 }
 0x3a2   :  { %11689 = vmatprep.subr.mxu0 %v13100_v0 }
 0x43e   :  { %v2352_v3 = vpop.f32.mrf.mxu1 }
 0x440   :  { %v11622_v4 = vpop.f32.mrf.mxu1 }
 0x446   :  { %v2509_v5 = vpop.f32.mrf.mxu1 }
 0x447   :  { %v2261_v6 = vpop.f32.mrf.mxu0 }
 0x448   :  { %v11644_v7 = vpop.f32.mrf.mxu1  ;;  %v2262_v10 = vadd.f32 %v2261_v6, %v2181_v9 }
 0x449   :  { %v11611_v8 = vpop.f32.mrf.mxu0 }
 0x44a   :  { %v2353_v13 = vadd.f32 %v2352_v3, %v2262_v10 }
 0x44f   :  { %v2432_v11 = vpop.f32.mrf.mxu0 }
 0x450   :  { %v2667_v12 = vpop.f32.mrf.mxu1  ;;  %v2433_v16 = vadd.f32 %v2432_v11, %v2353_v13  ;;  %v3163_v11 = vrot.slane %v13519_v22, 5 }
 0x451   :  { %v11633_v14 = vpop.f32.mrf.mxu0 }
 0x452   :  { %v11666_v15 = vpop.f32.mrf.mxu1  ;;  %v2510_v17 = vadd.f32 %v2509_v5, %v2433_v16 }
 0x458   :  { %v2592_v18 = vpop.f32.mrf.mxu0 }
 0x459   :  { %v2593_v19 = vadd.f32 %v2592_v18, %v2510_v17 }
 0x45a   :  { %v11655_v20 = vpop.f32.mrf.mxu0 }
 0x45b   :  { %v2668_v21 = vadd.f32 %v2667_v12, %v2593_v19 }
 0x45d   :  { %12749 = vtanh.f32 %v2668_v21 }
 0x46a   :  { %v12750_v23 = vpop.eup %12749 }
 0x46b   :  { %v2675_v24 = vsel %vm215_vm1, %v12750_v23, 0 }
 0x46c   :  { %v2746_v25 = vand.u32 4294901760, %v2675_v24 }
 0x46e   :  { %v2747_v26 = vsub.f32 %v2675_v24, %v2746_v25  ;;  %11687 = vmatmul.mubr.f32.vlgmr.msra.gmra.mxu1 %v2746_v25 }
 0x46f   :  { %11701 = vmatpush3.msra.mxu1 %v13341_v36  ;;  %11708 = vmatprep.mubr.msk.f32.mxu1 %vm13101_vm0, %v13100_v0 }
 0x470   :  { %11702 = vmatprep.subr.mxu1 %v13100_v0  ;;  %v2748_v27 = vand.u32 4294901760, %v2747_v26 }
 0x471   :  { %11703 = vmatpush3.msra.mxu1 %v13348_v39 }
 0x472   :  { %11704 = vmatprep.subr.mxu1 %v13100_v0  ;;  %v2749_v28 = vsub.f32 %v2747_v26, %v2748_v27 }
 0x473   :  { %11705 = vmatpush3.msra.mxu1 %v13353_v41 }
 0x474   :  { %11706 = vmatprep.subr.mxu1 %v13100_v0  ;;  %v2750_v29 = vand.u32 4294901760, %v2749_v28 }
 0x475   :  { %11707 = vmatpush3.msra.mxu1 %v13366_v44 }
 0x476   :  { %11709 = vmatmul.mubr.f32.vlgmr.msra.gmra.mxu1 %v2748_v27  ;;  %11722 = vmatprep.subr.mxu1 %v13100_v0 }
 0x477   :  { %11676 = vmatmul.mubr.f32.vlgmr.msra.gmra.mxu0 %v2750_v29  ;;  %11723 = vmatpush3.msra.mxu1 %v13341_v36 }
 0x478   :  { %11690 = vmatpush3.msra.mxu0 %v13356_v42  ;;  %11724 = vmatprep.subr.mxu1 %v13100_v0 }
 0x479   :  { %11691 = vmatprep.subr.mxu0 %v13100_v0  ;;  %11725 = vmatpush3.msra.mxu1 %v13348_v39 }
 0x47a   :  { %11692 = vmatpush3.msra.mxu0 %v13369_v45  ;;  %11726 = vmatprep.subr.mxu1 %v13100_v0 }
 0x47b   :  { %11693 = vmatprep.subr.mxu0 %v13100_v0  ;;  %11727 = vmatpush3.msra.mxu1 %v13353_v41 }
 0x47c   :  { %11694 = vmatpush3.msra.mxu0 %v13380_v48  ;;  %11728 = vmatprep.subr.mxu1 %v13100_v0 }
 0x47d   :  { %11695 = vmatprep.subr.mxu0 %v13100_v0  ;;  %11697 = vmatprep.mubr.msk.f32.mxu0 %vm13101_vm0, %v13100_v0 }
 0x47e   :  { %11696 = vmatpush3.msra.mxu0 %v13392_v50  ;;  %11729 = vmatpush3.msra.mxu1 %v13366_v44 }
 0x47f   :  { %11730 = vmatprep.mubr.msk.f32.mxu1 %vm13101_vm0, %v13100_v0  ;;  %11698 = vmatmul.mubr.f32.vlgmr.msra.gmra.mxu0 %v2747_v26 }
 0x480   :  { %11711 = vmatprep.subr.mxu0 %v13100_v0  ;;  %11731 = vmatmul.mubr.f32.vlgmr.msra.gmra.mxu1 %v2746_v25 }
 0x481   :  { %11712 = vmatpush3.msra.mxu0 %v13376_v46  ;;  %11719 = vmatprep.mubr.msk.f32.mxu0 %vm13101_vm0, %v13100_v0 }
 0x482   :  { %11713 = vmatprep.subr.mxu0 %v13100_v0  ;;  %11744 = vmatprep.subr.mxu1 %v13100_v0 }
 0x483   :  { %11714 = vmatpush3.msra.mxu0 %v13389_v49  ;;  %11745 = vmatpush3.msra.mxu1 %v13420_v56 }
 0x484   :  { %11715 = vmatprep.subr.mxu0 %v13100_v0  ;;  %11746 = vmatprep.subr.mxu1 %v13100_v0 }
 0x485   :  { %11716 = vmatpush3.msra.mxu0 %v13404_v53  ;;  %11747 = vmatpush3.msra.mxu1 %v13428_v59 }
 0x486   :  { %11717 = vmatprep.subr.mxu0 %v13100_v0  ;;  %11748 = vmatprep.subr.mxu1 %v13100_v0 }
 0x487   :  { %11718 = vmatpush3.msra.mxu0 %v13413_v55  ;;  %11749 = vmatpush3.msra.mxu1 %v13436_v61 }
 0x488   :  { %11720 = vmatmul.mubr.f32.vlgmr.msra.gmra.mxu0 %v2746_v25  ;;  %11750 = vmatprep.subr.mxu1 %v13100_v0 }
 0x489   :  { %11751 = vmatpush3.msra.mxu1 %v13442_v62  ;;  %11733 = vmatprep.subr.mxu0 %v13100_v0 }
 0x48a   :  { %11752 = vmatprep.mubr.msk.f32.mxu1 %vm13101_vm0, %v13100_v0  ;;  %11766 = vmatprep.subr.mxu1 %v13100_v0 }
 0x48b   :  { %11734 = vmatpush3.msra.mxu0 %v13341_v36  ;;  %11741 = vmatprep.mubr.msk.f32.mxu0 %vm13101_vm0, %v13100_v0 }
 0x48c   :  { %11735 = vmatprep.subr.mxu0 %v13100_v0 }
 0x48d   :  { %11736 = vmatpush3.msra.mxu0 %v13348_v39 }
 0x48e   :  { %11737 = vmatprep.subr.mxu0 %v13100_v0 }
 0x48f   :  { %11738 = vmatpush3.msra.mxu0 %v13353_v41 }
 0x490   :  { %11739 = vmatprep.subr.mxu0 %v13100_v0 }
 0x491   :  { %11740 = vmatpush3.msra.mxu0 %v13366_v44 }
 0x492   :  { %11755 = vmatprep.subr.mxu0 %v13100_v0 }
 0x52e   :  { %v2843_v30 = vpop.f32.mrf.mxu1 }
 0x530   :  { %v11688_v31 = vpop.f32.mrf.mxu1 }
 0x536   :  { %v3000_v32 = vpop.f32.mrf.mxu1 }
 0x537   :  { %v2752_v33 = vpop.f32.mrf.mxu0 }
 0x538   :  { %v11710_v34 = vpop.f32.mrf.mxu1  ;;  %v2753_v38 = vadd.f32 %v2752_v33, %v2672_v37 }
 0x539   :  { %v11677_v35 = vpop.f32.mrf.mxu0 }
 0x53a   :  { %v2844_v47 = vadd.f32 %v2843_v30, %v2753_v38 }
 0x53f   :  { %v2923_v40 = vpop.f32.mrf.mxu0 }
 0x540   :  { %v3158_v43 = vpop.f32.mrf.mxu1  ;;  %v2924_v54 = vadd.f32 %v2923_v40, %v2844_v47 }
 0x541   :  { %v11699_v51 = vpop.f32.mrf.mxu0 }
 0x542   :  { %v11732_v52 = vpop.f32.mrf.mxu1  ;;  %v3001_v57 = vadd.f32 %v3000_v32, %v2924_v54 }
 0x548   :  { %v3083_v58 = vpop.f32.mrf.mxu0 }
 0x549   :  { %v3084_v60 = vadd.f32 %v3083_v58, %v3001_v57 }
 0x54a   :  { %v11721_v63 = vpop.f32.mrf.mxu0 }
 0x54b   :  { %v3159_v1 = vadd.f32 %v3158_v43, %v3084_v60 }
 0x54d   :  { %12751 = vtanh.f32 %v3159_v1 }
 0x55a   :  { %v12752_v2 = vpop.eup %12751 }
 0x55b   :  { %v3166_v3 = vsel %vm215_vm1, %v12752_v2, 0 }
 0x55c   :  { %v3237_v4 = vand.u32 4294901760, %v3166_v3 }
 0x55e   :  { %v3238_v5 = vsub.f32 %v3166_v3, %v3237_v4  ;;  %11753 = vmatmul.mubr.f32.vlgmr.msra.gmra.mxu1 %v3237_v4  ;;  %v3654_v3 = vrot.slane %v13519_v22, 6 }
 0x55f   :  { %11767 = vmatpush3.msra.mxu1 %v13341_v36  ;;  %11774 = vmatprep.mubr.msk.f32.mxu1 %vm13101_vm0, %v13100_v0 }
 0x560   :  { %11768 = vmatprep.subr.mxu1 %v13100_v0  ;;  %v3239_v6 = vand.u32 4294901760, %v3238_v5 }
 0x561   :  { %11769 = vmatpush3.msra.mxu1 %v13348_v39 }
 0x562   :  { %11770 = vmatprep.subr.mxu1 %v13100_v0  ;;  %v3240_v7 = vsub.f32 %v3238_v5, %v3239_v6 }
 0x563   :  { %11771 = vmatpush3.msra.mxu1 %v13353_v41 }
 0x564   :  { %11772 = vmatprep.subr.mxu1 %v13100_v0  ;;  %v3241_v8 = vand.u32 4294901760, %v3240_v7 }
 0x565   :  { %11773 = vmatpush3.msra.mxu1 %v13366_v44 }
 0x566   :  { %11775 = vmatmul.mubr.f32.vlgmr.msra.gmra.mxu1 %v3239_v6  ;;  %11788 = vmatprep.subr.mxu1 %v13100_v0 }
 0x567   :  { %11742 = vmatmul.mubr.f32.vlgmr.msra.gmra.mxu0 %v3241_v8  ;;  %11789 = vmatpush3.msra.mxu1 %v13341_v36 }
 0x568   :  { %11756 = vmatpush3.msra.mxu0 %v13356_v42  ;;  %11790 = vmatprep.subr.mxu1 %v13100_v0 }
 0x569   :  { %11757 = vmatprep.subr.mxu0 %v13100_v0  ;;  %11791 = vmatpush3.msra.mxu1 %v13348_v39 }
 0x56a   :  { %11758 = vmatpush3.msra.mxu0 %v13369_v45  ;;  %11792 = vmatprep.subr.mxu1 %v13100_v0 }
 0x56b   :  { %11759 = vmatprep.subr.mxu0 %v13100_v0  ;;  %11793 = vmatpush3.msra.mxu1 %v13353_v41 }
 0x56c   :  { %11760 = vmatpush3.msra.mxu0 %v13380_v48  ;;  %11794 = vmatprep.subr.mxu1 %v13100_v0 }
 0x56d   :  { %11761 = vmatprep.subr.mxu0 %v13100_v0  ;;  %11763 = vmatprep.mubr.msk.f32.mxu0 %vm13101_vm0, %v13100_v0 }
 0x56e   :  { %11762 = vmatpush3.msra.mxu0 %v13392_v50  ;;  %11795 = vmatpush3.msra.mxu1 %v13366_v44 }
 0x56f   :  { %11796 = vmatprep.mubr.msk.f32.mxu1 %vm13101_vm0, %v13100_v0  ;;  %11764 = vmatmul.mubr.f32.vlgmr.msra.gmra.mxu0 %v3238_v5 }
 0x570   :  { %11777 = vmatprep.subr.mxu0 %v13100_v0  ;;  %11797 = vmatmul.mubr.f32.vlgmr.msra.gmra.mxu1 %v3237_v4 }
 0x571   :  { %11778 = vmatpush3.msra.mxu0 %v13376_v46  ;;  %11785 = vmatprep.mubr.msk.f32.mxu0 %vm13101_vm0, %v13100_v0 }
 0x572   :  { %11779 = vmatprep.subr.mxu0 %v13100_v0  ;;  %11810 = vmatprep.subr.mxu1 %v13100_v0 }
 0x573   :  { %11780 = vmatpush3.msra.mxu0 %v13389_v49  ;;  %11811 = vmatpush3.msra.mxu1 %v13420_v56 }
 0x574   :  { %11781 = vmatprep.subr.mxu0 %v13100_v0  ;;  %11812 = vmatprep.subr.mxu1 %v13100_v0 }
 0x575   :  { %11782 = vmatpush3.msra.mxu0 %v13404_v53  ;;  %11813 = vmatpush3.msra.mxu1 %v13428_v59 }
 0x576   :  { %11783 = vmatprep.subr.mxu0 %v13100_v0  ;;  %11814 = vmatprep.subr.mxu1 %v13100_v0 }
 0x577   :  { %11784 = vmatpush3.msra.mxu0 %v13413_v55  ;;  %11815 = vmatpush3.msra.mxu1 %v13436_v61 }
 0x578   :  { %11786 = vmatmul.mubr.f32.vlgmr.msra.gmra.mxu0 %v3237_v4  ;;  %11816 = vmatprep.subr.mxu1 %v13100_v0 }
 0x579   :  { %11817 = vmatpush3.msra.mxu1 %v13442_v62  ;;  %11799 = vmatprep.subr.mxu0 %v13100_v0 }
 0x57a   :  { %11818 = vmatprep.mubr.msk.f32.mxu1 %vm13101_vm0, %v13100_v0  ;;  %11832 = vmatprep.subr.mxu1 %v13100_v0 }
 0x57b   :  { %11800 = vmatpush3.msra.mxu0 %v13341_v36  ;;  %11807 = vmatprep.mubr.msk.f32.mxu0 %vm13101_vm0, %v13100_v0 }
 0x57c   :  { %11801 = vmatprep.subr.mxu0 %v13100_v0 }
 0x57d   :  { %11802 = vmatpush3.msra.mxu0 %v13348_v39 }
 0x57e   :  { %11803 = vmatprep.subr.mxu0 %v13100_v0 }
 0x57f   :  { %11804 = vmatpush3.msra.mxu0 %v13353_v41 }
 0x580   :  { %11805 = vmatprep.subr.mxu0 %v13100_v0 }
 0x581   :  { %11806 = vmatpush3.msra.mxu0 %v13366_v44 }
 0x582   :  { %11821 = vmatprep.subr.mxu0 %v13100_v0 }
 0x61e   :  { %v3334_v56 = vpop.f32.mrf.mxu1 }
 0x620   :  { %v11754_v59 = vpop.f32.mrf.mxu1 }
 0x626   :  { %v3491_v61 = vpop.f32.mrf.mxu1 }
 0x627   :  { %v3243_v62 = vpop.f32.mrf.mxu0 }
 0x628   :  { %v11776_v9 = vpop.f32.mrf.mxu1  ;;  %v3244_v12 = vadd.f32 %v3243_v62, %v3163_v11 }
 0x629   :  { %v11743_v10 = vpop.f32.mrf.mxu0 }
 0x62a   :  { %v3335_v15 = vadd.f32 %v3334_v56, %v3244_v12 }
 0x62f   :  { %v3414_v13 = vpop.f32.mrf.mxu0 }
 0x630   :  { %v3649_v14 = vpop.f32.mrf.mxu1  ;;  %v3415_v18 = vadd.f32 %v3414_v13, %v3335_v15 }
 0x631   :  { %v11765_v16 = vpop.f32.mrf.mxu0 }
 0x632   :  { %v11798_v17 = vpop.f32.mrf.mxu1  ;;  %v3492_v19 = vadd.f32 %v3491_v61, %v3415_v18  ;;  %v4642_v18 = vld [vmem:[#allocation10 + $0x18] sm:$0xff] }
 0x638   :  { %v3574_v20 = vpop.f32.mrf.mxu0 }
 0x639   :  { %v3575_v21 = vadd.f32 %v3574_v20, %v3492_v19  ;;  %v13975_v19 = vand.u32 4294901760, %v4642_v18  ;;  %v4641_v20 = vld [vmem:[#allocation10 + $0x10] sm:$0xff] }
 0x63a   :  { %v11787_v23 = vpop.f32.mrf.mxu0 }
 0x63b   :  { %v3650_v24 = vadd.f32 %v3649_v14, %v3575_v21  ;;  %v4640_v21 = vld [vmem:[#allocation10 + $0x8] sm:$0xff]  ;;  %v4639_v23 = vld [vmem:[#allocation10] sm:$0xff] }
 0x63d   :  { %12753 = vtanh.f32 %v3650_v24  ;;  %v13978_v24 = vsub.f32 %v4642_v18, %v13975_v19 }
 0x64a   :  { %v12754_v25 = vpop.eup %12753 }
 0x64b   :  { %v3657_v26 = vsel %vm215_vm1, %v12754_v25, 0  ;;  %v13980_v25 = vand.u32 4294901760, %v4641_v20 }
 0x64c   :  { %v3728_v27 = vand.u32 4294901760, %v3657_v26 }
 0x64e   :  { %v3729_v28 = vsub.f32 %v3657_v26, %v3728_v27  ;;  %11819 = vmatmul.mubr.f32.vlgmr.msra.gmra.mxu1 %v3728_v27  ;;  %v13982_v26 = vand.u32 4294901760, %v4640_v21 }
 0x64f   :  { %11833 = vmatpush3.msra.mxu1 %v13341_v36  ;;  %11840 = vmatprep.mubr.msk.f32.mxu1 %vm13101_vm0, %v13100_v0 }
 0x650   :  { %11834 = vmatprep.subr.mxu1 %v13100_v0  ;;  %v3730_v29 = vand.u32 4294901760, %v3729_v28 }
 0x651   :  { %11835 = vmatpush3.msra.mxu1 %v13348_v39 }
 0x652   :  { %11836 = vmatprep.subr.mxu1 %v13100_v0  ;;  %v3731_v30 = vsub.f32 %v3729_v28, %v3730_v29 }
 0x653   :  { %11837 = vmatpush3.msra.mxu1 %v13353_v41 }
 0x654   :  { %11838 = vmatprep.subr.mxu1 %v13100_v0  ;;  %v3732_v31 = vand.u32 4294901760, %v3731_v30  ;;  %v13993_v30 = vsub.f32 %v4640_v21, %v13982_v26 }
 0x655   :  { %11839 = vmatpush3.msra.mxu1 %v13366_v44 }
 0x656   :  { %11841 = vmatmul.mubr.f32.vlgmr.msra.gmra.mxu1 %v3730_v29  ;;  %11854 = vmatprep.subr.mxu1 %v13100_v0  ;;  %v13990_v29 = vsub.f32 %v4641_v20, %v13980_v25 }
 0x657   :  { %11808 = vmatmul.mubr.f32.vlgmr.msra.gmra.mxu0 %v3732_v31  ;;  %11855 = vmatpush3.msra.mxu1 %v13341_v36  ;;  %v4148_v36 = vld [vmem:[#allocation8 + $0x18] sm:$0xff] }
 0x658   :  { %11822 = vmatpush3.msra.mxu0 %v13356_v42  ;;  %11856 = vmatprep.subr.mxu1 %v13100_v0  ;;  %v4146_v42 = vld [vmem:[#allocation8 + $0x8] sm:$0xff] }
 0x659   :  { %11823 = vmatprep.subr.mxu0 %v13100_v0  ;;  %11857 = vmatpush3.msra.mxu1 %v13348_v39  ;;  %v13877_v39 = vand.u32 4294901760, %v4148_v36 }
 0x65a   :  { %11824 = vmatpush3.msra.mxu0 %v13369_v45  ;;  %11858 = vmatprep.subr.mxu1 %v13100_v0 }
 0x65b   :  { %11825 = vmatprep.subr.mxu0 %v13100_v0  ;;  %11859 = vmatpush3.msra.mxu1 %v13353_v41  ;;  %v4147_v41 = vld [vmem:[#allocation8 + $0x10] sm:$0xff]  ;;  %v13880_v45 = vsub.f32 %v4148_v36, %v13877_v39 }
 0x65c   :  { %11826 = vmatpush3.msra.mxu0 %v13380_v48  ;;  %11860 = vmatprep.subr.mxu1 %v13100_v0  ;;  %v13884_v48 = vand.u32 4294901760, %v4146_v42 }
 0x65d   :  { %11827 = vmatprep.subr.mxu0 %v13100_v0  ;;  %11829 = vmatprep.mubr.msk.f32.mxu0 %vm13101_vm0, %v13100_v0 }
 0x65e   :  { %11828 = vmatpush3.msra.mxu0 %v13392_v50  ;;  %11861 = vmatpush3.msra.mxu1 %v13366_v44  ;;  %v4145_v44 = vld [vmem:[#allocation8] sm:$0xff]  ;;  %v4259_v50 = vand.u32 4294901760, %v13880_v45 }
 0x65f   :  { %11862 = vmatprep.mubr.msk.f32.mxu1 %vm13101_vm0, %v13100_v0  ;;  %11830 = vmatmul.mubr.f32.vlgmr.msra.gmra.mxu0 %v3729_v28  ;;  %v4753_v28 = vand.u32 4294901760, %v13978_v24 }
 0x660   :  { %11843 = vmatprep.subr.mxu0 %v13100_v0  ;;  %11863 = vmatmul.mubr.f32.vlgmr.msra.gmra.mxu1 %v3728_v27  ;;  %v4260_v33 = vsub.f32 %v13880_v45, %v4259_v50 }
 0x661   :  { %11844 = vmatpush3.msra.mxu0 %v13376_v46  ;;  %11851 = vmatprep.mubr.msk.f32.mxu0 %vm13101_vm0, %v13100_v0  ;;  %v13882_v46 = vand.u32 4294901760, %v4147_v41  ;;  %v4754_v36 = vsub.f32 %v13978_v24, %v4753_v28 }
 0x662   :  { %11845 = vmatprep.subr.mxu0 %v13100_v0  ;;  %11876 = vmatprep.subr.mxu1 %v13100_v0  ;;  %v4261_v38 = vand.u32 4294901760, %v4260_v33 }
 0x663   :  { %11846 = vmatpush3.msra.mxu0 %v13389_v49  ;;  %11884 = vmatprep.mubr.msk.f32.mxu1 %vm13101_vm0, %v13100_v0  ;;  %v13886_v49 = vand.u32 4294901760, %v4145_v44 }
 0x664   :  { %11847 = vmatprep.subr.mxu0 %v13100_v0  ;;  %11877 = vmatpush3.msra.mxu1 %v4261_v38  ;;  %v4149_v38 = vld [vmem:[%s15078_s2] sm:$0x1] }
 0x665   :  { %11848 = vmatpush3.msra.mxu0 %v13404_v53  ;;  %v13892_v53 = vsub.f32 %v4147_v41, %v13882_v46  ;;  %v13898_v32 = vsub.f32 %v4145_v44, %v13886_v49  ;;  %11878 = vmatprep.subr.mxu1 %v13100_v0  ;;  %v4767_v41 = vand.u32 4294901760, %v13993_v30  ;;  %v4755_v44 = vand.u32 4294901760, %v4754_v36 }
 0x666   :  { %11849 = vmatprep.subr.mxu0 %v13100_v0 }
 0x667   :  { %11850 = vmatpush3.msra.mxu0 %v13413_v55  ;;  %v13895_v55 = vsub.f32 %v4146_v42, %v13884_v48  ;;  %v4266_v34 = vand.u32 4294901760, %v13892_v53  ;;  %v4280_v37 = vand.u32 4294901760, %v13898_v32 }
 0x668   :  { %11852 = vmatmul.mubr.f32.vlgmr.msra.gmra.mxu0 %v3728_v27  ;;  %11865 = vmatprep.subr.mxu0 %v13100_v0  ;;  %v13984_v27 = vand.u32 4294901760, %v4639_v23 }
 0x669   :  { %11873 = vmatprep.mubr.msk.f32.mxu0 %vm13101_vm0, %v13100_v0  ;;  %11866 = vmatpush3.msra.mxu0 %v13877_v39  ;;  %v4273_v35 = vand.u32 4294901760, %v13895_v55  ;;  %v4267_v40 = vsub.f32 %v13892_v53, %v4266_v34  ;;  %v4281_v47 = vsub.f32 %v13898_v32, %v4280_v37 }
 0x66a   :  { %11867 = vmatprep.subr.mxu0 %v13100_v0  ;;  %v13996_v31 = vsub.f32 %v4639_v23, %v13984_v27 }
 0x66b   :  { %11868 = vmatpush3.msra.mxu0 %v13882_v46  ;;  %v4274_v43 = vsub.f32 %v13895_v55, %v4273_v35  ;;  %v4268_v51 = vand.u32 4294901760, %v4267_v40  ;;  %v4282_v54 = vand.u32 4294901760, %v4281_v47 }
 0x66c   :  { %11869 = vmatprep.subr.mxu0 %v13100_v0  ;;  %v4774_v42 = vand.u32 4294901760, %v13996_v31 }
 0x66d   :  { %11870 = vmatpush3.msra.mxu0 %v13884_v48  ;;  %v4275_v52 = vand.u32 4294901760, %v4274_v43  ;;  %11879 = vmatpush3.msra.mxu1 %v4268_v51 }
 0x66e   :  { %11871 = vmatprep.subr.mxu0 %v13100_v0  ;;  %11880 = vmatprep.subr.mxu1 %v13100_v0 }
 0x66f   :  { %11872 = vmatpush3.msra.mxu0 %v13886_v49  ;;  %11881 = vmatpush3.msra.mxu1 %v4275_v52 }
 0x670   :  { %11887 = vmatprep.subr.mxu0 %v13100_v0  ;;  %11882 = vmatprep.subr.mxu1 %v13100_v0 }
 0x671   :  { %11883 = vmatpush3.msra.mxu1 %v4282_v54 }
 0x672   :  { %11898 = vmatprep.subr.mxu1 %v13100_v0 }
 0x70e   :  { %v3825_v57 = vpop.f32.mrf.mxu1 }
 0x710   :  { %v11820_v58 = vpop.f32.mrf.mxu1 }
 0x716   :  { %v3982_v60 = vpop.f32.mrf.mxu1 }
 0x717   :  { %v3734_v63 = vpop.f32.mrf.mxu0 }
 0x718   :  { %v11842_v1 = vpop.f32.mrf.mxu1  ;;  %v3735_v4 = vadd.f32 %v3734_v63, %v3654_v3 }
 0x719   :  { %v11809_v2 = vpop.f32.mrf.mxu0 }
 0x71a   :  { %v3826_v7 = vadd.f32 %v3825_v57, %v3735_v4 }
 0x71f   :  { %v3905_v5 = vpop.f32.mrf.mxu0 }
 0x720   :  { %v4140_v6 = vpop.f32.mrf.mxu1  ;;  %v3906_v59 = vadd.f32 %v3905_v5, %v3826_v7 }
 0x721   :  { %v11831_v8 = vpop.f32.mrf.mxu0 }
 0x722   :  { %v11864_v56 = vpop.f32.mrf.mxu1  ;;  %v3983_v61 = vadd.f32 %v3982_v60, %v3906_v59  ;;  %v5136_v59 = vld [vmem:[#allocation11 + $0x18] sm:$0xff] }
 0x728   :  { %v4065_v62 = vpop.f32.mrf.mxu0 }
 0x729   :  { %v4066_v9 = vadd.f32 %v4065_v62, %v3983_v61  ;;  %v14075_v61 = vand.u32 4294901760, %v5136_v59  ;;  %v5135_v62 = vld [vmem:[#allocation11 + $0x10] sm:$0xff] }
 0x72a   :  { %v11853_v10 = vpop.f32.mrf.mxu0 }
 0x72b   :  { %v4141_v11 = vadd.f32 %v4140_v6, %v4066_v9  ;;  %v5134_v9 = vld [vmem:[#allocation11 + $0x8] sm:$0xff]  ;;  %v5133_v10 = vld [vmem:[#allocation11] sm:$0xff] }
 0x72d   :  { %12755 = vtanh.f32 %v4141_v11  ;;  %v14078_v11 = vsub.f32 %v5136_v59, %v14075_v61 }
 0x73a   :  { %v12756_v12 = vpop.eup %12755 }
 0x73b   :  { %v4151_v13 = vsel %vm215_vm1, %v12756_v12, 0  ;;  %v14080_v12 = vand.u32 4294901760, %v5135_v62 }
 0x73c   :  { %v4222_v14 = vand.u32 4294901760, %v4151_v13 }
 0x73e   :  { %v4223_v15 = vsub.f32 %v4151_v13, %v4222_v14  ;;  %11885 = vmatmul.mubr.f32.vlgmr.msra.gmra.mxu1 %v4222_v14  ;;  %v14082_v13 = vand.u32 4294901760, %v5134_v9 }
 0x73f   :  { %11899 = vmatpush3.msra.mxu1 %v13877_v39  ;;  %11906 = vmatprep.mubr.msk.f32.mxu1 %vm13101_vm0, %v13100_v0 }
 0x740   :  { %11900 = vmatprep.subr.mxu1 %v13100_v0  ;;  %v4224_v22 = vand.u32 4294901760, %v4223_v15 }
 0x741   :  { %11901 = vmatpush3.msra.mxu1 %v13882_v46 }
 0x742   :  { %11902 = vmatprep.subr.mxu1 %v13100_v0  ;;  %v4225_v16 = vsub.f32 %v4223_v15, %v4224_v22 }
 0x743   :  { %11903 = vmatpush3.msra.mxu1 %v13884_v48 }
 0x744   :  { %11904 = vmatprep.subr.mxu1 %v13100_v0  ;;  %v4226_v17 = vand.u32 4294901760, %v4225_v16  ;;  %v14093_v16 = vsub.f32 %v5134_v9, %v14082_v13 }
 0x745   :  { %11905 = vmatpush3.msra.mxu1 %v13886_v49 }
 0x746   :  { %11907 = vmatmul.mubr.f32.vlgmr.msra.gmra.mxu1 %v4224_v22  ;;  %11920 = vmatprep.subr.mxu1 %v13100_v0  ;;  %v14090_v22 = vsub.f32 %v5135_v62, %v14080_v12  ;;  %v5261_v20 = vand.u32 4294901760, %v14093_v16 }
 0x747   :  { %11874 = vmatmul.mubr.f32.vlgmr.msra.gmra.mxu0 %v4226_v17  ;;  %11921 = vmatpush3.msra.mxu1 %v13877_v39  ;;  %v4760_v39 = vand.u32 4294901760, %v13990_v29 }
 0x748   :  { %11888 = vmatpush3.msra.mxu0 %v13880_v45  ;;  %11922 = vmatprep.subr.mxu1 %v13100_v0 }
 0x749   :  { %11889 = vmatprep.subr.mxu0 %v13100_v0  ;;  %11923 = vmatpush3.msra.mxu1 %v13882_v46  ;;  %v4761_v45 = vsub.f32 %v13990_v29, %v4760_v39  ;;  %v4768_v46 = vsub.f32 %v13993_v30, %v4767_v41 }
 0x74a   :  { %11890 = vmatpush3.msra.mxu0 %v13892_v53  ;;  %11924 = vmatprep.subr.mxu1 %v13100_v0 }
 0x74b   :  { %11891 = vmatprep.subr.mxu0 %v13100_v0  ;;  %11925 = vmatpush3.msra.mxu1 %v13884_v48  ;;  %v4775_v48 = vsub.f32 %v13996_v31, %v4774_v42 }
 0x74c   :  { %11892 = vmatpush3.msra.mxu0 %v13895_v55  ;;  %11926 = vmatprep.subr.mxu1 %v13100_v0 }
 0x74d   :  { %11893 = vmatprep.subr.mxu0 %v13100_v0  ;;  %11895 = vmatprep.mubr.msk.f32.mxu0 %vm13101_vm0, %v13100_v0  ;;  %v4776_v53 = vand.u32 4294901760, %v4775_v48 }
 0x74e   :  { %11894 = vmatpush3.msra.mxu0 %v13898_v32  ;;  %11927 = vmatpush3.msra.mxu1 %v13886_v49  ;;  %v4762_v49 = vand.u32 4294901760, %v4761_v45 }
 0x74f   :  { %11928 = vmatprep.mubr.msk.f32.mxu1 %vm13101_vm0, %v13100_v0  ;;  %11896 = vmatmul.mubr.f32.vlgmr.msra.gmra.mxu0 %v4223_v15  ;;  %v5247_v15 = vand.u32 4294901760, %v14078_v11 }
 0x750   :  { %11909 = vmatprep.subr.mxu0 %v13100_v0  ;;  %11929 = vmatmul.mubr.f32.vlgmr.msra.gmra.mxu1 %v4222_v14 }
 0x751   :  { %11910 = vmatpush3.msra.mxu0 %v4259_v50  ;;  %11917 = vmatprep.mubr.msk.f32.mxu0 %vm13101_vm0, %v13100_v0  ;;  %v4769_v50 = vand.u32 4294901760, %v4768_v46  ;;  %v5248_v18 = vsub.f32 %v14078_v11, %v5247_v15 }
 0x752   :  { %11911 = vmatprep.subr.mxu0 %v13100_v0  ;;  %11942 = vmatprep.subr.mxu1 %v13100_v0 }
 0x753   :  { %11912 = vmatpush3.msra.mxu0 %v4266_v34  ;;  %11950 = vmatprep.mubr.msk.f32.mxu1 %vm13101_vm0, %v13100_v0  ;;  %v5249_v23 = vand.u32 4294901760, %v5248_v18  ;;  %v5674_v18 = vld [vmem:[#allocation13 + $0x10] sm:$0xff] }
 0x754   :  { %11913 = vmatprep.subr.mxu0 %v13100_v0  ;;  %11943 = vmatpush3.msra.mxu1 %v4755_v44  ;;  %v4643_v44 = vld [vmem:[%s15051_s8] sm:$0x1] }
 0x755   :  { %11914 = vmatpush3.msra.mxu0 %v4273_v35  ;;  %11944 = vmatprep.subr.mxu1 %v13100_v0 }
 0x756   :  { %11915 = vmatprep.subr.mxu0 %v13100_v0  ;;  %11945 = vmatpush3.msra.mxu1 %v4762_v49 }
 0x757   :  { %11916 = vmatpush3.msra.mxu0 %v4280_v37  ;;  %11946 = vmatprep.subr.mxu1 %v13100_v0 }
 0x758   :  { %11918 = vmatmul.mubr.f32.vlgmr.msra.gmra.mxu0 %v4222_v14  ;;  %11931 = vmatprep.subr.mxu0 %v13100_v0  ;;  %v14084_v14 = vand.u32 4294901760, %v5133_v10 }
 0x759   :  { %11939 = vmatprep.mubr.msk.f32.mxu0 %vm13101_vm0, %v13100_v0  ;;  %11932 = vmatpush3.msra.mxu0 %v13975_v19 }
 0x75a   :  { %11933 = vmatprep.subr.mxu0 %v13100_v0  ;;  %11947 = vmatpush3.msra.mxu1 %v4769_v50  ;;  %v14096_v17 = vsub.f32 %v5133_v10, %v14084_v14 }
 0x75b   :  { %11934 = vmatpush3.msra.mxu0 %v13980_v25  ;;  %11948 = vmatprep.subr.mxu1 %v13100_v0 }
 0x75c   :  { %11935 = vmatprep.subr.mxu0 %v13100_v0  ;;  %11949 = vmatpush3.msra.mxu1 %v4776_v53  ;;  %v5268_v21 = vand.u32 4294901760, %v14096_v17 }
 0x75d   :  { %11936 = vmatpush3.msra.mxu0 %v13982_v26  ;;  %11964 = vmatprep.subr.mxu1 %v13100_v0 }
 0x75e   :  { %11937 = vmatprep.subr.mxu0 %v13100_v0 }
 0x75f   :  { %11938 = vmatpush3.msra.mxu0 %v13984_v27 }
 0x760   :  { %11953 = vmatprep.subr.mxu0 %v13100_v0 }
 0x7fe   :  { %v4319_v55 = vpop.f32.mrf.mxu1 }
 0x800   :  { %v11886_v32 = vpop.f32.mrf.mxu1 }
 0x806   :  { %v4476_v33 = vpop.f32.mrf.mxu1 }
 0x807   :  { %v4228_v34 = vpop.f32.mrf.mxu0 }
 0x808   :  { %v11908_v35 = vpop.f32.mrf.mxu1  ;;  %v4229_v40 = vadd.f32 %v4228_v34, %v4149_v38 }
 0x809   :  { %v11875_v37 = vpop.f32.mrf.mxu0 }
 0x80a   :  { %v4320_v51 = vadd.f32 %v4319_v55, %v4229_v40 }
 0x80f   :  { %v4399_v43 = vpop.f32.mrf.mxu0 }
 0x810   :  { %v4634_v47 = vpop.f32.mrf.mxu1  ;;  %v4400_v57 = vadd.f32 %v4399_v43, %v4320_v51 }
 0x811   :  { %v11897_v52 = vpop.f32.mrf.mxu0 }
 0x812   :  { %v11930_v54 = vpop.f32.mrf.mxu1  ;;  %v4477_v58 = vadd.f32 %v4476_v33, %v4400_v57  ;;  %v5675_v57 = vld [vmem:[#allocation13 + $0x18] sm:$0xff] }
 0x818   :  { %v4559_v60 = vpop.f32.mrf.mxu0 }
 0x819   :  { %v4560_v63 = vadd.f32 %v4559_v60, %v4477_v58  ;;  %v14175_v58 = vand.u32 4294901760, %v5675_v57 }
 0x81a   :  { %v11919_v1 = vpop.f32.mrf.mxu0 }
 0x81b   :  { %v4635_v2 = vadd.f32 %v4634_v47, %v4560_v63  ;;  %v14178_v60 = vsub.f32 %v5675_v57, %v14175_v58 }
 0x81d   :  { %12757 = vtanh.f32 %v4635_v2  ;;  %v5786_v63 = vand.u32 4294901760, %v14178_v60 }
 0x81f   :  { %v5787_v1 = vsub.f32 %v14178_v60, %v5786_v63 }
 0x821   :  { %v5788_v2 = vand.u32 4294901760, %v5787_v1 }
 0x82a   :  { %v12758_v3 = vpop.eup %12757 }
 0x82b   :  { %v4645_v4 = vsel %vm215_vm1, %v12758_v3, 0 }
 0x82c   :  { %v4716_v5 = vand.u32 4294901760, %v4645_v4 }
 0x82e   :  { %v4717_v6 = vsub.f32 %v4645_v4, %v4716_v5  ;;  %11951 = vmatmul.mubr.f32.vlgmr.msra.gmra.mxu1 %v4716_v5 }
 0x82f   :  { %11965 = vmatpush3.msra.mxu1 %v13975_v19  ;;  %11972 = vmatprep.mubr.msk.f32.mxu1 %vm13101_vm0, %v13100_v0 }
 0x830   :  { %11966 = vmatprep.subr.mxu1 %v13100_v0  ;;  %v4718_v7 = vand.u32 4294901760, %v4717_v6 }
 0x831   :  { %11967 = vmatpush3.msra.mxu1 %v13980_v25 }
 0x832   :  { %11968 = vmatprep.subr.mxu1 %v13100_v0  ;;  %v4719_v8 = vsub.f32 %v4717_v6, %v4718_v7 }
 0x833   :  { %11969 = vmatpush3.msra.mxu1 %v13982_v26 }
 0x834   :  { %11970 = vmatprep.subr.mxu1 %v13100_v0  ;;  %v4720_v56 = vand.u32 4294901760, %v4719_v8 }
 0x835   :  { %11971 = vmatpush3.msra.mxu1 %v13984_v27 }
 0x836   :  { %11973 = vmatmul.mubr.f32.vlgmr.msra.gmra.mxu1 %v4718_v7  ;;  %11986 = vmatprep.subr.mxu1 %v13100_v0 }
 0x837   :  { %11940 = vmatmul.mubr.f32.vlgmr.msra.gmra.mxu0 %v4720_v56  ;;  %11987 = vmatpush3.msra.mxu1 %v13975_v19  ;;  %v5254_v19 = vand.u32 4294901760, %v14090_v22  ;;  %v5137_v56 = vld [vmem:[%s15053_s10] sm:$0x1]  ;;  %s13103_s10 = smov 96  }
 0x838   :  { %11954 = vmatpush3.msra.mxu0 %v13978_v24  ;;  %11988 = vmatprep.subr.mxu1 %v13100_v0 }
 0x839   :  { %11955 = vmatprep.subr.mxu0 %v13100_v0  ;;  %11989 = vmatpush3.msra.mxu1 %v13980_v25  ;;  %v5255_v24 = vsub.f32 %v14090_v22, %v5254_v19  ;;  %v5262_v25 = vsub.f32 %v14093_v16, %v5261_v20 }
 0x83a   :  { %11956 = vmatpush3.msra.mxu0 %v13990_v29  ;;  %11990 = vmatprep.subr.mxu1 %v13100_v0 }
 0x83b   :  { %11957 = vmatprep.subr.mxu0 %v13100_v0  ;;  %11991 = vmatpush3.msra.mxu1 %v13982_v26  ;;  %v5269_v26 = vsub.f32 %v14096_v17, %v5268_v21 }
 0x83c   :  { %11958 = vmatpush3.msra.mxu0 %v13993_v30  ;;  %11992 = vmatprep.subr.mxu1 %v13100_v0 }
 0x83d   :  { %11959 = vmatprep.subr.mxu0 %v13100_v0  ;;  %11961 = vmatprep.mubr.msk.f32.mxu0 %vm13101_vm0, %v13100_v0  ;;  %v5270_v29 = vand.u32 4294901760, %v5269_v26  ;;  %v5672_v26 = vld [vmem:[#allocation13] sm:$0xff] }
 0x83e   :  { %11960 = vmatpush3.msra.mxu0 %v13996_v31  ;;  %11993 = vmatpush3.msra.mxu1 %v13984_v27  ;;  %v5256_v27 = vand.u32 4294901760, %v5255_v24 }
 0x83f   :  { %11994 = vmatprep.mubr.msk.f32.mxu1 %vm13101_vm0, %v13100_v0  ;;  %11962 = vmatmul.mubr.f32.vlgmr.msra.gmra.mxu0 %v4717_v6 }
 0x840   :  { %11975 = vmatprep.subr.mxu0 %v13100_v0  ;;  %11995 = vmatmul.mubr.f32.vlgmr.msra.gmra.mxu1 %v4716_v5 }
 0x841   :  { %11976 = vmatpush3.msra.mxu0 %v4753_v28  ;;  %11983 = vmatprep.mubr.msk.f32.mxu0 %vm13101_vm0, %v13100_v0  ;;  %v5263_v28 = vand.u32 4294901760, %v5262_v25 }
 0x842   :  { %11977 = vmatprep.subr.mxu0 %v13100_v0  ;;  %12008 = vmatprep.subr.mxu1 %v13100_v0 }
 0x843   :  { %11978 = vmatpush3.msra.mxu0 %v4760_v39  ;;  %12016 = vmatprep.mubr.msk.f32.mxu1 %vm13101_vm0, %v13100_v0 }
 0x844   :  { %11979 = vmatprep.subr.mxu0 %v13100_v0  ;;  %12009 = vmatpush3.msra.mxu1 %v5249_v23 }
 0x845   :  { %11980 = vmatpush3.msra.mxu0 %v4767_v41  ;;  %12010 = vmatprep.subr.mxu1 %v13100_v0 }
 0x846   :  { %11981 = vmatprep.subr.mxu0 %v13100_v0  ;;  %12011 = vmatpush3.msra.mxu1 %v5256_v27 }
 0x847   :  { %11982 = vmatpush3.msra.mxu0 %v4774_v42  ;;  %12012 = vmatprep.subr.mxu1 %v13100_v0 }
 0x848   :  { %11984 = vmatmul.mubr.f32.vlgmr.msra.gmra.mxu0 %v4716_v5  ;;  %11997 = vmatprep.subr.mxu0 %v13100_v0 }
 0x849   :  { %12005 = vmatprep.mubr.msk.f32.mxu0 %vm13101_vm0, %v13100_v0  ;;  %11998 = vmatpush3.msra.mxu0 %v14075_v61 }
 0x84a   :  { %11999 = vmatprep.subr.mxu0 %v13100_v0  ;;  %12013 = vmatpush3.msra.mxu1 %v5263_v28 }
 0x84b   :  { %12000 = vmatpush3.msra.mxu0 %v14080_v12  ;;  %12014 = vmatprep.subr.mxu1 %v13100_v0 }
 0x84c   :  { %12001 = vmatprep.subr.mxu0 %v13100_v0  ;;  %12015 = vmatpush3.msra.mxu1 %v5270_v29  ;;  %v14208_v29 = vand.u32 4294901760, %v5672_v26 }
 0x84d   :  { %12002 = vmatpush3.msra.mxu0 %v14082_v13  ;;  %12030 = vmatprep.subr.mxu1 %v13100_v0 }
 0x84e   :  { %12003 = vmatprep.subr.mxu0 %v13100_v0 }
 0x84f   :  { %12004 = vmatpush3.msra.mxu0 %v14084_v14 }
 0x850   :  { %12019 = vmatprep.subr.mxu0 %v13100_v0 }
 0x8ee   :  { %v4813_v30 = vpop.f32.mrf.mxu1 }
 0x8f0   :  { %v11952_v31 = vpop.f32.mrf.mxu1 }
 0x8f1   :  { %v13102_v31 = vmov 1966171168  }
 0x8f6   :  { %v4970_v36 = vpop.f32.mrf.mxu1 }
 0x8f7   :  { %v4722_v39 = vpop.f32.mrf.mxu0 }
 0x8f8   :  { %v11974_v41 = vpop.f32.mrf.mxu1  ;;  %v4723_v45 = vadd.f32 %v4722_v39, %v4643_v44 }
 0x8f9   :  { %v11941_v42 = vpop.f32.mrf.mxu0 }
 0x8fa   :  { %v4814_v49 = vadd.f32 %v4813_v30, %v4723_v45  ;;  %v5642_v30 = vlaneseq  ;;  %v14217_v42 = vsub.f32 %v5672_v26, %v14208_v29  ;;  %v5676_v26 = vld [vmem:[%s15055_s12] sm:$0x1] }
 0x8ff   :  { %v4893_v46 = vpop.f32.mrf.mxu0 }
 0x900   :  { %v5128_v48 = vpop.f32.mrf.mxu1  ;;  %v4894_v55 = vadd.f32 %v4893_v46, %v4814_v49  ;;  %v5807_v46 = vand.u32 4294901760, %v14217_v42  ;;  %v14225_v49 = vshrl.u32 %v5642_v30, 7 }
 0x901   :  { %v11963_v50 = vpop.f32.mrf.mxu0 }
 0x902   :  { %v11996_v53 = vpop.f32.mrf.mxu1  ;;  %v4971_v32 = vadd.f32 %v4970_v36, %v4894_v55  ;;  %v5640_v36 = vunpack.c.l.s4 %v13102_v31 }
 0x903   :  { %v5808_v53 = vsub.f32 %v14217_v42, %v5807_v46 }
 0x905   :  { %v5809_v55 = vand.u32 4294901760, %v5808_v53 }
 0x908   :  { %v5053_v33 = vpop.f32.mrf.mxu0 }
 0x909   :  { %v5054_v34 = vadd.f32 %v5053_v33, %v4971_v32 }
 0x90a   :  { %v11985_v35 = vpop.f32.mrf.mxu0 }
 0x90b   :  { %v5129_v37 = vadd.f32 %v5128_v48, %v5054_v34  ;;  %v5641_v48 = vunpack.c.0.s8 %v5640_v36 }
 0x90d   :  { %12759 = vtanh.f32 %v5129_v37  ;;  %v5644_v32 = vsub.s32 %v5641_v48, %v14225_v49  ;;  %v5637_v37 = vld [vmem:[%s15079_s29] sm:$0x1] }
 0x91a   :  { %v12760_v38 = vpop.eup %12759 }
 0x91b   :  { %v5139_v40 = vsel %vm215_vm1, %v12760_v38, 0 }
 0x91c   :  { %v5210_v43 = vand.u32 4294901760, %v5139_v40 }
 0x91e   :  { %v5211_v47 = vsub.f32 %v5139_v40, %v5210_v43  ;;  %12017 = vmatmul.mubr.f32.vlgmr.msra.gmra.mxu1 %v5210_v43 }
 0x91f   :  { %12031 = vmatpush3.msra.mxu1 %v14075_v61  ;;  %12038 = vmatprep.mubr.msk.f32.mxu1 %vm13101_vm0, %v13100_v0 }
 0x920   :  { %12032 = vmatprep.subr.mxu1 %v13100_v0  ;;  %v5212_v51 = vand.u32 4294901760, %v5211_v47 }
 0x921   :  { %12033 = vmatpush3.msra.mxu1 %v14080_v12 }
 0x922   :  { %12034 = vmatprep.subr.mxu1 %v13100_v0  ;;  %v5213_v52 = vsub.f32 %v5211_v47, %v5212_v51 }
 0x923   :  { %12035 = vmatpush3.msra.mxu1 %v14082_v13 }
 0x924   :  { %12036 = vmatprep.subr.mxu1 %v13100_v0  ;;  %v5214_v54 = vand.u32 4294901760, %v5213_v52 }
 0x925   :  { %12037 = vmatpush3.msra.mxu1 %v14084_v14 }
 0x926   :  { %12039 = vmatmul.mubr.f32.vlgmr.msra.gmra.mxu1 %v5212_v51  ;;  %12052 = vmatprep.subr.mxu1 %v13100_v0 }
 0x927   :  { %12006 = vmatmul.mubr.f32.vlgmr.msra.gmra.mxu0 %v5214_v54  ;;  %12053 = vmatpush3.msra.mxu1 %v14075_v61 }
 0x928   :  { %12020 = vmatpush3.msra.mxu0 %v14078_v11  ;;  %12054 = vmatprep.subr.mxu1 %v13100_v0 }
 0x929   :  { %12021 = vmatprep.subr.mxu0 %v13100_v0  ;;  %12055 = vmatpush3.msra.mxu1 %v14080_v12 }
 0x92a   :  { %12022 = vmatpush3.msra.mxu0 %v14090_v22  ;;  %12056 = vmatprep.subr.mxu1 %v13100_v0 }
 0x92b   :  { %12023 = vmatprep.subr.mxu0 %v13100_v0  ;;  %12057 = vmatpush3.msra.mxu1 %v14082_v13 }
 0x92c   :  { %12024 = vmatpush3.msra.mxu0 %v14093_v16  ;;  %12058 = vmatprep.subr.mxu1 %v13100_v0 }
 0x92d   :  { %12025 = vmatprep.subr.mxu0 %v13100_v0  ;;  %12027 = vmatprep.mubr.msk.f32.mxu0 %vm13101_vm0, %v13100_v0 }
 0x92e   :  { %12026 = vmatpush3.msra.mxu0 %v14096_v17  ;;  %12059 = vmatpush3.msra.mxu1 %v14084_v14 }
 0x92f   :  { %12060 = vmatprep.mubr.msk.f32.mxu1 %vm13101_vm0, %v13100_v0  ;;  %12028 = vmatmul.mubr.f32.vlgmr.msra.gmra.mxu0 %v5211_v47 }
 0x930   :  { %12041 = vmatprep.subr.mxu0 %v13100_v0  ;;  %12061 = vmatmul.mubr.f32.vlgmr.msra.gmra.mxu1 %v5210_v43 }
 0x931   :  { %12042 = vmatpush3.msra.mxu0 %v5247_v15  ;;  %12049 = vmatprep.mubr.msk.f32.mxu0 %vm13101_vm0, %v13100_v0 }
 0x932   :  { %12043 = vmatprep.subr.mxu0 %v13100_v0  ;;  %12074 = vmatprep.subr.mxu1 %v13100_v0 }
 0x933   :  { %12044 = vmatpush3.msra.mxu0 %v5254_v19  ;;  %12082 = vmatprep.mubr.msk.f32.mxu1 %vm13101_vm0, %v13100_v0 }
 0x934   :  { %12045 = vmatprep.subr.mxu0 %v13100_v0  ;;  %12075 = vmatpush3.msra.mxu1 %v5788_v2  ;;  %v6167_v2 = vld [vmem:[#allocation14 + $0x8] sm:$0xff] }
 0x935   :  { %12046 = vmatpush3.msra.mxu0 %v5261_v20  ;;  %12076 = vmatprep.subr.mxu1 %v13100_v0  ;;  %v14193_v20 = vand.u32 4294901760, %v5674_v18 }
 0x936   :  { %12047 = vmatprep.subr.mxu0 %v13100_v0 }
 0x937   :  { %12048 = vmatpush3.msra.mxu0 %v5268_v21  ;;  %v5673_v21 = vld [vmem:[#allocation13 + $0x8] sm:$0xff]  ;;  %v14198_v24 = vsub.f32 %v5674_v18, %v14193_v20 }
 0x938   :  { %12050 = vmatmul.mubr.f32.vlgmr.msra.gmra.mxu0 %v5210_v43  ;;  %12063 = vmatprep.subr.mxu0 %v13100_v0  ;;  %v14200_v25 = vand.u32 4294901760, %v5673_v21 }
 0x939   :  { %12071 = vmatprep.mubr.msk.f32.mxu0 %vm13101_vm0, %v13100_v0  ;;  %12064 = vmatpush3.msra.mxu0 %v14175_v58  ;;  %v5793_v27 = vand.u32 4294901760, %v14198_v24 }
 0x93a   :  { %12065 = vmatprep.subr.mxu0 %v13100_v0  ;;  %v14206_v28 = vsub.f32 %v5673_v21, %v14200_v25 }
 0x93b   :  { %12066 = vmatpush3.msra.mxu0 %v14193_v20  ;;  %v5794_v39 = vsub.f32 %v14198_v24, %v5793_v27 }
 0x93c   :  { %12067 = vmatprep.subr.mxu0 %v13100_v0  ;;  %v5800_v41 = vand.u32 4294901760, %v14206_v28 }
 0x93d   :  { %12068 = vmatpush3.msra.mxu0 %v14200_v25  ;;  %v5795_v44 = vand.u32 4294901760, %v5794_v39 }
 0x93e   :  { %12069 = vmatprep.subr.mxu0 %v13100_v0  ;;  %v5801_v45 = vsub.f32 %v14206_v28, %v5800_v41 }
 0x93f   :  { %12070 = vmatpush3.msra.mxu0 %v14208_v29  ;;  %12077 = vmatpush3.msra.mxu1 %v5795_v44 }
 0x940   :  { %12085 = vmatprep.subr.mxu0 %v13100_v0  ;;  %v5802_v50 = vand.u32 4294901760, %v5801_v45  ;;  %12078 = vmatprep.subr.mxu1 %v13100_v0 }
 0x942   :  { %12079 = vmatpush3.msra.mxu1 %v5802_v50 }
 0x943   :  { %12080 = vmatprep.subr.mxu1 %v13100_v0 }
 0x944   :  { %12081 = vmatpush3.msra.mxu1 %v5809_v55 }
 0x945   :  { %12096 = vmatprep.subr.mxu1 %v13100_v0 }
 0x9de   :  { %v5307_v3 = vpop.f32.mrf.mxu1 }
 0x9e0   :  { %v12018_v4 = vpop.f32.mrf.mxu1 }
 0x9e6   :  { %v5464_v5 = vpop.f32.mrf.mxu1 }
 0x9e7   :  { %v5216_v6 = vpop.f32.mrf.mxu0 }
 0x9e8   :  { %v12040_v7 = vpop.f32.mrf.mxu1  ;;  %v5217_v59 = vadd.f32 %v5216_v6, %v5137_v56  ;;  %v14298_v6 = vand.u32 4294901760, %v6167_v2 }
 0x9e9   :  { %v12007_v8 = vpop.f32.mrf.mxu0 }
 0x9ea   :  { %v5308_v9 = vadd.f32 %v5307_v3, %v5217_v59  ;;  %v6166_v3 = vld [vmem:[#allocation14] sm:$0xff]  ;;  %v14309_v59 = vsub.f32 %v6167_v2, %v14298_v6 }
 0x9eb   :  { %v14300_v7 = vand.u32 4294901760, %v6166_v3 }
 0x9ef   :  { %v5387_v61 = vpop.f32.mrf.mxu0 }
 0x9f0   :  { %v5622_v62 = vpop.f32.mrf.mxu1  ;;  %v5388_v12 = vadd.f32 %v5387_v61, %v5308_v9  ;;  %v14312_v61 = vsub.f32 %v6166_v3, %v14300_v7 }
 0x9f1   :  { %v12029_v10 = vpop.f32.mrf.mxu0 }
 0x9f2   :  { %v12062_v11 = vpop.f32.mrf.mxu1  ;;  %v5465_v13 = vadd.f32 %v5464_v5, %v5388_v12  ;;  %v6294_v10 = vand.u32 4294901760, %v14309_v59 }
 0x9f3   :  { %v6301_v11 = vand.u32 4294901760, %v14312_v61 }
 0x9f8   :  { %v5547_v14 = vpop.f32.mrf.mxu0 }
 0x9f9   :  { %v5548_v15 = vadd.f32 %v5547_v14, %v5465_v13  ;;  %v6295_v14 = vsub.f32 %v14309_v59, %v6294_v10 }
 0x9fa   :  { %v12051_v22 = vpop.f32.mrf.mxu0 }
 0x9fb   :  { %v5623_v16 = vadd.f32 %v5622_v62, %v5548_v15  ;;  %v6302_v15 = vsub.f32 %v14312_v61, %v6301_v11 }
 0x9fd   :  { %12761 = vtanh.f32 %v5623_v16  ;;  %v6296_v16 = vand.u32 4294901760, %v6295_v14  ;;  %v6303_v18 = vand.u32 4294901760, %v6302_v15  ;;  %v6170_v15 = vld [vmem:[%s15057_s14] sm:$0x1] }
 0xa0a   :  { %v14190_v17 = vpop.eup %12761 }
 0xa0b   :  { %v5634_v19 = vmul.f32 0.5, %v14190_v17  ;;  %5628 = vst.msk [vmem:[#allocation20] sm:$0x1] %vm5627_vm2, %v14190_v17 }
 0xa0d   :  { %v5635_v23 = vmul.f32 1.442695, %v5634_v19 }
 0xa0f   :  { %12763 = vpow2.f32 %v5635_v23 }
 0xa1c   :  { %v12764_v33 = vpop.eup %12763 }
 0xa1d   :  { %v5645_v34 = vrot.slane %v12764_v33, %v5644_v32 }
 0xa1f   :  { %v5652_v35 = vrot.slane %v5645_v34, %v5644_v32 }
 0xa21   :  { %5653 = vrot.lane.b32.xlu0 %v5652_v35, %s13103_s10  ;;  %v6663_v35 = vld [vmem:[#allocation16 + $0x18] sm:$0xff] }
 0xa93   :  { %v5654_v38 = vpop.permute.xlu0 %5653 }
 0xa94   :  { %v5656_v40 = vmul.f32 %v5654_v38, %v5637_v37  ;;  %v14391_v37 = vand.u32 4294901760, %v6663_v35  ;;  %v6662_v38 = vld [vmem:[#allocation16 + $0x10] sm:$0xff] }
 0xa96   :  { %v14239_v43 = vadd.f32 %v14190_v17, %v5656_v40  ;;  %v6661_v40 = vld [vmem:[#allocation16 + $0x8] sm:$0xff] }
 0xa98   :  { %v5678_v47 = vsel %vm215_vm1, %v14239_v43, 0 }
 0xa99   :  { %v5749_v51 = vand.u32 4294901760, %v5678_v47 }
 0xa9b   :  { %v5750_v52 = vsub.f32 %v5678_v47, %v5749_v51  ;;  %12083 = vmatmul.mubr.f32.vlgmr.msra.gmra.mxu1 %v5749_v51  ;;  %v6660_v47 = vld [vmem:[#allocation16] sm:$0xff] }
 0xa9c   :  { %12097 = vmatpush3.msra.mxu1 %v14175_v58  ;;  %12104 = vmatprep.mubr.msk.f32.mxu1 %vm13101_vm0, %v13100_v0 }
 0xa9d   :  { %12098 = vmatprep.subr.mxu1 %v13100_v0  ;;  %v5751_v54 = vand.u32 4294901760, %v5750_v52 }
 0xa9e   :  { %12099 = vmatpush3.msra.mxu1 %v14193_v20 }
 0xa9f   :  { %12100 = vmatprep.subr.mxu1 %v13100_v0  ;;  %v5752_v57 = vsub.f32 %v5750_v52, %v5751_v54 }
 0xaa0   :  { %12101 = vmatpush3.msra.mxu1 %v14200_v25 }
 0xaa1   :  { %12102 = vmatprep.subr.mxu1 %v13100_v0  ;;  %v5753_v1 = vand.u32 4294901760, %v5752_v57  ;;  %v14400_v57 = vand.u32 4294901760, %v6660_v47 }
 0xaa2   :  { %12103 = vmatpush3.msra.mxu1 %v14208_v29 }
 0xaa3   :  { %12105 = vmatmul.mubr.f32.vlgmr.msra.gmra.mxu1 %v5751_v54  ;;  %12118 = vmatprep.subr.mxu1 %v13100_v0  ;;  %v14398_v54 = vand.u32 4294901760, %v6661_v40 }
 0xaa4   :  { %12072 = vmatmul.mubr.f32.vlgmr.msra.gmra.mxu0 %v5753_v1  ;;  %12119 = vmatpush3.msra.mxu1 %v14175_v58  ;;  %v6169_v58 = vld [vmem:[#allocation14 + $0x18] sm:$0xff] }
 0xaa5   :  { %12086 = vmatpush3.msra.mxu0 %v14178_v60  ;;  %12120 = vmatprep.subr.mxu1 %v13100_v0  ;;  %v14291_v60 = vand.u32 4294901760, %v6169_v58 }
 0xaa6   :  { %12087 = vmatprep.subr.mxu0 %v13100_v0  ;;  %12121 = vmatpush3.msra.mxu1 %v14193_v20 }
 0xaa7   :  { %12088 = vmatpush3.msra.mxu0 %v14198_v24  ;;  %12122 = vmatprep.subr.mxu1 %v13100_v0  ;;  %v14294_v4 = vsub.f32 %v6169_v58, %v14291_v60 }
 0xaa8   :  { %12089 = vmatprep.subr.mxu0 %v13100_v0  ;;  %12123 = vmatpush3.msra.mxu1 %v14200_v25 }
 0xaa9   :  { %12090 = vmatpush3.msra.mxu0 %v14206_v28  ;;  %12124 = vmatprep.subr.mxu1 %v13100_v0  ;;  %v6280_v8 = vand.u32 4294901760, %v14294_v4 }
 0xaaa   :  { %12091 = vmatprep.subr.mxu0 %v13100_v0  ;;  %12093 = vmatprep.mubr.msk.f32.mxu0 %vm13101_vm0, %v13100_v0 }
 0xaab   :  { %12092 = vmatpush3.msra.mxu0 %v14217_v42  ;;  %12125 = vmatpush3.msra.mxu1 %v14208_v29  ;;  %v6281_v62 = vsub.f32 %v14294_v4, %v6280_v8 }
 0xaac   :  { %12126 = vmatprep.mubr.msk.f32.mxu1 %vm13101_vm0, %v13100_v0  ;;  %12094 = vmatmul.mubr.f32.vlgmr.msra.gmra.mxu0 %v5750_v52  ;;  %v14396_v52 = vand.u32 4294901760, %v6662_v38 }
 0xaad   :  { %12107 = vmatprep.subr.mxu0 %v13100_v0  ;;  %12127 = vmatmul.mubr.f32.vlgmr.msra.gmra.mxu1 %v5749_v51  ;;  %v6282_v12 = vand.u32 4294901760, %v6281_v62 }
 0xaae   :  { %12108 = vmatpush3.msra.mxu0 %v5786_v63  ;;  %12115 = vmatprep.mubr.msk.f32.mxu0 %vm13101_vm0, %v13100_v0  ;;  %v6168_v63 = vld [vmem:[#allocation14 + $0x10] sm:$0xff]  ;;  %v14406_v58 = vsub.f32 %v6662_v38, %v14396_v52 }
 0xaaf   :  { %12109 = vmatprep.subr.mxu0 %v13100_v0  ;;  %12140 = vmatprep.subr.mxu1 %v13100_v0  ;;  %v14296_v5 = vand.u32 4294901760, %v6168_v63 }
 0xab0   :  { %12110 = vmatpush3.msra.mxu0 %v5793_v27  ;;  %12148 = vmatprep.mubr.msk.f32.mxu1 %vm13101_vm0, %v13100_v0  ;;  %v6781_v3 = vand.u32 4294901760, %v14406_v58 }
 0xab1   :  { %12111 = vmatprep.subr.mxu0 %v13100_v0  ;;  %v14306_v56 = vsub.f32 %v6168_v63, %v14296_v5  ;;  %12141 = vmatpush3.msra.mxu1 %v6282_v12  ;;  %v14412_v63 = vsub.f32 %v6660_v47, %v14400_v57 }
 0xab2   :  { %12112 = vmatpush3.msra.mxu0 %v5800_v41  ;;  %12142 = vmatprep.subr.mxu1 %v13100_v0 }
 0xab3   :  { %12113 = vmatprep.subr.mxu0 %v13100_v0  ;;  %v6287_v9 = vand.u32 4294901760, %v14306_v56 }
 0xab4   :  { %12114 = vmatpush3.msra.mxu0 %v5807_v46 }
 0xab5   :  { %12116 = vmatmul.mubr.f32.vlgmr.msra.gmra.mxu0 %v5749_v51  ;;  %12129 = vmatprep.subr.mxu0 %v13100_v0  ;;  %v6288_v13 = vsub.f32 %v14306_v56, %v6287_v9  ;;  %v14394_v51 = vsub.f32 %v6663_v35, %v14391_v37 }
 0xab6   :  { %12137 = vmatprep.mubr.msk.f32.mxu0 %vm13101_vm0, %v13100_v0  ;;  %12130 = vmatpush3.msra.mxu0 %v14291_v60 }
 0xab7   :  { %12131 = vmatprep.subr.mxu0 %v13100_v0  ;;  %v6289_v22 = vand.u32 4294901760, %v6288_v13  ;;  %v6774_v1 = vand.u32 4294901760, %v14394_v51 }
 0xab8   :  { %12132 = vmatpush3.msra.mxu0 %v14296_v5 }
 0xab9   :  { %12133 = vmatprep.subr.mxu0 %v13100_v0  ;;  %12143 = vmatpush3.msra.mxu1 %v6289_v22  ;;  %v6775_v2 = vsub.f32 %v14394_v51, %v6774_v1 }
 0xaba   :  { %12134 = vmatpush3.msra.mxu0 %v14298_v6  ;;  %12144 = vmatprep.subr.mxu1 %v13100_v0 }
 0xabb   :  { %12135 = vmatprep.subr.mxu0 %v13100_v0  ;;  %12145 = vmatpush3.msra.mxu1 %v6296_v16 }
 0xabc   :  { %12136 = vmatpush3.msra.mxu0 %v14300_v7  ;;  %12146 = vmatprep.subr.mxu1 %v13100_v0 }
 0xabd   :  { %12151 = vmatprep.subr.mxu0 %v13100_v0  ;;  %12147 = vmatpush3.msra.mxu1 %v6303_v18 }
 0xabe   :  { %12162 = vmatprep.subr.mxu1 %v13100_v0 }
 0xb5b   :  { %v5846_v19 = vpop.f32.mrf.mxu1 }
 0xb5d   :  { %v12084_v20 = vpop.f32.mrf.mxu1 }
 0xb63   :  { %v6003_v21 = vpop.f32.mrf.mxu1 }
 0xb64   :  { %v5755_v23 = vpop.f32.mrf.mxu0 }
 0xb65   :  { %v12106_v24 = vpop.f32.mrf.mxu1  ;;  %v5756_v27 = vadd.f32 %v5755_v23, %v5676_v26 }
 0xb66   :  { %v12073_v25 = vpop.f32.mrf.mxu0 }
 0xb67   :  { %v5847_v30 = vadd.f32 %v5846_v19, %v5756_v27 }
 0xb6c   :  { %v5926_v28 = vpop.f32.mrf.mxu0 }
 0xb6d   :  { %v6161_v29 = vpop.f32.mrf.mxu1  ;;  %v5927_v39 = vadd.f32 %v5926_v28, %v5847_v30 }
 0xb6e   :  { %v12095_v31 = vpop.f32.mrf.mxu0 }
 0xb6f   :  { %v12128_v36 = vpop.f32.mrf.mxu1  ;;  %v6004_v41 = vadd.f32 %v6003_v21, %v5927_v39 }
 0xb75   :  { %v6086_v42 = vpop.f32.mrf.mxu0 }
 0xb76   :  { %v6087_v44 = vadd.f32 %v6086_v42, %v6004_v41 }
 0xb77   :  { %v12117_v45 = vpop.f32.mrf.mxu0 }
 0xb78   :  { %v6162_v46 = vadd.f32 %v6161_v29, %v6087_v44  ;;  %v7157_v44 = vld [vmem:[#allocation17 + $0x18] sm:$0xff] }
 0xb79   :  { %v14491_v45 = vand.u32 4294901760, %v7157_v44 }
 0xb7a   :  { %12765 = vtanh.f32 %v6162_v46  ;;  %v7156_v46 = vld [vmem:[#allocation17 + $0x10] sm:$0xff] }
 0xb87   :  { %v12766_v48 = vpop.eup %12765 }
 0xb88   :  { %v6172_v50 = vsel %vm215_vm1, %v12766_v48, 0  ;;  %v7155_v48 = vld [vmem:[#allocation17 + $0x8] sm:$0xff] }
 0xb89   :  { %v6243_v53 = vand.u32 4294901760, %v6172_v50 }
 0xb8b   :  { %v6244_v55 = vsub.f32 %v6172_v50, %v6243_v53  ;;  %12149 = vmatmul.mubr.f32.vlgmr.msra.gmra.mxu1 %v6243_v53  ;;  %v7154_v50 = vld [vmem:[#allocation17] sm:$0xff] }
 0xb8c   :  { %12163 = vmatpush3.msra.mxu1 %v14291_v60  ;;  %12170 = vmatprep.mubr.msk.f32.mxu1 %vm13101_vm0, %v13100_v0 }
 0xb8d   :  { %12164 = vmatprep.subr.mxu1 %v13100_v0  ;;  %v6245_v32 = vand.u32 4294901760, %v6244_v55 }
 0xb8e   :  { %12165 = vmatpush3.msra.mxu1 %v14296_v5 }
 0xb8f   :  { %12166 = vmatprep.subr.mxu1 %v13100_v0  ;;  %v6246_v33 = vsub.f32 %v6244_v55, %v6245_v32 }
 0xb90   :  { %12167 = vmatpush3.msra.mxu1 %v14298_v6 }
 0xb91   :  { %12168 = vmatprep.subr.mxu1 %v13100_v0  ;;  %v6247_v34 = vand.u32 4294901760, %v6246_v33  ;;  %v14500_v33 = vand.u32 4294901760, %v7154_v50 }
 0xb92   :  { %12169 = vmatpush3.msra.mxu1 %v14300_v7 }
 0xb93   :  { %12171 = vmatmul.mubr.f32.vlgmr.msra.gmra.mxu1 %v6245_v32  ;;  %12184 = vmatprep.subr.mxu1 %v13100_v0  ;;  %v14498_v32 = vand.u32 4294901760, %v7155_v48  ;;  %v14514_v38 = vsub.f32 %v7154_v50, %v14500_v33 }
 0xb94   :  { %12138 = vmatmul.mubr.f32.vlgmr.msra.gmra.mxu0 %v6247_v34  ;;  %12185 = vmatpush3.msra.mxu1 %v14291_v60  ;;  %v14409_v60 = vsub.f32 %v6661_v40, %v14398_v54 }
 0xb95   :  { %12152 = vmatpush3.msra.mxu0 %v14294_v4  ;;  %12186 = vmatprep.subr.mxu1 %v13100_v0 }
 0xb96   :  { %12153 = vmatprep.subr.mxu0 %v13100_v0  ;;  %12187 = vmatpush3.msra.mxu1 %v14296_v5  ;;  %v6788_v4 = vand.u32 4294901760, %v14409_v60  ;;  %v6795_v5 = vand.u32 4294901760, %v14412_v63 }
 0xb97   :  { %12154 = vmatpush3.msra.mxu0 %v14306_v56  ;;  %12188 = vmatprep.subr.mxu1 %v13100_v0 }
 0xb98   :  { %12155 = vmatprep.subr.mxu0 %v13100_v0  ;;  %12189 = vmatpush3.msra.mxu1 %v14298_v6  ;;  %v6776_v6 = vand.u32 4294901760, %v6775_v2  ;;  %v6796_v56 = vsub.f32 %v14412_v63, %v6795_v5 }
 0xb99   :  { %12156 = vmatpush3.msra.mxu0 %v14309_v59  ;;  %12190 = vmatprep.subr.mxu1 %v13100_v0 }
 0xb9a   :  { %12157 = vmatprep.subr.mxu0 %v13100_v0  ;;  %12159 = vmatprep.mubr.msk.f32.mxu0 %vm13101_vm0, %v13100_v0  ;;  %v6797_v62 = vand.u32 4294901760, %v6796_v56  ;;  %v6664_v56 = vld [vmem:[%s15059_s16] sm:$0x1] }
 0xb9b   :  { %12158 = vmatpush3.msra.mxu0 %v14312_v61  ;;  %12191 = vmatpush3.msra.mxu1 %v14300_v7  ;;  %v6782_v7 = vsub.f32 %v14406_v58, %v6781_v3 }
 0xb9c   :  { %12192 = vmatprep.mubr.msk.f32.mxu1 %vm13101_vm0, %v13100_v0  ;;  %12160 = vmatmul.mubr.f32.vlgmr.msra.gmra.mxu0 %v6244_v55  ;;  %v14496_v55 = vand.u32 4294901760, %v7156_v46 }
 0xb9d   :  { %12173 = vmatprep.subr.mxu0 %v13100_v0  ;;  %12193 = vmatmul.mubr.f32.vlgmr.msra.gmra.mxu1 %v6243_v53  ;;  %v6783_v59 = vand.u32 4294901760, %v6782_v7 }
 0xb9e   :  { %12174 = vmatpush3.msra.mxu0 %v6280_v8  ;;  %12181 = vmatprep.mubr.msk.f32.mxu0 %vm13101_vm0, %v13100_v0  ;;  %v6789_v8 = vsub.f32 %v14409_v60, %v6788_v4  ;;  %v14508_v35 = vsub.f32 %v7156_v46, %v14496_v55 }
 0xb9f   :  { %12175 = vmatprep.subr.mxu0 %v13100_v0  ;;  %12206 = vmatprep.subr.mxu1 %v13100_v0 }
 0xba0   :  { %12176 = vmatpush3.msra.mxu0 %v6287_v9  ;;  %12214 = vmatprep.mubr.msk.f32.mxu1 %vm13101_vm0, %v13100_v0  ;;  %v6790_v61 = vand.u32 4294901760, %v6789_v8  ;;  %v14521_v47 = vand.u32 4294901760, %v14508_v35 }
 0xba1   :  { %12177 = vmatprep.subr.mxu0 %v13100_v0  ;;  %12207 = vmatpush3.msra.mxu1 %v6776_v6 }
 0xba2   :  { %12178 = vmatpush3.msra.mxu0 %v6294_v10  ;;  %12208 = vmatprep.subr.mxu1 %v13100_v0 }
 0xba3   :  { %12179 = vmatprep.subr.mxu0 %v13100_v0  ;;  %12209 = vmatpush3.msra.mxu1 %v6783_v59 }
 0xba4   :  { %12180 = vmatpush3.msra.mxu0 %v6301_v11  ;;  %12210 = vmatprep.subr.mxu1 %v13100_v0 }
 0xba5   :  { %12182 = vmatmul.mubr.f32.vlgmr.msra.gmra.mxu0 %v6243_v53  ;;  %12195 = vmatprep.subr.mxu0 %v13100_v0  ;;  %v14494_v53 = vsub.f32 %v7157_v44, %v14491_v45 }
 0xba6   :  { %12203 = vmatprep.mubr.msk.f32.mxu0 %vm13101_vm0, %v13100_v0  ;;  %12196 = vmatpush3.msra.mxu0 %v14391_v37 }
 0xba7   :  { %12197 = vmatprep.subr.mxu0 %v13100_v0  ;;  %12211 = vmatpush3.msra.mxu1 %v6790_v61  ;;  %v14505_v34 = vand.u32 4294901760, %v14494_v53 }
 0xba8   :  { %12198 = vmatpush3.msra.mxu0 %v14396_v52  ;;  %12212 = vmatprep.subr.mxu1 %v13100_v0 }
 0xba9   :  { %12199 = vmatprep.subr.mxu0 %v13100_v0  ;;  %12213 = vmatpush3.msra.mxu1 %v6797_v62  ;;  %v7269_v40 = vsub.f32 %v14494_v53, %v14505_v34 }
 0xbaa   :  { %12200 = vmatpush3.msra.mxu0 %v14398_v54  ;;  %12228 = vmatprep.subr.mxu1 %v13100_v0 }
 0xbab   :  { %12201 = vmatprep.subr.mxu0 %v13100_v0 }
 0xbac   :  { %12202 = vmatpush3.msra.mxu0 %v14400_v57 }
 0xbad   :  { %12217 = vmatprep.subr.mxu0 %v13100_v0 }
 0xc4b   :  { %v6340_v9 = vpop.f32.mrf.mxu1 }
 0xc4d   :  { %v12150_v10 = vpop.f32.mrf.mxu1 }
 0xc53   :  { %v6497_v11 = vpop.f32.mrf.mxu1 }
 0xc54   :  { %v6249_v12 = vpop.f32.mrf.mxu0 }
 0xc55   :  { %v12172_v13 = vpop.f32.mrf.mxu1  ;;  %v6250_v22 = vadd.f32 %v6249_v12, %v6170_v15 }
 0xc56   :  { %v12139_v14 = vpop.f32.mrf.mxu0 }
 0xc57   :  { %v6341_v19 = vadd.f32 %v6340_v9, %v6250_v22 }
 0xc5c   :  { %v6420_v16 = vpop.f32.mrf.mxu0 }
 0xc5d   :  { %v6655_v18 = vpop.f32.mrf.mxu1  ;;  %v6421_v23 = vadd.f32 %v6420_v16, %v6341_v19 }
 0xc5e   :  { %v12161_v20 = vpop.f32.mrf.mxu0 }
 0xc5f   :  { %v12194_v21 = vpop.f32.mrf.mxu1  ;;  %v6498_v24 = vadd.f32 %v6497_v11, %v6421_v23 }
 0xc65   :  { %v6580_v25 = vpop.f32.mrf.mxu0 }
 0xc66   :  { %v6581_v26 = vadd.f32 %v6580_v25, %v6498_v24 }
 0xc67   :  { %v12183_v27 = vpop.f32.mrf.mxu0 }
 0xc68   :  { %v6656_v28 = vadd.f32 %v6655_v18, %v6581_v26 }
 0xc6a   :  { %12767 = vtanh.f32 %v6656_v28 }
 0xc77   :  { %v12768_v29 = vpop.eup %12767 }
 0xc78   :  { %v6666_v30 = vsel %vm215_vm1, %v12768_v29, 0 }
 0xc79   :  { %v6737_v31 = vand.u32 4294901760, %v6666_v30 }
 0xc7b   :  { %v6738_v36 = vsub.f32 %v6666_v30, %v6737_v31  ;;  %12215 = vmatmul.mubr.f32.vlgmr.msra.gmra.mxu1 %v6737_v31 }
 0xc7c   :  { %12229 = vmatpush3.msra.mxu1 %v14391_v37  ;;  %12236 = vmatprep.mubr.msk.f32.mxu1 %vm13101_vm0, %v13100_v0 }
 0xc7d   :  { %12230 = vmatprep.subr.mxu1 %v13100_v0  ;;  %v6739_v39 = vand.u32 4294901760, %v6738_v36 }
 0xc7e   :  { %12231 = vmatpush3.msra.mxu1 %v14396_v52 }
 0xc7f   :  { %12232 = vmatprep.subr.mxu1 %v13100_v0  ;;  %v6740_v41 = vsub.f32 %v6738_v36, %v6739_v39 }
 0xc80   :  { %12233 = vmatpush3.msra.mxu1 %v14398_v54 }
 0xc81   :  { %12234 = vmatprep.subr.mxu1 %v13100_v0  ;;  %v6741_v42 = vand.u32 4294901760, %v6740_v41 }
 0xc82   :  { %12235 = vmatpush3.msra.mxu1 %v14400_v57 }
 0xc83   :  { %12237 = vmatmul.mubr.f32.vlgmr.msra.gmra.mxu1 %v6739_v39  ;;  %12250 = vmatprep.subr.mxu1 %v13100_v0 }
 0xc84   :  { %12204 = vmatmul.mubr.f32.vlgmr.msra.gmra.mxu0 %v6741_v42  ;;  %12251 = vmatpush3.msra.mxu1 %v14391_v37  ;;  %v14511_v37 = vsub.f32 %v7155_v48, %v14498_v32 }
 0xc85   :  { %12218 = vmatpush3.msra.mxu0 %v14394_v51  ;;  %12252 = vmatprep.subr.mxu1 %v13100_v0 }
 0xc86   :  { %12219 = vmatprep.subr.mxu0 %v13100_v0  ;;  %12253 = vmatpush3.msra.mxu1 %v14396_v52  ;;  %v14524_v51 = vand.u32 4294901760, %v14511_v37  ;;  %v14527_v52 = vand.u32 4294901760, %v14514_v38 }
 0xc87   :  { %12220 = vmatpush3.msra.mxu0 %v14406_v58  ;;  %12254 = vmatprep.subr.mxu1 %v13100_v0 }
 0xc88   :  { %12221 = vmatprep.subr.mxu0 %v13100_v0  ;;  %12255 = vmatpush3.msra.mxu1 %v14398_v54  ;;  %v14531_v54 = vand.u32 4294901760, %v7269_v40  ;;  %v7290_v58 = vsub.f32 %v14514_v38, %v14527_v52 }
 0xc89   :  { %12222 = vmatpush3.msra.mxu0 %v14409_v60  ;;  %12256 = vmatprep.subr.mxu1 %v13100_v0 }
 0xc8a   :  { %12223 = vmatprep.subr.mxu0 %v13100_v0  ;;  %12225 = vmatprep.mubr.msk.f32.mxu0 %vm13101_vm0, %v13100_v0  ;;  %v14548_v2 = vand.u32 4294901760, %v7290_v58 }
 0xc8b   :  { %12224 = vmatpush3.msra.mxu0 %v14412_v63  ;;  %12257 = vmatpush3.msra.mxu1 %v14400_v57  ;;  %v7276_v57 = vsub.f32 %v14508_v35, %v14521_v47 }
 0xc8c   :  { %12258 = vmatprep.mubr.msk.f32.mxu1 %vm13101_vm0, %v13100_v0  ;;  %12226 = vmatmul.mubr.f32.vlgmr.msra.gmra.mxu0 %v6738_v36  ;;  %v14622_v36 = vld [vmem:[%s15061_s18] sm:$0x1] }
 0xc8d   :  { %12239 = vmatprep.subr.mxu0 %v13100_v0  ;;  %12259 = vmatmul.mubr.f32.vlgmr.msra.gmra.mxu1 %v6737_v31  ;;  %v14542_v60 = vand.u32 4294901760, %v7276_v57 }
 0xc8e   :  { %12240 = vmatpush3.msra.mxu0 %v6774_v1  ;;  %12247 = vmatprep.mubr.msk.f32.mxu0 %vm13101_vm0, %v13100_v0  ;;  %v7283_v1 = vsub.f32 %v14511_v37, %v14524_v51 }
 0xc8f   :  { %12241 = vmatprep.subr.mxu0 %v13100_v0  ;;  %12272 = vmatprep.subr.mxu1 %v13100_v0 }
 0xc90   :  { %12242 = vmatpush3.msra.mxu0 %v6781_v3  ;;  %12280 = vmatprep.mubr.msk.f32.mxu1 %vm13101_vm0, %v13100_v0  ;;  %v14544_v63 = vand.u32 4294901760, %v7283_v1 }
 0xc91   :  { %12243 = vmatprep.subr.mxu0 %v13100_v0  ;;  %12273 = vmatpush3.msra.mxu1 %v14531_v54 }
 0xc92   :  { %12244 = vmatpush3.msra.mxu0 %v6788_v4  ;;  %12274 = vmatprep.subr.mxu1 %v13100_v0 }
 0xc93   :  { %12245 = vmatprep.subr.mxu0 %v13100_v0  ;;  %12275 = vmatpush3.msra.mxu1 %v14542_v60 }
 0xc94   :  { %12246 = vmatpush3.msra.mxu0 %v6795_v5  ;;  %12276 = vmatprep.subr.mxu1 %v13100_v0 }
 0xc95   :  { %12248 = vmatmul.mubr.f32.vlgmr.msra.gmra.mxu0 %v6737_v31  ;;  %12261 = vmatprep.subr.mxu0 %v13100_v0 }
 0xc96   :  { %12269 = vmatprep.mubr.msk.f32.mxu0 %vm13101_vm0, %v13100_v0  ;;  %12262 = vmatpush3.msra.mxu0 %v14491_v45 }
 0xc97   :  { %12263 = vmatprep.subr.mxu0 %v13100_v0  ;;  %12277 = vmatpush3.msra.mxu1 %v14544_v63 }
 0xc98   :  { %12264 = vmatpush3.msra.mxu0 %v14496_v55  ;;  %12278 = vmatprep.subr.mxu1 %v13100_v0 }
 0xc99   :  { %12265 = vmatprep.subr.mxu0 %v13100_v0  ;;  %12279 = vmatpush3.msra.mxu1 %v14548_v2 }
 0xc9a   :  { %12266 = vmatpush3.msra.mxu0 %v14498_v32  ;;  %12294 = vmatprep.subr.mxu1 %v13100_v0 }
 0xc9b   :  { %12267 = vmatprep.subr.mxu0 %v13100_v0 }
 0xc9c   :  { %12268 = vmatpush3.msra.mxu0 %v14500_v33 }
 0xc9d   :  { %12283 = vmatprep.subr.mxu0 %v13100_v0 }
 0xd3b   :  { %v6834_v3 = vpop.f32.mrf.mxu1 }
 0xd3d   :  { %v12216_v4 = vpop.f32.mrf.mxu1 }
 0xd43   :  { %v6991_v5 = vpop.f32.mrf.mxu1 }
 0xd44   :  { %v6743_v6 = vpop.f32.mrf.mxu0 }
 0xd45   :  { %v12238_v7 = vpop.f32.mrf.mxu1  ;;  %v6744_v59 = vadd.f32 %v6743_v6, %v6664_v56 }
 0xd46   :  { %v12205_v8 = vpop.f32.mrf.mxu0 }
 0xd47   :  { %v6835_v9 = vadd.f32 %v6834_v3, %v6744_v59 }
 0xd4c   :  { %v6914_v61 = vpop.f32.mrf.mxu0 }
 0xd4d   :  { %v7149_v62 = vpop.f32.mrf.mxu1  ;;  %v6915_v12 = vadd.f32 %v6914_v61, %v6835_v9 }
 0xd4e   :  { %v12227_v10 = vpop.f32.mrf.mxu0 }
 0xd4f   :  { %v12260_v11 = vpop.f32.mrf.mxu1  ;;  %v6992_v13 = vadd.f32 %v6991_v5, %v6915_v12 }
 0xd55   :  { %v7074_v14 = vpop.f32.mrf.mxu0 }
 0xd56   :  { %v7075_v15 = vadd.f32 %v7074_v14, %v6992_v13 }
 0xd57   :  { %v12249_v22 = vpop.f32.mrf.mxu0 }
 0xd58   :  { %v7150_v16 = vadd.f32 %v7149_v62, %v7075_v15 }
 0xd5a   :  { %12769 = vtanh.f32 %v7150_v16 }
 0xd67   :  { %v12770_v18 = vpop.eup %12769 }
 0xd68   :  { %v7160_v19 = vsel %vm215_vm1, %v12770_v18, 0 }
 0xd69   :  { %v7231_v20 = vand.u32 4294901760, %v7160_v19 }
 0xd6b   :  { %v7232_v21 = vsub.f32 %v7160_v19, %v7231_v20  ;;  %12281 = vmatmul.mubr.f32.vlgmr.msra.gmra.mxu1 %v7231_v20 }
 0xd6c   :  { %12295 = vmatpush3.msra.mxu1 %v14491_v45  ;;  %12302 = vmatprep.mubr.msk.f32.mxu1 %vm13101_vm0, %v13100_v0 }
 0xd6d   :  { %12296 = vmatprep.subr.mxu1 %v13100_v0  ;;  %v7233_v23 = vand.u32 4294901760, %v7232_v21 }
 0xd6e   :  { %12297 = vmatpush3.msra.mxu1 %v14496_v55 }
 0xd6f   :  { %12298 = vmatprep.subr.mxu1 %v13100_v0  ;;  %v7234_v24 = vsub.f32 %v7232_v21, %v7233_v23 }
 0xd70   :  { %12299 = vmatpush3.msra.mxu1 %v14498_v32 }
 0xd71   :  { %12300 = vmatprep.subr.mxu1 %v13100_v0  ;;  %v7235_v25 = vand.u32 4294901760, %v7234_v24 }
 0xd72   :  { %12301 = vmatpush3.msra.mxu1 %v14500_v33 }
 0xd73   :  { %12303 = vmatmul.mubr.f32.vlgmr.msra.gmra.mxu1 %v7233_v23  ;;  %12316 = vmatprep.subr.mxu1 %v13100_v0 }
 0xd74   :  { %12270 = vmatmul.mubr.f32.vlgmr.msra.gmra.mxu0 %v7235_v25  ;;  %12317 = vmatpush3.msra.mxu1 %v14491_v45 }
 0xd75   :  { %12284 = vmatpush3.msra.mxu0 %v14494_v53  ;;  %12318 = vmatprep.subr.mxu1 %v13100_v0 }
 0xd76   :  { %12285 = vmatprep.subr.mxu0 %v13100_v0  ;;  %12319 = vmatpush3.msra.mxu1 %v14496_v55 }
 0xd77   :  { %12286 = vmatpush3.msra.mxu0 %v14508_v35  ;;  %12320 = vmatprep.subr.mxu1 %v13100_v0 }
 0xd78   :  { %12287 = vmatprep.subr.mxu0 %v13100_v0  ;;  %12321 = vmatpush3.msra.mxu1 %v14498_v32 }
 0xd79   :  { %12288 = vmatpush3.msra.mxu0 %v14511_v37  ;;  %12322 = vmatprep.subr.mxu1 %v13100_v0 }
 0xd7a   :  { %12289 = vmatprep.subr.mxu0 %v13100_v0  ;;  %12291 = vmatprep.mubr.msk.f32.mxu0 %vm13101_vm0, %v13100_v0 }
 0xd7b   :  { %12290 = vmatpush3.msra.mxu0 %v14514_v38  ;;  %12323 = vmatpush3.msra.mxu1 %v14500_v33 }
 0xd7c   :  { %12324 = vmatprep.mubr.msk.f32.mxu1 %vm13101_vm0, %v13100_v0  ;;  %12292 = vmatmul.mubr.f32.vlgmr.msra.gmra.mxu0 %v7232_v21 }
 0xd7d   :  { %12305 = vmatprep.subr.mxu0 %v13100_v0  ;;  %12325 = vmatmul.mubr.f32.vlgmr.msra.gmra.mxu1 %v7231_v20 }
 0xd7e   :  { %12306 = vmatpush3.msra.mxu0 %v14505_v34  ;;  %12313 = vmatprep.mubr.msk.f32.mxu0 %vm13101_vm0, %v13100_v0 }
 0xd7f   :  { %12307 = vmatprep.subr.mxu0 %v13100_v0  ;;  %12338 = vmatprep.subr.mxu1 %v13100_v0 }
 0xd80   :  { %12308 = vmatpush3.msra.mxu0 %v14521_v47  ;;  %12339 = vmatpush3.msra.mxu1 %v14531_v54 }
 0xd81   :  { %12309 = vmatprep.subr.mxu0 %v13100_v0  ;;  %12340 = vmatprep.subr.mxu1 %v13100_v0 }
 0xd82   :  { %12310 = vmatpush3.msra.mxu0 %v14524_v51  ;;  %12341 = vmatpush3.msra.mxu1 %v14542_v60 }
 0xd83   :  { %12311 = vmatprep.subr.mxu0 %v13100_v0  ;;  %12342 = vmatprep.subr.mxu1 %v13100_v0 }
 0xd84   :  { %12312 = vmatpush3.msra.mxu0 %v14527_v52  ;;  %12343 = vmatpush3.msra.mxu1 %v14544_v63 }
 0xd85   :  { %12314 = vmatmul.mubr.f32.vlgmr.msra.gmra.mxu0 %v7231_v20  ;;  %12344 = vmatprep.subr.mxu1 %v13100_v0 }
 0xd86   :  { %12345 = vmatpush3.msra.mxu1 %v14548_v2  ;;  %12327 = vmatprep.subr.mxu0 %v13100_v0 }
 0xd87   :  { %12346 = vmatprep.mubr.msk.f32.mxu1 %vm13101_vm0, %v13100_v0  ;;  %12360 = vmatprep.subr.mxu1 %v13100_v0 }
 0xd88   :  { %12328 = vmatpush3.msra.mxu0 %v14491_v45  ;;  %12335 = vmatprep.mubr.msk.f32.mxu0 %vm13101_vm0, %v13100_v0 }
 0xd89   :  { %12329 = vmatprep.subr.mxu0 %v13100_v0 }
 0xd8a   :  { %12330 = vmatpush3.msra.mxu0 %v14496_v55 }
 0xd8b   :  { %12331 = vmatprep.subr.mxu0 %v13100_v0 }
 0xd8c   :  { %12332 = vmatpush3.msra.mxu0 %v14498_v32 }
 0xd8d   :  { %12333 = vmatprep.subr.mxu0 %v13100_v0 }
 0xd8e   :  { %12334 = vmatpush3.msra.mxu0 %v14500_v33 }
 0xd8f   :  { %12349 = vmatprep.subr.mxu0 %v13100_v0 }
 0xe2b   :  { %v7328_v26 = vpop.f32.mrf.mxu1 }
 0xe2d   :  { %v12282_v27 = vpop.f32.mrf.mxu1 }
 0xe33   :  { %v7485_v28 = vpop.f32.mrf.mxu1 }
 0xe34   :  { %v7237_v29 = vpop.f32.mrf.mxu0 }
 0xe35   :  { %v12304_v30 = vpop.f32.mrf.mxu1  ;;  %v7238_v39 = vadd.f32 %v7237_v29, %v14622_v36 }
 0xe36   :  { %v12271_v31 = vpop.f32.mrf.mxu0 }
 0xe37   :  { %v7329_v44 = vadd.f32 %v7328_v26, %v7238_v39 }
 0xe3c   :  { %v7408_v41 = vpop.f32.mrf.mxu0 }
 0xe3d   :  { %v7643_v42 = vpop.f32.mrf.mxu1  ;;  %v7409_v50 = vadd.f32 %v7408_v41, %v7329_v44 }
 0xe3e   :  { %v12293_v46 = vpop.f32.mrf.mxu0 }
 0xe3f   :  { %v12326_v48 = vpop.f32.mrf.mxu1  ;;  %v7486_v40 = vadd.f32 %v7485_v28, %v7409_v50 }
 0xe45   :  { %v7568_v57 = vpop.f32.mrf.mxu0 }
 0xe46   :  { %v7569_v1 = vadd.f32 %v7568_v57, %v7486_v40 }
 0xe47   :  { %v12315_v58 = vpop.f32.mrf.mxu0 }
 0xe48   :  { %v7644_v3 = vadd.f32 %v7643_v42, %v7569_v1 }
 0xe4a   :  { %12771 = vtanh.f32 %v7644_v3 }
 0xe57   :  { %v14625_v4 = vpop.eup %12771 }
 0xe58   :  { %7649 = vrot.lane.b32.xlu0 %v14625_v4, %s13103_s10 }
 0xeca   :  { %v7650_v5 = vpop.permute.xlu0 %7649 }
 0xecb   :  { %v7651_v6 = vsel %vm215_vm1, %v7650_v5, 0 }
 0xecc   :  { %v7722_v7 = vand.u32 4294901760, %v7651_v6 }
 0xece   :  { %v7723_v8 = vsub.f32 %v7651_v6, %v7722_v7  ;;  %12347 = vmatmul.mubr.f32.vlgmr.msra.gmra.mxu1 %v7722_v7 }
 0xecf   :  { %12361 = vmatpush3.msra.mxu1 %v14491_v45  ;;  %12368 = vmatprep.mubr.msk.f32.mxu1 %vm13101_vm0, %v13100_v0 }
 0xed0   :  { %v7724_v56 = vand.u32 4294901760, %v7723_v8  ;;  %12362 = vmatprep.subr.mxu1 %v13100_v0 }
 0xed1   :  { %12363 = vmatpush3.msra.mxu1 %v14496_v55 }
 0xed2   :  { %v7725_v59 = vsub.f32 %v7723_v8, %v7724_v56  ;;  %12364 = vmatprep.subr.mxu1 %v13100_v0 }
 0xed3   :  { %12365 = vmatpush3.msra.mxu1 %v14498_v32 }
 0xed4   :  { %v7726_v61 = vand.u32 4294901760, %v7725_v59  ;;  %12366 = vmatprep.subr.mxu1 %v13100_v0 }
 0xed5   :  { %12367 = vmatpush3.msra.mxu1 %v14500_v33 }
 0xed6   :  { %12369 = vmatmul.mubr.f32.vlgmr.msra.gmra.mxu1 %v7724_v56  ;;  %12382 = vmatprep.subr.mxu1 %v13100_v0 }
 0xed7   :  { %12336 = vmatmul.mubr.f32.vlgmr.msra.gmra.mxu0 %v7726_v61  ;;  %12383 = vmatpush3.msra.mxu1 %v14491_v45 }
 0xed8   :  { %12350 = vmatpush3.msra.mxu0 %v14494_v53  ;;  %12384 = vmatprep.subr.mxu1 %v13100_v0 }
 0xed9   :  { %12351 = vmatprep.subr.mxu0 %v13100_v0  ;;  %12385 = vmatpush3.msra.mxu1 %v14496_v55 }
 0xeda   :  { %12352 = vmatpush3.msra.mxu0 %v14508_v35  ;;  %12386 = vmatprep.subr.mxu1 %v13100_v0 }
 0xedb   :  { %12353 = vmatprep.subr.mxu0 %v13100_v0  ;;  %12387 = vmatpush3.msra.mxu1 %v14498_v32 }
 0xedc   :  { %12354 = vmatpush3.msra.mxu0 %v14511_v37  ;;  %12388 = vmatprep.subr.mxu1 %v13100_v0 }
 0xedd   :  { %12355 = vmatprep.subr.mxu0 %v13100_v0  ;;  %12357 = vmatprep.mubr.msk.f32.mxu0 %vm13101_vm0, %v13100_v0 }
 0xede   :  { %12356 = vmatpush3.msra.mxu0 %v14514_v38  ;;  %12389 = vmatpush3.msra.mxu1 %v14500_v33 }
 0xedf   :  { %12390 = vmatprep.mubr.msk.f32.mxu1 %vm13101_vm0, %v13100_v0  ;;  %12358 = vmatmul.mubr.f32.vlgmr.msra.gmra.mxu0 %v7723_v8 }
 0xee0   :  { %12371 = vmatprep.subr.mxu0 %v13100_v0  ;;  %12391 = vmatmul.mubr.f32.vlgmr.msra.gmra.mxu1 %v7722_v7 }
 0xee1   :  { %12372 = vmatpush3.msra.mxu0 %v14505_v34  ;;  %12379 = vmatprep.mubr.msk.f32.mxu0 %vm13101_vm0, %v13100_v0 }
 0xee2   :  { %12373 = vmatprep.subr.mxu0 %v13100_v0  ;;  %12404 = vmatprep.subr.mxu1 %v13100_v0 }
 0xee3   :  { %12374 = vmatpush3.msra.mxu0 %v14521_v47  ;;  %12405 = vmatpush3.msra.mxu1 %v14531_v54 }
 0xee4   :  { %12375 = vmatprep.subr.mxu0 %v13100_v0  ;;  %12406 = vmatprep.subr.mxu1 %v13100_v0 }
 0xee5   :  { %12376 = vmatpush3.msra.mxu0 %v14524_v51  ;;  %12407 = vmatpush3.msra.mxu1 %v14542_v60 }
 0xee6   :  { %12377 = vmatprep.subr.mxu0 %v13100_v0  ;;  %12408 = vmatprep.subr.mxu1 %v13100_v0 }
 0xee7   :  { %12378 = vmatpush3.msra.mxu0 %v14527_v52  ;;  %12409 = vmatpush3.msra.mxu1 %v14544_v63 }
 0xee8   :  { %12380 = vmatmul.mubr.f32.vlgmr.msra.gmra.mxu0 %v7722_v7  ;;  %12410 = vmatprep.subr.mxu1 %v13100_v0 }
 0xee9   :  { %12411 = vmatpush3.msra.mxu1 %v14548_v2  ;;  %12393 = vmatprep.subr.mxu0 %v13100_v0 }
 0xeea   :  { %12412 = vmatprep.mubr.msk.f32.mxu1 %vm13101_vm0, %v13100_v0  ;;  %12426 = vmatprep.subr.mxu1 %v13100_v0 }
 0xeeb   :  { %12394 = vmatpush3.msra.mxu0 %v14491_v45  ;;  %12401 = vmatprep.mubr.msk.f32.mxu0 %vm13101_vm0, %v13100_v0 }
 0xeec   :  { %12395 = vmatprep.subr.mxu0 %v13100_v0 }
 0xeed   :  { %12396 = vmatpush3.msra.mxu0 %v14496_v55 }
 0xeee   :  { %12397 = vmatprep.subr.mxu0 %v13100_v0 }
 0xeef   :  { %12398 = vmatpush3.msra.mxu0 %v14498_v32 }
 0xef0   :  { %12399 = vmatprep.subr.mxu0 %v13100_v0 }
 0xef1   :  { %12400 = vmatpush3.msra.mxu0 %v14500_v33 }
 0xef2   :  { %12415 = vmatprep.subr.mxu0 %v13100_v0 }
 0xf8e   :  { %v7819_v62 = vpop.f32.mrf.mxu1 }
 0xf90   :  { %v12348_v9 = vpop.f32.mrf.mxu1 }
 0xf96   :  { %v7976_v10 = vpop.f32.mrf.mxu1 }
 0xf97   :  { %v7728_v11 = vpop.f32.mrf.mxu0 }
 0xf98   :  { %v12370_v12 = vpop.f32.mrf.mxu1  ;;  %v7729_v14 = vadd.f32 %v7728_v11, %v14622_v36 }
 0xf99   :  { %v12337_v13 = vpop.f32.mrf.mxu0 }
 0xf9a   :  { %v7820_v16 = vadd.f32 %v7819_v62, %v7729_v14 }
 0xf9f   :  { %v7899_v15 = vpop.f32.mrf.mxu0 }
 0xfa0   :  { %v8134_v22 = vpop.f32.mrf.mxu1  ;;  %v7900_v20 = vadd.f32 %v7899_v15, %v7820_v16 }
 0xfa1   :  { %v12359_v18 = vpop.f32.mrf.mxu0 }
 0xfa2   :  { %v12392_v19 = vpop.f32.mrf.mxu1  ;;  %v7977_v21 = vadd.f32 %v7976_v10, %v7900_v20 }
 0xfa8   :  { %v8059_v23 = vpop.f32.mrf.mxu0 }
 0xfa9   :  { %v8060_v24 = vadd.f32 %v8059_v23, %v7977_v21 }
 0xfaa   :  { %v12381_v25 = vpop.f32.mrf.mxu0 }
 0xfab   :  { %v8135_v26 = vadd.f32 %v8134_v22, %v8060_v24 }
 0xfad   :  { %12773 = vtanh.f32 %v8135_v26 }
 0xfba   :  { %v14691_v27 = vpop.eup %12773 }
 0xfbb   :  { %8140 = vrot.lane.b32.xlu1 %v14691_v27, %s13103_s10 }
0x102d   :  { %v8141_v28 = vpop.permute.xlu1 %8140 }
0x102e   :  { %v8142_v29 = vsel %vm215_vm1, %v8141_v28, 0 }
0x102f   :  { %v8213_v30 = vand.u32 4294901760, %v8142_v29 }
0x1031   :  { %v8214_v31 = vsub.f32 %v8142_v29, %v8213_v30  ;;  %12413 = vmatmul.mubr.f32.vlgmr.msra.gmra.mxu1 %v8213_v30 }
0x1032   :  { %12427 = vmatpush3.msra.mxu1 %v14491_v45  ;;  %12434 = vmatprep.mubr.msk.f32.mxu1 %vm13101_vm0, %v13100_v0 }
0x1033   :  { %v8215_v39 = vand.u32 4294901760, %v8214_v31  ;;  %12428 = vmatprep.subr.mxu1 %v13100_v0 }
0x1034   :  { %12429 = vmatpush3.msra.mxu1 %v14496_v55 }
0x1035   :  { %v8216_v41 = vsub.f32 %v8214_v31, %v8215_v39  ;;  %12430 = vmatprep.subr.mxu1 %v13100_v0 }
0x1036   :  { %12431 = vmatpush3.msra.mxu1 %v14498_v32 }
0x1037   :  { %v8217_v42 = vand.u32 4294901760, %v8216_v41  ;;  %12432 = vmatprep.subr.mxu1 %v13100_v0 }
0x1038   :  { %12433 = vmatpush3.msra.mxu1 %v14500_v33 }
0x1039   :  { %12435 = vmatmul.mubr.f32.vlgmr.msra.gmra.mxu1 %v8215_v39  ;;  %12448 = vmatprep.subr.mxu1 %v13100_v0 }
0x103a   :  { %12402 = vmatmul.mubr.f32.vlgmr.msra.gmra.mxu0 %v8217_v42  ;;  %12449 = vmatpush3.msra.mxu1 %v14491_v45 }
0x103b   :  { %12416 = vmatpush3.msra.mxu0 %v14494_v53  ;;  %12450 = vmatprep.subr.mxu1 %v13100_v0 }
0x103c   :  { %12417 = vmatprep.subr.mxu0 %v13100_v0  ;;  %12451 = vmatpush3.msra.mxu1 %v14496_v55 }
0x103d   :  { %12418 = vmatpush3.msra.mxu0 %v14508_v35  ;;  %12452 = vmatprep.subr.mxu1 %v13100_v0 }
0x103e   :  { %12419 = vmatprep.subr.mxu0 %v13100_v0  ;;  %12453 = vmatpush3.msra.mxu1 %v14498_v32 }
0x103f   :  { %12420 = vmatpush3.msra.mxu0 %v14511_v37  ;;  %12454 = vmatprep.subr.mxu1 %v13100_v0 }
0x1040   :  { %12421 = vmatprep.subr.mxu0 %v13100_v0  ;;  %12423 = vmatprep.mubr.msk.f32.mxu0 %vm13101_vm0, %v13100_v0 }
0x1041   :  { %12422 = vmatpush3.msra.mxu0 %v14514_v38  ;;  %12455 = vmatpush3.msra.mxu1 %v14500_v33 }
0x1042   :  { %12456 = vmatprep.mubr.msk.f32.mxu1 %vm13101_vm0, %v13100_v0  ;;  %12424 = vmatmul.mubr.f32.vlgmr.msra.gmra.mxu0 %v8214_v31 }
0x1043   :  { %12437 = vmatprep.subr.mxu0 %v13100_v0  ;;  %12457 = vmatmul.mubr.f32.vlgmr.msra.gmra.mxu1 %v8213_v30 }
0x1044   :  { %12438 = vmatpush3.msra.mxu0 %v14505_v34  ;;  %12445 = vmatprep.mubr.msk.f32.mxu0 %vm13101_vm0, %v13100_v0 }
0x1045   :  { %12439 = vmatprep.subr.mxu0 %v13100_v0  ;;  %12470 = vmatprep.subr.mxu1 %v13100_v0 }
0x1046   :  { %12440 = vmatpush3.msra.mxu0 %v14521_v47  ;;  %12471 = vmatpush3.msra.mxu1 %v14531_v54 }
0x1047   :  { %12441 = vmatprep.subr.mxu0 %v13100_v0  ;;  %12472 = vmatprep.subr.mxu1 %v13100_v0 }
0x1048   :  { %12442 = vmatpush3.msra.mxu0 %v14524_v51  ;;  %12473 = vmatpush3.msra.mxu1 %v14542_v60 }
0x1049   :  { %12443 = vmatprep.subr.mxu0 %v13100_v0  ;;  %12474 = vmatprep.subr.mxu1 %v13100_v0 }
0x104a   :  { %12444 = vmatpush3.msra.mxu0 %v14527_v52  ;;  %12475 = vmatpush3.msra.mxu1 %v14544_v63 }
0x104b   :  { %12446 = vmatmul.mubr.f32.vlgmr.msra.gmra.mxu0 %v8213_v30  ;;  %12476 = vmatprep.subr.mxu1 %v13100_v0 }
0x104c   :  { %12477 = vmatpush3.msra.mxu1 %v14548_v2  ;;  %12459 = vmatprep.subr.mxu0 %v13100_v0 }
0x104d   :  { %12478 = vmatprep.mubr.msk.f32.mxu1 %vm13101_vm0, %v13100_v0  ;;  %12492 = vmatprep.subr.mxu1 %v13100_v0 }
0x104e   :  { %12460 = vmatpush3.msra.mxu0 %v14491_v45  ;;  %12467 = vmatprep.mubr.msk.f32.mxu0 %vm13101_vm0, %v13100_v0 }
0x104f   :  { %12461 = vmatprep.subr.mxu0 %v13100_v0 }
0x1050   :  { %12462 = vmatpush3.msra.mxu0 %v14496_v55 }
0x1051   :  { %12463 = vmatprep.subr.mxu0 %v13100_v0 }
0x1052   :  { %12464 = vmatpush3.msra.mxu0 %v14498_v32 }
0x1053   :  { %12465 = vmatprep.subr.mxu0 %v13100_v0 }
0x1054   :  { %12466 = vmatpush3.msra.mxu0 %v14500_v33 }
0x1055   :  { %12481 = vmatprep.subr.mxu0 %v13100_v0 }
0x10f1   :  { %v8310_v44 = vpop.f32.mrf.mxu1 }
0x10f3   :  { %v12414_v46 = vpop.f32.mrf.mxu1 }
0x10f9   :  { %v8467_v48 = vpop.f32.mrf.mxu1 }
0x10fa   :  { %v8219_v50 = vpop.f32.mrf.mxu0 }
0x10fb   :  { %v12436_v40 = vpop.f32.mrf.mxu1  ;;  %v8220_v1 = vadd.f32 %v8219_v50, %v14622_v36 }
0x10fc   :  { %v12403_v57 = vpop.f32.mrf.mxu0 }
0x10fd   :  { %v8311_v5 = vadd.f32 %v8310_v44, %v8220_v1 }
0x1102   :  { %v8390_v58 = vpop.f32.mrf.mxu0 }
0x1103   :  { %v8625_v3 = vpop.f32.mrf.mxu1  ;;  %v8391_v8 = vadd.f32 %v8390_v58, %v8311_v5 }
0x1104   :  { %v12425_v6 = vpop.f32.mrf.mxu0 }
0x1105   :  { %v12458_v7 = vpop.f32.mrf.mxu1  ;;  %v8468_v56 = vadd.f32 %v8467_v48, %v8391_v8 }
0x110b   :  { %v8550_v59 = vpop.f32.mrf.mxu0 }
0x110c   :  { %v8551_v61 = vadd.f32 %v8550_v59, %v8468_v56 }
0x110d   :  { %v12447_v62 = vpop.f32.mrf.mxu0 }
0x110e   :  { %v8626_v9 = vadd.f32 %v8625_v3, %v8551_v61 }
0x1110   :  { %12775 = vtanh.f32 %v8626_v9 }
0x111d   :  { %v14757_v10 = vpop.eup %12775 }
0x111e   :  { %8631 = vrot.lane.b32.xlu1 %v14757_v10, %s13103_s10 }
0x1190   :  { %v8632_v11 = vpop.permute.xlu1 %8631 }
0x1191   :  { %v8633_v12 = vsel %vm215_vm1, %v8632_v11, 0 }
0x1192   :  { %v8704_v13 = vand.u32 4294901760, %v8633_v12 }
0x1194   :  { %v8705_v14 = vsub.f32 %v8633_v12, %v8704_v13  ;;  %12479 = vmatmul.mubr.f32.vlgmr.msra.gmra.mxu1 %v8704_v13 }
0x1195   :  { %12493 = vmatpush3.msra.mxu1 %v14491_v45  ;;  %12500 = vmatprep.mubr.msk.f32.mxu1 %vm13101_vm0, %v13100_v0 }
0x1196   :  { %v8706_v15 = vand.u32 4294901760, %v8705_v14  ;;  %12494 = vmatprep.subr.mxu1 %v13100_v0 }
0x1197   :  { %12495 = vmatpush3.msra.mxu1 %v14496_v55 }
0x1198   :  { %v8707_v22 = vsub.f32 %v8705_v14, %v8706_v15  ;;  %12496 = vmatprep.subr.mxu1 %v13100_v0 }
0x1199   :  { %12497 = vmatpush3.msra.mxu1 %v14498_v32 }
0x119a   :  { %v8708_v16 = vand.u32 4294901760, %v8707_v22  ;;  %12498 = vmatprep.subr.mxu1 %v13100_v0 }
0x119b   :  { %12499 = vmatpush3.msra.mxu1 %v14500_v33 }
0x119c   :  { %12501 = vmatmul.mubr.f32.vlgmr.msra.gmra.mxu1 %v8706_v15  ;;  %12514 = vmatprep.subr.mxu1 %v13100_v0 }
0x119d   :  { %12468 = vmatmul.mubr.f32.vlgmr.msra.gmra.mxu0 %v8708_v16  ;;  %12515 = vmatpush3.msra.mxu1 %v14491_v45 }
0x119e   :  { %12482 = vmatpush3.msra.mxu0 %v14494_v53  ;;  %12516 = vmatprep.subr.mxu1 %v13100_v0 }
0x119f   :  { %12483 = vmatprep.subr.mxu0 %v13100_v0  ;;  %12517 = vmatpush3.msra.mxu1 %v14496_v55 }
0x11a0   :  { %12484 = vmatpush3.msra.mxu0 %v14508_v35  ;;  %12518 = vmatprep.subr.mxu1 %v13100_v0 }
0x11a1   :  { %12485 = vmatprep.subr.mxu0 %v13100_v0  ;;  %12519 = vmatpush3.msra.mxu1 %v14498_v32 }
0x11a2   :  { %12486 = vmatpush3.msra.mxu0 %v14511_v37  ;;  %12520 = vmatprep.subr.mxu1 %v13100_v0 }
0x11a3   :  { %12487 = vmatprep.subr.mxu0 %v13100_v0  ;;  %12489 = vmatprep.mubr.msk.f32.mxu0 %vm13101_vm0, %v13100_v0 }
0x11a4   :  { %12488 = vmatpush3.msra.mxu0 %v14514_v38  ;;  %12521 = vmatpush3.msra.mxu1 %v14500_v33 }
0x11a5   :  { %12522 = vmatprep.mubr.msk.f32.mxu1 %vm13101_vm0, %v13100_v0  ;;  %12490 = vmatmul.mubr.f32.vlgmr.msra.gmra.mxu0 %v8705_v14 }
0x11a6   :  { %12503 = vmatprep.subr.mxu0 %v13100_v0  ;;  %12523 = vmatmul.mubr.f32.vlgmr.msra.gmra.mxu1 %v8704_v13 }
0x11a7   :  { %12504 = vmatpush3.msra.mxu0 %v14505_v34  ;;  %12511 = vmatprep.mubr.msk.f32.mxu0 %vm13101_vm0, %v13100_v0 }
0x11a8   :  { %12505 = vmatprep.subr.mxu0 %v13100_v0  ;;  %12536 = vmatprep.subr.mxu1 %v13100_v0 }
0x11a9   :  { %12506 = vmatpush3.msra.mxu0 %v14521_v47  ;;  %12537 = vmatpush3.msra.mxu1 %v14531_v54 }
0x11aa   :  { %12507 = vmatprep.subr.mxu0 %v13100_v0  ;;  %12538 = vmatprep.subr.mxu1 %v13100_v0 }
0x11ab   :  { %12508 = vmatpush3.msra.mxu0 %v14524_v51  ;;  %12539 = vmatpush3.msra.mxu1 %v14542_v60 }
0x11ac   :  { %12509 = vmatprep.subr.mxu0 %v13100_v0  ;;  %12540 = vmatprep.subr.mxu1 %v13100_v0 }
0x11ad   :  { %12510 = vmatpush3.msra.mxu0 %v14527_v52  ;;  %12541 = vmatpush3.msra.mxu1 %v14544_v63 }
0x11ae   :  { %12512 = vmatmul.mubr.f32.vlgmr.msra.gmra.mxu0 %v8704_v13  ;;  %12542 = vmatprep.subr.mxu1 %v13100_v0 }
0x11af   :  { %12543 = vmatpush3.msra.mxu1 %v14548_v2  ;;  %12525 = vmatprep.subr.mxu0 %v13100_v0 }
0x11b0   :  { %12544 = vmatprep.mubr.msk.f32.mxu1 %vm13101_vm0, %v13100_v0  ;;  %12558 = vmatprep.subr.mxu1 %v13100_v0 }
0x11b1   :  { %12526 = vmatpush3.msra.mxu0 %v14491_v45  ;;  %12533 = vmatprep.mubr.msk.f32.mxu0 %vm13101_vm0, %v13100_v0 }
0x11b2   :  { %12527 = vmatprep.subr.mxu0 %v13100_v0 }
0x11b3   :  { %12528 = vmatpush3.msra.mxu0 %v14496_v55 }
0x11b4   :  { %12529 = vmatprep.subr.mxu0 %v13100_v0 }
0x11b5   :  { %12530 = vmatpush3.msra.mxu0 %v14498_v32 }
0x11b6   :  { %12531 = vmatprep.subr.mxu0 %v13100_v0 }
0x11b7   :  { %12532 = vmatpush3.msra.mxu0 %v14500_v33 }
0x11b8   :  { %12547 = vmatprep.subr.mxu0 %v13100_v0 }
0x1254   :  { %v8801_v18 = vpop.f32.mrf.mxu1 }
0x1256   :  { %v12480_v19 = vpop.f32.mrf.mxu1 }
0x125c   :  { %v8958_v20 = vpop.f32.mrf.mxu1 }
0x125d   :  { %v8710_v21 = vpop.f32.mrf.mxu0 }
0x125e   :  { %v12502_v23 = vpop.f32.mrf.mxu1  ;;  %v8711_v25 = vadd.f32 %v8710_v21, %v14622_v36 }
0x125f   :  { %v12469_v24 = vpop.f32.mrf.mxu0 }
0x1260   :  { %v8802_v29 = vadd.f32 %v8801_v18, %v8711_v25  ;;  %v5658_v24 = vsel %vm5627_vm2, %v14239_v43, -inf }
0x1265   :  { %v8881_v26 = vpop.f32.mrf.mxu0 }
0x1266   :  { %v9116_v28 = vpop.f32.mrf.mxu1  ;;  %v8882_v39 = vadd.f32 %v8881_v26, %v8802_v29 }
0x1267   :  { %v12491_v30 = vpop.f32.mrf.mxu0 }
0x1268   :  { %v12524_v31 = vpop.f32.mrf.mxu1  ;;  %v8959_v41 = vadd.f32 %v8958_v20, %v8882_v39 }
0x126e   :  { %v9041_v42 = vpop.f32.mrf.mxu0 }
0x126f   :  { %v9042_v44 = vadd.f32 %v9041_v42, %v8959_v41 }
0x1270   :  { %v12513_v46 = vpop.f32.mrf.mxu0 }
0x1271   :  { %v9117_v48 = vadd.f32 %v9116_v28, %v9042_v44 }
0x1273   :  { %12777 = vtanh.f32 %v9117_v48 }
0x1280   :  { %v14823_v50 = vpop.eup %12777 }
0x1281   :  { %9122 = vrot.lane.b32.xlu0 %v14823_v50, %s13103_s10 }
0x12f3   :  { %v9123_v40 = vpop.permute.xlu0 %9122 }
0x12f4   :  { %v9124_v57 = vsel %vm215_vm1, %v9123_v40, 0 }
0x12f5   :  { %v9195_v1 = vand.u32 4294901760, %v9124_v57 }
0x12f7   :  { %v9196_v58 = vsub.f32 %v9124_v57, %v9195_v1  ;;  %12545 = vmatmul.mubr.f32.vlgmr.msra.gmra.mxu1 %v9195_v1 }
0x12f8   :  { %12559 = vmatpush3.msra.mxu1 %v14491_v45  ;;  %12566 = vmatprep.mubr.msk.f32.mxu1 %vm13101_vm0, %v13100_v0 }
0x12f9   :  { %v9197_v3 = vand.u32 4294901760, %v9196_v58  ;;  %12560 = vmatprep.subr.mxu1 %v13100_v0 }
0x12fa   :  { %12561 = vmatpush3.msra.mxu1 %v14496_v55 }
0x12fb   :  { %v9198_v5 = vsub.f32 %v9196_v58, %v9197_v3  ;;  %12562 = vmatprep.subr.mxu1 %v13100_v0 }
0x12fc   :  { %12563 = vmatpush3.msra.mxu1 %v14498_v32 }
0x12fd   :  { %v9199_v6 = vand.u32 4294901760, %v9198_v5  ;;  %12564 = vmatprep.subr.mxu1 %v13100_v0 }
0x12fe   :  { %12565 = vmatpush3.msra.mxu1 %v14500_v33 }
0x12ff   :  { %12567 = vmatmul.mubr.f32.vlgmr.msra.gmra.mxu1 %v9197_v3  ;;  %12580 = vmatprep.subr.mxu1 %v13100_v0 }
0x1300   :  { %12534 = vmatmul.mubr.f32.vlgmr.msra.gmra.mxu0 %v9199_v6  ;;  %12581 = vmatpush3.msra.mxu1 %v14491_v45 }
0x1301   :  { %12548 = vmatpush3.msra.mxu0 %v14494_v53  ;;  %12582 = vmatprep.subr.mxu1 %v13100_v0 }
0x1302   :  { %12549 = vmatprep.subr.mxu0 %v13100_v0  ;;  %12583 = vmatpush3.msra.mxu1 %v14496_v55 }
0x1303   :  { %12550 = vmatpush3.msra.mxu0 %v14508_v35  ;;  %12584 = vmatprep.subr.mxu1 %v13100_v0 }
0x1304   :  { %12551 = vmatprep.subr.mxu0 %v13100_v0  ;;  %12585 = vmatpush3.msra.mxu1 %v14498_v32 }
0x1305   :  { %12552 = vmatpush3.msra.mxu0 %v14511_v37  ;;  %12586 = vmatprep.subr.mxu1 %v13100_v0 }
0x1306   :  { %12553 = vmatprep.subr.mxu0 %v13100_v0  ;;  %12555 = vmatprep.mubr.msk.f32.mxu0 %vm13101_vm0, %v13100_v0 }
0x1307   :  { %12554 = vmatpush3.msra.mxu0 %v14514_v38  ;;  %12587 = vmatpush3.msra.mxu1 %v14500_v33 }
0x1308   :  { %12588 = vmatprep.mubr.msk.f32.mxu1 %vm13101_vm0, %v13100_v0  ;;  %12556 = vmatmul.mubr.f32.vlgmr.msra.gmra.mxu0 %v9196_v58 }
0x1309   :  { %12569 = vmatprep.subr.mxu0 %v13100_v0  ;;  %12589 = vmatmul.mubr.f32.vlgmr.msra.gmra.mxu1 %v9195_v1 }
0x130a   :  { %12570 = vmatpush3.msra.mxu0 %v14505_v34  ;;  %12577 = vmatprep.mubr.msk.f32.mxu0 %vm13101_vm0, %v13100_v0 }
0x130b   :  { %12571 = vmatprep.subr.mxu0 %v13100_v0  ;;  %12602 = vmatprep.subr.mxu1 %v13100_v0 }
0x130c   :  { %12572 = vmatpush3.msra.mxu0 %v14521_v47  ;;  %12603 = vmatpush3.msra.mxu1 %v14531_v54 }
0x130d   :  { %12573 = vmatprep.subr.mxu0 %v13100_v0  ;;  %12604 = vmatprep.subr.mxu1 %v13100_v0 }
0x130e   :  { %12574 = vmatpush3.msra.mxu0 %v14524_v51  ;;  %12605 = vmatpush3.msra.mxu1 %v14542_v60 }
0x130f   :  { %12575 = vmatprep.subr.mxu0 %v13100_v0  ;;  %12606 = vmatprep.subr.mxu1 %v13100_v0 }
0x1310   :  { %12576 = vmatpush3.msra.mxu0 %v14527_v52  ;;  %12607 = vmatpush3.msra.mxu1 %v14544_v63 }
0x1311   :  { %12578 = vmatmul.mubr.f32.vlgmr.msra.gmra.mxu0 %v9195_v1  ;;  %12608 = vmatprep.subr.mxu1 %v13100_v0 }
0x1312   :  { %12609 = vmatpush3.msra.mxu1 %v14548_v2  ;;  %12591 = vmatprep.subr.mxu0 %v13100_v0 }
0x1313   :  { %12610 = vmatprep.mubr.msk.f32.mxu1 %vm13101_vm0, %v13100_v0  ;;  %12624 = vmatprep.subr.mxu1 %v13100_v0 }
0x1314   :  { %12592 = vmatpush3.msra.mxu0 %v14491_v45  ;;  %12599 = vmatprep.mubr.msk.f32.mxu0 %vm13101_vm0, %v13100_v0 }
0x1315   :  { %12593 = vmatprep.subr.mxu0 %v13100_v0 }
0x1316   :  { %12594 = vmatpush3.msra.mxu0 %v14496_v55 }
0x1317   :  { %12595 = vmatprep.subr.mxu0 %v13100_v0 }
0x1318   :  { %12596 = vmatpush3.msra.mxu0 %v14498_v32 }
0x1319   :  { %12597 = vmatprep.subr.mxu0 %v13100_v0 }
0x131a   :  { %12598 = vmatpush3.msra.mxu0 %v14500_v33 }
0x131b   :  { %12613 = vmatprep.subr.mxu0 %v13100_v0 }
0x13b7   :  { %v9292_v7 = vpop.f32.mrf.mxu1 }
0x13b9   :  { %v12546_v8 = vpop.f32.mrf.mxu1 }
0x13bf   :  { %v9449_v56 = vpop.f32.mrf.mxu1 }
0x13c0   :  { %v9201_v59 = vpop.f32.mrf.mxu0 }
0x13c1   :  { %v12568_v61 = vpop.f32.mrf.mxu1  ;;  %v9202_v9 = vadd.f32 %v9201_v59, %v14622_v36 }
0x13c2   :  { %v12535_v62 = vpop.f32.mrf.mxu0 }
0x13c3   :  { %v9293_v13 = vadd.f32 %v9292_v7, %v9202_v9 }
0x13c8   :  { %v9372_v11 = vpop.f32.mrf.mxu0 }
0x13c9   :  { %v9607_v12 = vpop.f32.mrf.mxu1  ;;  %v9373_v22 = vadd.f32 %v9372_v11, %v9293_v13 }
0x13ca   :  { %v12557_v14 = vpop.f32.mrf.mxu0 }
0x13cb   :  { %v12590_v15 = vpop.f32.mrf.mxu1  ;;  %v9450_v16 = vadd.f32 %v9449_v56, %v9373_v22 }
0x13d1   :  { %v9532_v18 = vpop.f32.mrf.mxu0 }
0x13d2   :  { %v9533_v19 = vadd.f32 %v9532_v18, %v9450_v16 }
0x13d3   :  { %v12579_v20 = vpop.f32.mrf.mxu0 }
0x13d4   :  { %v9608_v21 = vadd.f32 %v9607_v12, %v9533_v19 }
0x13d6   :  { %12779 = vtanh.f32 %v9608_v21 }
0x13e3   :  { %v14889_v23 = vpop.eup %12779 }
0x13e4   :  { %9613 = vrot.lane.b32.xlu1 %v14889_v23, %s13103_s10 }
0x1408   :  { %5659 = vmax.xlane.f32.xlu1 %v5658_v24 }
0x1419   :  { %5630 = vrot.lane.b32.xlu1 %v14190_v17, %s13103_s10 }
0x1456   :  { %v9614_v25 = vpop.permute.xlu1 %9613 }
0x1457   :  { %v9615_v26 = vsel %vm215_vm1, %v9614_v25, 0 }
0x1458   :  { %v9686_v28 = vand.u32 4294901760, %v9615_v26 }
0x145a   :  { %v9687_v29 = vsub.f32 %v9615_v26, %v9686_v28  ;;  %12611 = vmatmul.mubr.f32.vlgmr.msra.gmra.mxu1 %v9686_v28 }
0x145b   :  { %12625 = vmatpush3.msra.mxu1 %v14491_v45  ;;  %12632 = vmatprep.mubr.msk.f32.mxu1 %vm13101_vm0, %v13100_v0 }
0x145c   :  { %v9688_v30 = vand.u32 4294901760, %v9687_v29  ;;  %12626 = vmatprep.subr.mxu1 %v13100_v0 }
0x145d   :  { %12627 = vmatpush3.msra.mxu1 %v14496_v55 }
0x145e   :  { %v9689_v31 = vsub.f32 %v9687_v29, %v9688_v30  ;;  %12628 = vmatprep.subr.mxu1 %v13100_v0 }
0x145f   :  { %12629 = vmatpush3.msra.mxu1 %v14498_v32 }
0x1460   :  { %v9690_v17 = vand.u32 4294901760, %v9689_v31  ;;  %12630 = vmatprep.subr.mxu1 %v13100_v0 }
0x1461   :  { %12631 = vmatpush3.msra.mxu1 %v14500_v33 }
0x1462   :  { %12633 = vmatmul.mubr.f32.vlgmr.msra.gmra.mxu1 %v9688_v30  ;;  %12646 = vmatprep.subr.mxu1 %v13100_v0 }
0x1463   :  { %12600 = vmatmul.mubr.f32.vlgmr.msra.gmra.mxu0 %v9690_v17  ;;  %12647 = vmatpush3.msra.mxu1 %v14491_v45 }
0x1464   :  { %12614 = vmatpush3.msra.mxu0 %v14494_v53  ;;  %12648 = vmatprep.subr.mxu1 %v13100_v0 }
0x1465   :  { %12615 = vmatprep.subr.mxu0 %v13100_v0  ;;  %12649 = vmatpush3.msra.mxu1 %v14496_v55 }
0x1466   :  { %12616 = vmatpush3.msra.mxu0 %v14508_v35  ;;  %12650 = vmatprep.subr.mxu1 %v13100_v0 }
0x1467   :  { %12617 = vmatprep.subr.mxu0 %v13100_v0  ;;  %12651 = vmatpush3.msra.mxu1 %v14498_v32 }
0x1468   :  { %12618 = vmatpush3.msra.mxu0 %v14511_v37  ;;  %12652 = vmatprep.subr.mxu1 %v13100_v0 }
0x1469   :  { %12619 = vmatprep.subr.mxu0 %v13100_v0  ;;  %12621 = vmatprep.mubr.msk.f32.mxu0 %vm13101_vm0, %v13100_v0 }
0x146a   :  { %12620 = vmatpush3.msra.mxu0 %v14514_v38  ;;  %12653 = vmatpush3.msra.mxu1 %v14500_v33 }
0x146b   :  { %12654 = vmatprep.mubr.msk.f32.mxu1 %vm13101_vm0, %v13100_v0  ;;  %12622 = vmatmul.mubr.f32.vlgmr.msra.gmra.mxu0 %v9687_v29 }
0x146c   :  { %12635 = vmatprep.subr.mxu0 %v13100_v0  ;;  %12655 = vmatmul.mubr.f32.vlgmr.msra.gmra.mxu1 %v9686_v28 }
0x146d   :  { %12636 = vmatpush3.msra.mxu0 %v14505_v34  ;;  %12643 = vmatprep.mubr.msk.f32.mxu0 %vm13101_vm0, %v13100_v0 }
0x146e   :  { %12637 = vmatprep.subr.mxu0 %v13100_v0  ;;  %12668 = vmatprep.subr.mxu1 %v13100_v0 }
0x146f   :  { %12638 = vmatpush3.msra.mxu0 %v14521_v47  ;;  %12669 = vmatpush3.msra.mxu1 %v14531_v54 }
0x1470   :  { %12639 = vmatprep.subr.mxu0 %v13100_v0  ;;  %12670 = vmatprep.subr.mxu1 %v13100_v0 }
0x1471   :  { %12640 = vmatpush3.msra.mxu0 %v14524_v51  ;;  %12671 = vmatpush3.msra.mxu1 %v14542_v60 }
0x1472   :  { %12641 = vmatprep.subr.mxu0 %v13100_v0  ;;  %12672 = vmatprep.subr.mxu1 %v13100_v0 }
0x1473   :  { %12642 = vmatpush3.msra.mxu0 %v14527_v52  ;;  %12673 = vmatpush3.msra.mxu1 %v14544_v63 }
0x1474   :  { %12644 = vmatmul.mubr.f32.vlgmr.msra.gmra.mxu0 %v9686_v28  ;;  %12674 = vmatprep.subr.mxu1 %v13100_v0 }
0x1475   :  { %12675 = vmatpush3.msra.mxu1 %v14548_v2  ;;  %12657 = vmatprep.subr.mxu0 %v13100_v0 }
0x1476   :  { %12676 = vmatprep.mubr.msk.f32.mxu1 %vm13101_vm0, %v13100_v0  ;;  %12690 = vmatprep.subr.mxu1 %v13100_v0 }
0x1477   :  { %12658 = vmatpush3.msra.mxu0 %v14491_v45  ;;  %12665 = vmatprep.mubr.msk.f32.mxu0 %vm13101_vm0, %v13100_v0 }
0x1478   :  { %12659 = vmatprep.subr.mxu0 %v13100_v0 }
0x1479   :  { %12660 = vmatpush3.msra.mxu0 %v14496_v55 }
0x147a   :  { %12661 = vmatprep.subr.mxu0 %v13100_v0 }
0x147b   :  { %12662 = vmatpush3.msra.mxu0 %v14498_v32 }
0x147c   :  { %12663 = vmatprep.subr.mxu0 %v13100_v0 }
0x147d   :  { %12664 = vmatpush3.msra.mxu0 %v14500_v33 }
0x147e   :  { %12679 = vmatprep.subr.mxu0 %v13100_v0 }
0x1491   :  { %v14958_v54 = vpop.xlane.xlu1 %5659 }
0x1495   :  { %v5631_v60 = vpop.permute.xlu1 %5630 }
0x1496   :  { %5633 = vst.msk [vmem:[#allocation22] sm:$0x1] %vm5627_vm2, %v5631_v60 }
0x151a   :  { %v9783_v63 = vpop.f32.mrf.mxu1 }
0x151c   :  { %v12612_v2 = vpop.f32.mrf.mxu1 }
0x1522   :  { %v9940_v39 = vpop.f32.mrf.mxu1 }
0x1523   :  { %v9692_v41 = vpop.f32.mrf.mxu0 }
0x1524   :  { %v12634_v42 = vpop.f32.mrf.mxu1  ;;  %v9693_v46 = vadd.f32 %v9692_v41, %v14622_v36  ;;  %v5661_v36 = vsub.f32 %v14239_v43, %v14958_v54 }
0x1525   :  { %v12601_v44 = vpop.f32.mrf.mxu0 }
0x1526   :  { %v9784_v57 = vadd.f32 %v9783_v63, %v9693_v46  ;;  %v5662_v61 = vmul.f32 1.442695, %v5661_v36 }
0x152b   :  { %v9863_v48 = vpop.f32.mrf.mxu0 }
0x152c   :  { %v10098_v40 = vpop.f32.mrf.mxu1  ;;  %v9864_v3 = vadd.f32 %v9863_v48, %v9784_v57 }
0x152d   :  { %v12623_v1 = vpop.f32.mrf.mxu0 }
0x152e   :  { %v12656_v58 = vpop.f32.mrf.mxu1  ;;  %v9941_v5 = vadd.f32 %v9940_v39, %v9864_v3 }
0x1534   :  { %v10023_v6 = vpop.f32.mrf.mxu0 }
0x1535   :  { %v10024_v7 = vadd.f32 %v10023_v6, %v9941_v5 }
0x1536   :  { %v12645_v8 = vpop.f32.mrf.mxu0 }
0x1537   :  { %v10099_v56 = vadd.f32 %v10098_v40, %v10024_v7 }
0x1539   :  { %12781 = vtanh.f32 %v10099_v56 }
0x153a   :  { %12783 = vpow2.f32 %v5662_v61 }
0x1546   :  { %v14962_v59 = vpop.eup %12781 }
0x1547   :  { %10104 = vrot.lane.b32.xlu0 %v14962_v59, %s13103_s10  ;;  %v12784_v62 = vpop.eup %12783 }
0x1548   :  { %v5664_v9 = vsel %vm5627_vm2, %v12784_v62, 0.0 }
0x1566   :  { %5665 = vadd.xlane.f32.xlu0 %v5664_v9 }
0x15b9   :  { %v10105_v11 = vpop.permute.xlu0 %10104 }
0x15ba   :  { %v10106_v12 = vsel %vm215_vm1, %v10105_v11, 0 }
0x15bb   :  { %v10177_v13 = vand.u32 4294901760, %v10106_v12 }
0x15bd   :  { %v10178_v14 = vsub.f32 %v10106_v12, %v10177_v13  ;;  %12677 = vmatmul.mubr.f32.vlgmr.msra.gmra.mxu1 %v10177_v13 }
0x15be   :  { %12691 = vmatpush3.msra.mxu1 %v14491_v45  ;;  %12698 = vmatprep.mubr.msk.f32.mxu1 %vm13101_vm0, %v13100_v0 }
0x15bf   :  { %v10179_v15 = vand.u32 4294901760, %v10178_v14  ;;  %12692 = vmatprep.subr.mxu1 %v13100_v0 }
0x15c0   :  { %12693 = vmatpush3.msra.mxu1 %v14496_v55 }
0x15c1   :  { %v10180_v22 = vsub.f32 %v10178_v14, %v10179_v15  ;;  %12694 = vmatprep.subr.mxu1 %v13100_v0 }
0x15c2   :  { %12695 = vmatpush3.msra.mxu1 %v14498_v32 }
0x15c3   :  { %v10181_v16 = vand.u32 4294901760, %v10180_v22  ;;  %12696 = vmatprep.subr.mxu1 %v13100_v0 }
0x15c4   :  { %12697 = vmatpush3.msra.mxu1 %v14500_v33 }
0x15c5   :  { %12699 = vmatmul.mubr.f32.vlgmr.msra.gmra.mxu1 %v10179_v15  ;;  %12712 = vmatprep.subr.mxu1 %v13100_v0 }
0x15c6   :  { %12666 = vmatmul.mubr.f32.vlgmr.msra.gmra.mxu0 %v10181_v16  ;;  %12713 = vmatpush3.msra.mxu1 %v14491_v45 }
0x15c7   :  { %12680 = vmatpush3.msra.mxu0 %v14494_v53  ;;  %12714 = vmatprep.subr.mxu1 %v13100_v0 }
0x15c8   :  { %12681 = vmatprep.subr.mxu0 %v13100_v0  ;;  %12715 = vmatpush3.msra.mxu1 %v14496_v55 }
0x15c9   :  { %12682 = vmatpush3.msra.mxu0 %v14508_v35  ;;  %12716 = vmatprep.subr.mxu1 %v13100_v0 }
0x15ca   :  { %12683 = vmatprep.subr.mxu0 %v13100_v0  ;;  %12717 = vmatpush3.msra.mxu1 %v14498_v32 }
0x15cb   :  { %12684 = vmatpush3.msra.mxu0 %v14511_v37  ;;  %12718 = vmatprep.subr.mxu1 %v13100_v0 }
0x15cc   :  { %12685 = vmatprep.subr.mxu0 %v13100_v0  ;;  %12687 = vmatprep.mubr.msk.f32.mxu0 %vm13101_vm0, %v13100_v0 }
0x15cd   :  { %12686 = vmatpush3.msra.mxu0 %v14514_v38  ;;  %12719 = vmatpush3.msra.mxu1 %v14500_v33 }
0x15ce   :  { %12720 = vmatprep.mubr.msk.f32.mxu1 %vm13101_vm0, %v13100_v0  ;;  %12688 = vmatmul.mubr.f32.vlgmr.msra.gmra.mxu0 %v10178_v14 }
0x15cf   :  { %12701 = vmatprep.subr.mxu0 %v13100_v0  ;;  %12721 = vmatmul.mubr.f32.vlgmr.msra.gmra.mxu1 %v10177_v13 }
0x15d0   :  { %12702 = vmatpush3.msra.mxu0 %v14505_v34  ;;  %12709 = vmatprep.mubr.msk.f32.mxu0 %vm13101_vm0, %v13100_v0 }
0x15d1   :  { %12703 = vmatprep.subr.mxu0 %v13100_v0 }
0x15d2   :  { %12704 = vmatpush3.msra.mxu0 %v14521_v47 }
0x15d3   :  { %12705 = vmatprep.subr.mxu0 %v13100_v0 }
0x15d4   :  { %12706 = vmatpush3.msra.mxu0 %v14524_v51 }
0x15d5   :  { %12707 = vmatprep.subr.mxu0 %v13100_v0  ;;  %v12789_v0 = vld [vmem:[%s15061_s18] sm:$0x1] }
0x15d6   :  { %12708 = vmatpush3.msra.mxu0 %v14527_v52 }
0x15d7   :  { %12710 = vmatmul.mubr.f32.vlgmr.msra.gmra.mxu0 %v10177_v13 }
0x15ef   :  { %v5666_v45 = vpop.xlane.xlu0 %5665 }
0x15f0   :  { %12785 = vlog2.f32 %v5666_v45 }
0x15fd   :  { %v12786_v53 = vpop.eup %12785 }
0x15fe   :  { %v5668_v55 = vmul.f32 0.6931472, %v12786_v53 }
0x1600   :  { %v5669_v32 = vadd.f32 %v5668_v55, %v14958_v54 }
0x1602   :  { %v5670_v33 = vsub.f32 %v14239_v43, %v5669_v32 }
0x1604   :  { %5671 = vst.msk [vmem:[#allocation23] sm:$0x1] %vm5627_vm2, %v5670_v33 }
0x167d   :  { %v10274_v34 = vpop.f32.mrf.mxu1 }
0x167f   :  { %v12678_v35 = vpop.f32.mrf.mxu1 }
0x1685   :  { %v10431_v37 = vpop.f32.mrf.mxu1 }
0x1686   :  { %v10183_v38 = vpop.f32.mrf.mxu0 }
0x1687   :  { %v12700_v47 = vpop.f32.mrf.mxu1  ;;  %v10184_v52 = vadd.f32 %v12789_v0, %v10183_v38 }
0x1688   :  { %v12667_v51 = vpop.f32.mrf.mxu0 }
0x1689   :  { %v10275_v20 = vadd.f32 %v10274_v34, %v10184_v52 }
0x168e   :  { %v10354_v18 = vpop.f32.mrf.mxu0 }
0x168f   :  { %v10589_v19 = vpop.f32.mrf.mxu1  ;;  %v10355_v25 = vadd.f32 %v10354_v18, %v10275_v20 }
0x1690   :  { %v12689_v21 = vpop.f32.mrf.mxu0 }
0x1691   :  { %v12722_v24 = vpop.f32.mrf.mxu1  ;;  %v10432_v43 = vadd.f32 %v10431_v37, %v10355_v25 }
0x1697   :  { %v10514_v26 = vpop.f32.mrf.mxu0 }
0x1698   :  { %v10515_v28 = vadd.f32 %v10514_v26, %v10432_v43 }
0x1699   :  { %v12711_v29 = vpop.f32.mrf.mxu0 }
0x169a   :  { %v10590_v30 = vadd.f32 %v10589_v19, %v10515_v28 }
0x169c   :  { %12787 = vtanh.f32 %v10590_v30 }
0x169d   :  { %13001 = shalt.err (!%p12998_p12)
}
0x169e   :  { %10664 = dma.vmem_to_hbm [thread:$0]  %s10662_s24, 16, %s15063_s20, [#allocation21]   ;;  %v10599_v31 = vsub.s32 0, %v14225_v49  ;;  %vm10596_vm3 = vcmp.eq.s32.totalorder %v14225_v49, 0 }
0x169f   :  { %s13105_s4 = smov [#allocation22]  }
0x16a0   :  { %s10671_s26 = sshll.u32 %s13105_s4, 4  ;;  %s10672_s26 = int_to_ptr.vmem [resolvable:$true] %s10671_s26 }
0x16a1   :  { %s13010_s2 = scalar_lea.vmem %s10672_s26, 16  ;;  %s13014_s9 = scalar_lea.vmem %s10672_s26, 32 }
0x16a2   :  { %p13011_p13 = scmp.ne.s32.totalorder %s10672_s26, %s13010_s2  ;;  %p13015_p0 = scmp.lt.s32.totalorder %s10672_s26, %s10672_s26 }
0x16a3   :  { %p13016_p1 = scmp.lt.s32.totalorder %s13014_s9, %s13010_s2 }
0x16a5   :  { %p13017_p2 = por %p13016_p1, %p13015_p0 }
0x16a7   :  { %p13018_p3 = pnand %p13017_p2, %p13011_p13 }
0x16a9   :  { %v12788_v17 = vpop.eup %12787 }
0x16aa   :  { %v10600_v54 = vrot.slane %v12788_v17, %v10599_v31 }
0x16ab   :  { %13021 = shalt.err (!%p13018_p3)
}
0x16ac   :  { %10674 = dma.vmem_to_hbm [thread:$0]  %s10672_s26, 16, %s15064_s21, [#allocation21]   ;;  %v10601_v60 = vsel %vm10596_vm3, %v10600_v54, 0.0 }
0x16ad   :  { %s13106_s20 = smov [#allocation23]   ;;  %10604 = vrot.lane.b32.xlu0 %v10601_v60, %s13103_s10 }
0x16ae   :  { %s10681_s27 = sshll.u32 %s13106_s20, 4  ;;  %s10682_s27 = int_to_ptr.vmem [resolvable:$true] %s10681_s27 }
0x16af   :  { %s13030_s3 = scalar_lea.vmem %s10682_s27, 16  ;;  %s13034_s28 = scalar_lea.vmem %s10682_s27, 32 }
0x16b0   :  { %p13031_p4 = scmp.ne.s32.totalorder %s10682_s27, %s13030_s3  ;;  %p13035_p5 = scmp.lt.s32.totalorder %s10682_s27, %s10682_s27 }
0x16b1   :  { %p13036_p6 = scmp.lt.s32.totalorder %s13034_s28, %s13030_s3 }
0x16b3   :  { %p13037_p7 = por %p13036_p6, %p13035_p5 }
0x16b5   :  { %p13038_p8 = pnand %p13037_p7, %p13031_p4 }
0x16b7   :  { %13041 = shalt.err (!%p13038_p8)
}
0x16b8   :  { %10684 = dma.vmem_to_hbm [thread:$0]  %s10682_s27, 16, %s15065_s22, [#allocation24]   ;;  %vm10602_vm4 = vcmp.eq.s32.totalorder %v14225_v49, 1  ;;  %vm10608_vm5 = vcmp.eq.s32.totalorder %v14225_v49, 2  ;;  %v10612_v63 = vrot.slane %v14962_v59, %v10599_v31  ;;  %vm10614_vm6 = vcmp.eq.s32.totalorder %v14225_v49, 3 }
0x16b9   :  { %v10618_v39 = vrot.slane %v14889_v23, %v10599_v31  ;;  %vm10620_vm7 = vcmp.eq.s32.totalorder %v14225_v49, 4  ;;  %v10624_v42 = vrot.slane %v14823_v50, %v10599_v31  ;;  %vm10626_vm8 = vcmp.eq.s32.totalorder %v14225_v49, 5  ;;  %s13107_s21 = smov [#allocation19]  }
0x16ba   :  { %v10630_v48 = vrot.slane %v14757_v10, %v10599_v31  ;;  %vm10632_vm9 = vcmp.eq.s32.totalorder %v14225_v49, 6  ;;  %s10651_s22 = sshll.u32 %s13107_s21, 4  ;;  %v10636_v57 = vrot.slane %v14691_v27, %v10599_v31  ;;  %vm10638_vm10 = vcmp.eq.s32.totalorder %v14225_v49, 7  ;;  %s10652_s22 = int_to_ptr.vmem [resolvable:$true] %s10651_s22 }
0x16bb   :  { %v10642_v1 = vrot.slane %v14625_v4, %v10599_v31  ;;  %s13050_s10 = scalar_lea.vmem %s10652_s22, 128  ;;  %p13055_p10 = scmp.lt.s32.totalorder %s10652_s22, %s10652_s22 }
0x16bc   :  { %p13051_p9 = scmp.ne.s32.totalorder %s10652_s22, %s13050_s10  ;;  %p13056_p11 = scmp.lt.s32.totalorder %s13050_s10, %s13050_s10 }
0x16be   :  { %p13057_p12 = por %p13056_p11, %p13055_p10 }
0x16c0   :  { %p13058_p13 = pnand %p13057_p12, %p13051_p9 }
0x171f   :  { %v10605_v2 = vpop.permute.xlu0 %10604 }
0x1720   :  { %v10607_v41 = vsel %vm10602_vm4, %v10600_v54, %v10605_v2 }
0x1721   :  { %v10613_v44 = vsel %vm10608_vm5, %v10612_v63, %v10607_v41 }
0x1722   :  { %v10619_v46 = vsel %vm10614_vm6, %v10618_v39, %v10613_v44 }
0x1723   :  { %v10625_v40 = vsel %vm10620_vm7, %v10624_v42, %v10619_v46 }
0x1724   :  { %v10631_v23 = vsel %vm10626_vm8, %v10630_v48, %v10625_v40 }
0x1725   :  { %v10637_v58 = vsel %vm10632_vm9, %v10636_v57, %v10631_v23 }
0x1726   :  { %v10643_v50 = vsel %vm10638_vm10, %v10642_v1, %v10637_v58 }
0x1727   :  { %10644 = vst.msk [vmem:[#allocation19] sm:$0xff] %vm215_vm1, %v10643_v50 }
0x1728   :  { %13061 = shalt.err (!%p13058_p13)
}
0x1729   :  { %10654 = dma.vmem_to_hbm [thread:$0]  %s10652_s22, 128, %s15062_s19, [#allocation4]  }
0x172a   :  { %13082 = dma.done.wait [#allocation4], 128  }
0x172b   :  { %13083 = vsyncadd [#allocation4], 4294967168 }
0x172c   :  { %13084 = dma.done.wait [#allocation21], 32  }
0x172d   :  { %13085 = vsyncadd [#allocation21], 4294967264 }
0x172e   :  { %13086 = dma.done.wait [#allocation24], 16  }
0x172f   :  { %13087 = vsyncadd [#allocation24], 4294967280 }
0x1730   :  { %10697 = vsyncpa [#allocation3], 1 }
0x1731   :  { %10698 = vsyncpa [#allocation6], 1 }
0x1732   :  { %10699 = vsyncpa [#allocation9], 1 }
0x1733   :  { %10700 = vsyncpa [#allocation12], 1 }
0x1734   :  { %10701 = vsyncpa [#allocation15], 1 }
0x1735   :  { %10702 = vsyncpa [#allocation18], 1 }
0x1736   :  { %10703 = vsyncpa [#allocation4], 1 }
0x1737   :  { %10704 = vsyncpa [#allocation21], 1 }
0x1738   :  { %10705 = vsyncpa [#allocation24], 1 }

</bundles_post_ra>
